<compile_context>
chip_gen: v5e
topology: v5e:2x2
jax: 0.10.0
libtpu: 0.0.40
codegen_flags: <defaults>
</compile_context>

<pallas_src>
import math

import jax
import jax.numpy as jnp
from jax.experimental import pallas as pl
from jax.experimental.pallas import tpu as pltpu

LANE = 128
EPS = 1e-5


def _round_up(x, m):
    return ((x + m - 1) // m) * m


_VMEM_LIMIT_CACHE = [None]


def _vmem_limit_bytes():
    """Generation-aware scoped-VMEM limit (v5e/v6e ~77 MiB, v7x ~38 MiB)."""
    if _VMEM_LIMIT_CACHE[0] is None:
        limit = 48 * 1024 * 1024                       # conservative fallback
        try:
            cap = getattr(pltpu.get_tpu_info(), "vmem_capacity_bytes", None)
            if cap:
                limit = max(32 * 1024 * 1024,
                            min(int(cap * 0.6), 96 * 1024 * 1024))
        except Exception:
            pass
        _VMEM_LIMIT_CACHE[0] = limit
    return _VMEM_LIMIT_CACHE[0]


def _compiler_params():
    return pltpu.CompilerParams(dimension_semantics=("parallel",),
                                vmem_limit_bytes=_vmem_limit_bytes())


def _img_spec(shape):
    """One full image per grid step: squeeze batch dim, full remaining dims."""
    rest = (0,) * (len(shape) - 1)
    return pl.BlockSpec((None,) + tuple(shape[1:]), lambda n: (n,) + rest)


def _bcast_spec(shape):
    """Whole (small) array, identical block every grid step (weights, BN)."""
    zeros = (0,) * len(shape)
    return pl.BlockSpec(tuple(shape), lambda n: zeros)


# --------------------------------------------------------------------------- #
# Weight packing (XLA glue)
# --------------------------------------------------------------------------- #
def _pack_w3x3(w, ci_p, co_p):
    """Stride-1 3x3 conv weights -> (3, 3*ci_p, co_p): row dh, K blocks dw=0..2."""
    _, _, ci, co = w.shape
    wp = jnp.pad(w, ((0, 0), (0, 0), (0, ci_p - ci), (0, co_p - co)))
    return wp.reshape(3, 3 * ci_p, co_p).astype(jnp.bfloat16)


def _pack_w1_s2(w, ci_p, co_p):
    """Stride-2 3x3 conv weights packed for the space-to-depth phase order
    (pos0..3 = phases (1,0),(0,0),(0,1),(1,1)) -> (4, 4*ci_p, co_p)."""
    _, _, ci, co = w.shape
    wp = jnp.pad(w, ((0, 0), (0, 0), (0, ci_p - ci), (0, co_p - co))
                 ).astype(jnp.float32)
    z = jnp.zeros((ci_p, co_p), jnp.float32)
    g0 = jnp.concatenate([wp[1, 0], wp[0, 0], wp[0, 1], wp[1, 1]], axis=0)
    g1 = jnp.concatenate([wp[1, 2], wp[0, 2], z, z], axis=0)
    g2 = jnp.concatenate([wp[2, 0], wp[2, 1], z, z], axis=0)
    g3 = jnp.concatenate([wp[2, 2], z, z, z], axis=0)
    return jnp.stack([g0, g1, g2, g3], axis=0).astype(jnp.bfloat16)


# --------------------------------------------------------------------------- #
# In-kernel helpers
# --------------------------------------------------------------------------- #
def _valid_col_mask(m_rows, wp, wo):
    """Mask of valid output columns in the (rows, C) 'padded-row flat' layout."""
    col = jax.lax.broadcasted_iota(jnp.int32, (m_rows, 1), 0) % wp
    return jnp.logical_and(col >= 1, col <= wo)


def _conv_accumulate(src_ref, w_ref, acc_ref, m_rows, groups):
    """acc <- sum_g  concat(src slices of group g) @ w[g]  (static slices)."""
    for gi, (slices, k) in enumerate(groups):
        parts = [src_ref[pl.ds(r, m_rows), pl.ds(c0, cn)]
                 for (r, c0, cn) in slices]
        patch = parts[0] if len(parts) == 1 else jnp.concatenate(parts, axis=-1)
        wg = w_ref[gi]
        if wg.shape[0] != k:
            wg = wg[:k, :]
        contrib = jnp.dot(patch, wg, preferred_element_type=jnp.float32)
        if gi == 0:
            acc_ref[...] = contrib
        else:
            acc_ref[...] += contrib


# --------------------------------------------------------------------------- #
# Kernels
# --------------------------------------------------------------------------- #
def _make_conv1_kernel(Ho, Wo, Cout_p, groups, proj):
    Wp = Wo + 2
    Mpad = Ho * Wp

    def kernel(*refs):
        if proj is not None:
            x_ref, w1_ref, ws_ref, y1_ref, st_ref, ysc_ref, acc_ref = refs
        else:
            x_ref, w1_ref, y1_ref, st_ref, acc_ref = refs

        _conv_accumulate(x_ref, w1_ref, acc_ref, Mpad, groups)
        acc = acc_ref[...]
        y1_ref[...] = acc.astype(jnp.bfloat16)

        valid = _valid_col_mask(Mpad, Wp, Wo)
        am = jnp.where(valid, acc, 0.0)
        rows = [jnp.sum(am, axis=0, keepdims=True),
                jnp.sum(am * am, axis=0, keepdims=True)]

        if proj is not None:
            roff, c0, k = proj
            xc = x_ref[pl.ds(roff, Mpad), pl.ds(c0, k)]
            sc = jnp.dot(xc, ws_ref[...], preferred_element_type=jnp.float32)
            ysc_ref[...] = sc.astype(jnp.bfloat16)
            sm = jnp.where(valid, sc, 0.0)
            rows += [jnp.sum(sm, axis=0, keepdims=True),
                     jnp.sum(sm * sm, axis=0, keepdims=True)]

        rows.append(jnp.zeros((8 - len(rows), Cout_p), jnp.float32))
        st_ref[...] = jnp.concatenate(rows, axis=0)

    return kernel


def _make_conv2_kernel(Ho, Wo, Cout_p, groups):
    Wp = Wo + 2
    Mpad = Ho * Wp

    def kernel(y1_ref, bn1_ref, w2_ref, y2_ref, st_ref, pad_ref, acc_ref):
        valid = _valid_col_mask(Mpad, Wp, Wo)

        # BN1 + ReLU in f32; zero the junk/pad columns so they act as conv2's
        # zero padding, then store the interior contiguously into the scratch.
        a1 = bn1_ref[0:1, :]
        c1 = bn1_ref[1:2, :]
        z = jnp.maximum(y1_ref[...].astype(jnp.float32) * a1 + c1, 0.0)
        z = jnp.where(valid, z, 0.0)

        # conv2 pad rows must be zero; re-zero every step (megacore-safe: each
        # TensorCore owns its own scratch, so a program_id==0-only init would
        # leave the second core's scratch uninitialized).
        zband = jnp.zeros((Wp, Cout_p), jnp.bfloat16)
        pad_ref[pl.ds(Wp, Wp), :] = zband
        pad_ref[pl.ds((Ho + 2) * Wp, Wp), :] = zband
        pad_ref[pl.ds(2 * Wp, Mpad), :] = z.astype(jnp.bfloat16)

        _conv_accumulate(pad_ref, w2_ref, acc_ref, Mpad, groups)
        acc = acc_ref[...]
        y2_ref[...] = acc.astype(jnp.bfloat16)

        am = jnp.where(valid, acc, 0.0)
        st_ref[...] = jnp.concatenate(
            [jnp.sum(am, axis=0, keepdims=True),
             jnp.sum(am * am, axis=0, keepdims=True),
             jnp.zeros((6, Cout_p), jnp.float32)], axis=0)

    return kernel


def _make_finalize_kernel(use_proj):
    def kernel(y2_ref, sc_ref, bn_ref, o_ref):
        a2 = bn_ref[0:1, :]
        c2 = bn_ref[1:2, :]
        y = y2_ref[...].astype(jnp.float32) * a2 + c2
        sc = sc_ref[...].astype(jnp.float32)
        if use_proj:
            sc = sc * bn_ref[2:3, :] + bn_ref[3:4, :]
        o_ref[...] = jnp.maximum(y + sc, 0.0)

    return kernel


# --------------------------------------------------------------------------- #
# Wrapper
# --------------------------------------------------------------------------- #
def basic_block_forward(x_nchw, params, stride):
    """Forward pass. x_nchw: (N, Cin, H, W) f32. Returns (N, Cout, Ho, Wo) f32."""
    N, Cin, H, W = x_nchw.shape
    Cout = params["w1"].shape[-1]
    use_proj = (stride != 1) or (Cin != Cout)
    assert stride in (1, 2), "ResNet BasicBlock only uses stride 1 or 2"
    Ho = (H - 1) // stride + 1
    Wo = (W - 1) // stride + 1
    Wp = Wo + 2                         # padded row width ("left-junk-column" layout)
    Mpad = Ho * Wp                      # per-image rows of every activation slab
    Mvalid = N * Ho * Wo                # BatchNorm divisor (valid pixels only)
    Cin_p = _round_up(Cin, LANE)
    Cout_p = _round_up(Cout, LANE)

    # ---- layout glue (cheap XLA): NHWC + channel pad to lane multiples -------
    x = jnp.transpose(x_nchw, (0, 2, 3, 1)).astype(jnp.float32)
    x_p = jnp.pad(x, ((0, 0), (0, 0), (0, 0), (0, Cin_p - Cin)))
    xb = x_p.astype(jnp.bfloat16)

    if stride == 1:
        # rows: [extra0, pad, x..., pad, extra0]; cols: [pad, x..., pad]
        buf = jnp.pad(xb, ((0, 0), (2, 2), (1, 1), (0, 0)))
        xin = buf.reshape(N, (Ho + 4) * Wp, Cin_p)
        # per-dh slab of 3 kw-shifted slices -> 3 matmuls with K = 3*Cin_p
        groups1 = [([((dh + 1) * Wp - 1 + dw, 0, Cin_p) for dw in range(3)],
                    3 * Cin_p) for dh in range(3)]
        w1t = _pack_w3x3(params["w1"], Cin_p, Cout_p)
        proj_plan = (2 * Wp, 0, Cin_p) if use_proj else None
    else:
        # space-to-depth phase split; phase order (1,0),(0,0),(0,1),(1,1) makes
        # every tap group a contiguous channel range of the packed input.
        xpad = jnp.pad(xb, ((0, 0), (1, 2), (1, 2), (0, 0)))
        phases = [xpad[:, a::2, b::2, :][:, :Ho + 1, :Wo + 1, :]
                  for (a, b) in ((1, 0), (0, 0), (0, 1), (1, 1))]
        s2d = jnp.concatenate(phases, axis=-1)
        buf = jnp.pad(s2d, ((0, 0), (1, 0), (0, 1), (0, 0)))
        xin = buf.reshape(N, (Ho + 2) * Wp, 4 * Cin_p)
        groups1 = [([(Wp - 1, 0, 4 * Cin_p)], 4 * Cin_p),
                   ([(Wp, 0, 2 * Cin_p)], 2 * Cin_p),
                   ([(2 * Wp - 1, Cin_p, 2 * Cin_p)], 2 * Cin_p),
                   ([(2 * Wp, Cin_p, Cin_p)], Cin_p)]
        w1t = _pack_w1_s2(params["w1"], Cin_p, Cout_p)
        proj_plan = (Wp - 1, 3 * Cin_p, Cin_p)      # 1x1 stride-2 = center phase

    w2t = _pack_w3x3(params["w2"], Cout_p, Cout_p)
    groups2 = [([((dh + 1) * Wp - 1 + dw, 0, Cout_p) for dw in range(3)],
                3 * Cout_p) for dh in range(3)]

    g1 = jnp.pad(params["g1"], (0, Cout_p - Cout))
    b1 = jnp.pad(params["b1"], (0, Cout_p - Cout))
    g2 = jnp.pad(params["g2"], (0, Cout_p - Cout))
    b2 = jnp.pad(params["b2"], (0, Cout_p - Cout))

    cp = _compiler_params()
    act_bf16 = N * Mpad * Cout_p * 2

    # ---- phase 1: conv1 (+ 1x1 projection) and BN stat partials --------------
    args1 = [xin, w1t]
    in_specs1 = [_img_spec(xin.shape), _bcast_spec(w1t.shape)]
    out_shape1 = [jax.ShapeDtypeStruct((N, Mpad, Cout_p), jnp.bfloat16),
                  jax.ShapeDtypeStruct((N, 8, Cout_p), jnp.float32)]
    out_specs1 = [_img_spec((N, Mpad, Cout_p)), _img_spec((N, 8, Cout_p))]
    if use_proj:
        wst = jnp.pad(params["ws"],
                      ((0, 0), (0, 0), (0, Cin_p - Cin), (0, Cout_p - Cout))
                      ).reshape(Cin_p, Cout_p).astype(jnp.bfloat16)
        args1.append(wst)
        in_specs1.append(_bcast_spec(wst.shape))
        out_shape1.append(jax.ShapeDtypeStruct((N, Mpad, Cout_p), jnp.bfloat16))
        out_specs1.append(_img_spec((N, Mpad, Cout_p)))

    ksum1 = sum(k for _, k in groups1) + (Cin_p if use_proj else 0)
    flops1 = 2 * N * Mpad * Cout_p * ksum1 + 4 * N * Mpad * Cout_p
    bytes1 = (xin.size * 2 + w1t.size * 2 + act_bf16 + N * 8 * Cout_p * 4
              + (act_bf16 if use_proj else 0))
    res1 = pl.pallas_call(
        _make_conv1_kernel(Ho, Wo, Cout_p, groups1,
                           proj_plan if use_proj else None),
        grid=(N,),
        in_specs=in_specs1,
        out_specs=tuple(out_specs1),
        out_shape=tuple(out_shape1),
        scratch_shapes=[pltpu.VMEM((Mpad, Cout_p), jnp.float32)],
        compiler_params=cp,
        cost_estimate=pl.CostEstimate(flops=int(flops1), transcendentals=0,
                                      bytes_accessed=int(bytes1)),
    )(*args1)
    if use_proj:
        y1, st1, ysc = res1
    else:
        y1, st1 = res1

    # ---- tiny per-channel BN coefficient math (O(C), plain XLA glue) ---------
    # NOTE: var = E[x^2] - E[x]^2 in f32; fine for conv outputs (|mean| ~ std).
    def bn_coeffs(s, ss, g, b):
        mu = s / Mvalid
        var = jnp.maximum(ss / Mvalid - mu * mu, 0.0)   # biased batch variance
        a = g * jax.lax.rsqrt(var + EPS)
        return a, b - mu * a

    st1s = jnp.sum(st1, axis=0)
    a1, c1 = bn_coeffs(st1s[0], st1s[1], g1, b1)
    bn1 = jnp.concatenate([a1[None], c1[None],
                           jnp.zeros((6, Cout_p), jnp.float32)], axis=0)

    # ---- phase 2: BN1 + ReLU -> conv2 and BN2 stat partials -------------------
    flops2 = 2 * N * Mpad * Cout_p * 9 * Cout_p + 10 * N * Mpad * Cout_p
    bytes2 = 2 * act_bf16 + w2t.size * 2 + N * 8 * Cout_p * 4 + bn1.size * 4
    y2, st2 = pl.pallas_call(
        _make_conv2_kernel(Ho, Wo, Cout_p, groups2),
        grid=(N,),
        in_specs=[_img_spec(y1.shape), _bcast_spec(bn1.shape),
                  _bcast_spec(w2t.shape)],
        out_specs=(_img_spec((N, Mpad, Cout_p)), _img_spec((N, 8, Cout_p))),
        out_shape=(jax.ShapeDtypeStruct((N, Mpad, Cout_p), jnp.bfloat16),
                   jax.ShapeDtypeStruct((N, 8, Cout_p), jnp.float32)),
        scratch_shapes=[pltpu.VMEM(((Ho + 4) * Wp, Cout_p), jnp.bfloat16),
                        pltpu.VMEM((Mpad, Cout_p), jnp.float32)],
        compiler_params=cp,
        cost_estimate=pl.CostEstimate(flops=int(flops2), transcendentals=0,
                                      bytes_accessed=int(bytes2)),
    )(y1, bn1, w2t)

    st2s = jnp.sum(st2, axis=0)
    a2, c2 = bn_coeffs(st2s[0], st2s[1], g2, b2)
    rows = [a2[None], c2[None]]
    if use_proj:
        gs = jnp.pad(params["gs"], (0, Cout_p - Cout))
        bs = jnp.pad(params["bs"], (0, Cout_p - Cout))
        asc, csc = bn_coeffs(st1s[2], st1s[3], gs, bs)
        rows += [asc[None], csc[None]]
    rows.append(jnp.zeros((8 - len(rows), Cout_p), jnp.float32))
    bn_fin = jnp.concatenate(rows, axis=0)

    if use_proj:
        sc_in = ysc                                    # bf16 projection output
    else:
        # identity shortcut: original input (f32) in the same padded-row layout
        sc_in = jnp.pad(x_p, ((0, 0), (0, 0), (1, 1), (0, 0))
                        ).reshape(N, Mpad, Cin_p)

    # ---- phase 3: BN2 (+ BN_sc) + residual add + final ReLU -------------------
    flops3 = 6 * N * Mpad * Cout_p
    bytes3 = (act_bf16 + sc_in.size * sc_in.dtype.itemsize
              + N * Mpad * Cout_p * 4 + bn_fin.size * 4)
    out = pl.pallas_call(
        _make_finalize_kernel(use_proj),
        grid=(N,),
        in_specs=[_img_spec(y2.shape), _img_spec(sc_in.shape),
                  _bcast_spec(bn_fin.shape)],
        out_specs=_img_spec((N, Mpad, Cout_p)),
        out_shape=jax.ShapeDtypeStruct((N, Mpad, Cout_p), jnp.float32),
        compiler_params=cp,
        cost_estimate=pl.CostEstimate(flops=int(flops3), transcendentals=0,
                                      bytes_accessed=int(bytes3)),
    )(y2, sc_in, bn_fin)

    # Crop junk columns / padded channels, return NCHW (XLA glue).
    # TODO(synk): in a full ResNet keep the padded NHWC layout between blocks
    #             instead of re-slicing/transposing per block.
    out = out.reshape(N, Ho, Wp, Cout_p)[:, :, 1:Wo + 1, :Cout]
    return jnp.transpose(out, (0, 3, 1, 2))


# --------------------------------------------------------------------------- #
# Parameters, reference, test
# --------------------------------------------------------------------------- #
def init_params(key, cin, cout, stride):
    """Deterministic synthetic parameters (HWIO conv weights, per-channel BN affine)."""
    ks = jax.random.split(key, 9)

    def conv_w(k, kh, kw, ci, co):
        return jax.random.normal(k, (kh, kw, ci, co), jnp.float32) / math.sqrt(kh * kw * ci)

    p = {
        "w1": conv_w(ks[0], 3, 3, cin, cout),
        "g1": 1.0 + 0.1 * jax.random.normal(ks[1], (cout,), jnp.float32),
        "b1": 0.1 * jax.random.normal(ks[2], (cout,), jnp.float32),
        "w2": conv_w(ks[3], 3, 3, cout, cout),
        "g2": 1.0 + 0.1 * jax.random.normal(ks[4], (cout,), jnp.float32),
        "b2": 0.1 * jax.random.normal(ks[5], (cout,), jnp.float32),
    }
    if stride != 1 or cin != cout:
        p["ws"] = conv_w(ks[6], 1, 1, cin, cout)
        p["gs"] = 1.0 + 0.1 * jax.random.normal(ks[7], (cout,), jnp.float32)
        p["bs"] = 0.1 * jax.random.normal(ks[8], (cout,), jnp.float32)
    return p


def ref_forward(x_nchw, params, stride, eps=EPS):
    """Pure-JAX reference (mirrors the PyTorch module's training-mode forward)."""
    x = jnp.transpose(x_nchw, (0, 2, 3, 1)).astype(jnp.float32)
    dn = ("NHWC", "HWIO", "NHWC")
    hi = jax.lax.Precision.HIGHEST

    def bn(y, g, b):
        mu = jnp.mean(y, axis=(0, 1, 2), keepdims=True)
        var = jnp.mean(jnp.square(y - mu), axis=(0, 1, 2), keepdims=True)
        return (y - mu) * jax.lax.rsqrt(var + eps) * g + b

    y = jax.lax.conv_general_dilated(x, params["w1"], (stride, stride),
                                     ((1, 1), (1, 1)), dimension_numbers=dn, precision=hi)
    y = jax.nn.relu(bn(y, params["g1"], params["b1"]))
    y = jax.lax.conv_general_dilated(y, params["w2"], (1, 1),
                                     ((1, 1), (1, 1)), dimension_numbers=dn, precision=hi)
    y = bn(y, params["g2"], params["b2"])

    cin, cout = x.shape[-1], params["w1"].shape[-1]
    if stride != 1 or cin != cout:
        sc = jax.lax.conv_general_dilated(x, params["ws"], (stride, stride),
                                          ((0, 0), (0, 0)), dimension_numbers=dn, precision=hi)
        sc = bn(sc, params["gs"], params["bs"])
    else:
        sc = x
    return jnp.transpose(jax.nn.relu(y + sc), (0, 3, 1, 2))


if __name__ == "__main__":
    key = jax.random.PRNGKey(0)
    fwd = jax.jit(basic_block_forward, static_argnums=(2,))

    # Config A: projection shortcut (stride=2, Cin != Cout)
    # Config B: identity shortcut   (stride=1, Cin == Cout)
    configs = [
        dict(N=2, Cin=4, H=16, W=16, Cout=8, stride=2),
        dict(N=2, Cin=8, H=16, W=16, Cout=8, stride=1),
    ]

    ok = True
    for cfg in configs:
        kx, kp, key = jax.random.split(key, 3)
        x = jax.random.normal(kx, (cfg["N"], cfg["Cin"], cfg["H"], cfg["W"]), jnp.float32)
        params = init_params(kp, cfg["Cin"], cfg["Cout"], cfg["stride"])

        out = jax.block_until_ready(fwd(x, params, cfg["stride"]))

        Ho = (cfg["H"] - 1) // cfg["stride"] + 1
        Wo = (cfg["W"] - 1) // cfg["stride"] + 1
        if out.shape != (cfg["N"], cfg["Cout"], Ho, Wo) or bool(jnp.any(jnp.isnan(out))):
            ok = False
            break

        ref = ref_forward(x, params, cfg["stride"])
        err = float(jnp.max(jnp.abs(out - ref)))
        # bf16 matmul operands + bf16 inter-phase activations -> ~1e-2 deviation.
        if not (err < 4e-2):
            ok = False
            break

    if ok:
        print("KERNEL_OK")
</pallas_src>

<mosaic_0001>
module attributes {stable_mosaic.version = 11 : i64} {
  func.func @kernel(%arg0: i32, %arg1: memref<1x100x512xbf16, #tpu.memory_space<vmem>>, %arg2: memref<4x512x128xbf16, #tpu.memory_space<vmem>>, %arg3: memref<128x128xbf16, #tpu.memory_space<vmem>>, %arg4: memref<1x80x128xbf16, #tpu.memory_space<vmem>>, %arg5: memref<1x8x128xf32, #tpu.memory_space<vmem>>, %arg6: memref<1x80x128xbf16, #tpu.memory_space<vmem>>, %arg7: memref<80x128xf32, #tpu.memory_space<vmem>>) attributes {dimension_semantics = [#tpu.dimension_semantics<parallel>], iteration_bounds = array<i64: 2>, scalar_prefetch = 0 : i64, scratch_operands = 1 : i64, tpu.core_type = #tpu.core_type<tc>, window_params = [{transform_indices = @transform_0, window_bounds = array<i64: 1, 100, 512>}, {pipeline_mode = #tpu.pipeline_mode<synchronous>, transform_indices = @transform_1, window_bounds = array<i64: 4, 512, 128>}, {pipeline_mode = #tpu.pipeline_mode<synchronous>, transform_indices = @transform_2, window_bounds = array<i64: 128, 128>}, {transform_indices = @transform_3, window_bounds = array<i64: 1, 80, 128>}, {transform_indices = @transform_4, window_bounds = array<i64: 1, 8, 128>}, {transform_indices = @transform_5, window_bounds = array<i64: 1, 80, 128>}]} {
    %c0 = arith.constant 0 : index
    %c9 = arith.constant 9 : index
    %c0_0 = arith.constant 0 : index
    %0 = vector.load %arg1[%c0, %c9, %c0_0] : memref<1x100x512xbf16, #tpu.memory_space<vmem>>, vector<1x80x512xbf16>
    %1 = vector.shape_cast %0 : vector<1x80x512xbf16> to vector<80x512xbf16>
    %c0_1 = arith.constant 0 : index
    %c0_2 = arith.constant 0 : index
    %c0_3 = arith.constant 0 : index
    %2 = vector.load %arg2[%c0_1, %c0_2, %c0_3] : memref<4x512x128xbf16, #tpu.memory_space<vmem>>, vector<1x512x128xbf16>
    %3 = vector.shape_cast %2 : vector<1x512x128xbf16> to vector<512x128xbf16>
    %cst = arith.constant dense<0.000000e+00> : vector<80x128xf32>
    %4 = tpu.matmul %1, %3, %cst {dimension_numbers = #tpu.dot_dimension_numbers<[1], [0], [0], [1], [0, 0, 1, 1], [], []>} : vector<80x512xbf16>, vector<512x128xbf16>, vector<80x128xf32> -> vector<80x128xf32>
    %c0_4 = arith.constant 0 : index
    %c0_5 = arith.constant 0 : index
    %5 = vector.load %arg7[%c0_4, %c0_5] : memref<80x128xf32, #tpu.memory_space<vmem>>, vector<80x128xf32>
    tpu.vector_store %arg7[%c0_4, %c0_5], %4 {strides = array<i32>} : memref<80x128xf32, #tpu.memory_space<vmem>>, vector<80x128xf32>,
    %c0_6 = arith.constant 0 : index
    %c10 = arith.constant 10 : index
    %c0_7 = arith.constant 0 : index
    %6 = vector.load %arg1[%c0_6, %c10, %c0_7] : memref<1x100x512xbf16, #tpu.memory_space<vmem>>, vector<1x80x256xbf16>
    %7 = vector.shape_cast %6 : vector<1x80x256xbf16> to vector<80x256xbf16>
    %c1 = arith.constant 1 : index
    %c0_8 = arith.constant 0 : index
    %c0_9 = arith.constant 0 : index
    %8 = vector.load %arg2[%c1, %c0_8, %c0_9] : memref<4x512x128xbf16, #tpu.memory_space<vmem>>, vector<1x512x128xbf16>
    %9 = vector.shape_cast %8 : vector<1x512x128xbf16> to vector<512x128xbf16>
    %10 = vector.extract_strided_slice %9 {offsets = [0, 0], sizes = [256, 128], strides = [1, 1]} : vector<512x128xbf16> to vector<256x128xbf16>
    %cst_10 = arith.constant dense<0.000000e+00> : vector<80x128xf32>
    %11 = tpu.matmul %7, %10, %cst_10 {dimension_numbers = #tpu.dot_dimension_numbers<[1], [0], [0], [1], [0, 0, 1, 1], [], []>} : vector<80x256xbf16>, vector<256x128xbf16>, vector<80x128xf32> -> vector<80x128xf32>
    %c0_11 = arith.constant 0 : index
    %c0_12 = arith.constant 0 : index
    %12 = vector.load %arg7[%c0_11, %c0_12] : memref<80x128xf32, #tpu.memory_space<vmem>>, vector<80x128xf32>
    %13 = arith.addf %12, %11 : vector<80x128xf32>
    %c0_13 = arith.constant 0 : index
    %c0_14 = arith.constant 0 : index
    %14 = vector.load %arg7[%c0_13, %c0_14] : memref<80x128xf32, #tpu.memory_space<vmem>>, vector<80x128xf32>
    tpu.vector_store %arg7[%c0_13, %c0_14], %13 {strides = array<i32>} : memref<80x128xf32, #tpu.memory_space<vmem>>, vector<80x128xf32>,
    %c0_15 = arith.constant 0 : index
    %c19 = arith.constant 19 : index
    %c128 = arith.constant 128 : index
    %15 = vector.load %arg1[%c0_15, %c19, %c128] : memref<1x100x512xbf16, #tpu.memory_space<vmem>>, vector<1x80x256xbf16>
    %16 = vector.shape_cast %15 : vector<1x80x256xbf16> to vector<80x256xbf16>
    %c2 = arith.constant 2 : index
    %c0_16 = arith.constant 0 : index
    %c0_17 = arith.constant 0 : index
    %17 = vector.load %arg2[%c2, %c0_16, %c0_17] : memref<4x512x128xbf16, #tpu.memory_space<vmem>>, vector<1x512x128xbf16>
    %18 = vector.shape_cast %17 : vector<1x512x128xbf16> to vector<512x128xbf16>
    %19 = vector.extract_strided_slice %18 {offsets = [0, 0], sizes = [256, 128], strides = [1, 1]} : vector<512x128xbf16> to vector<256x128xbf16>
    %cst_18 = arith.constant dense<0.000000e+00> : vector<80x128xf32>
    %20 = tpu.matmul %16, %19, %cst_18 {dimension_numbers = #tpu.dot_dimension_numbers<[1], [0], [0], [1], [0, 0, 1, 1], [], []>} : vector<80x256xbf16>, vector<256x128xbf16>, vector<80x128xf32> -> vector<80x128xf32>
    %c0_19 = arith.constant 0 : index
    %c0_20 = arith.constant 0 : index
    %21 = vector.load %arg7[%c0_19, %c0_20] : memref<80x128xf32, #tpu.memory_space<vmem>>, vector<80x128xf32>
    %22 = arith.addf %21, %20 : vector<80x128xf32>
    %c0_21 = arith.constant 0 : index
    %c0_22 = arith.constant 0 : index
    %23 = vector.load %arg7[%c0_21, %c0_22] : memref<80x128xf32, #tpu.memory_space<vmem>>, vector<80x128xf32>
    tpu.vector_store %arg7[%c0_21, %c0_22], %22 {strides = array<i32>} : memref<80x128xf32, #tpu.memory_space<vmem>>, vector<80x128xf32>,
    %c0_23 = arith.constant 0 : index
    %c20 = arith.constant 20 : index
    %c128_24 = arith.constant 128 : index
    %24 = vector.load %arg1[%c0_23, %c20, %c128_24] : memref<1x100x512xbf16, #tpu.memory_space<vmem>>, vector<1x80x128xbf16>
    %25 = vector.shape_cast %24 : vector<1x80x128xbf16> to vector<80x128xbf16>
    %c3 = arith.constant 3 : index
    %c0_25 = arith.constant 0 : index
    %c0_26 = arith.constant 0 : index
    %26 = vector.load %arg2[%c3, %c0_25, %c0_26] : memref<4x512x128xbf16, #tpu.memory_space<vmem>>, vector<1x512x128xbf16>
    %27 = vector.shape_cast %26 : vector<1x512x128xbf16> to vector<512x128xbf16>
    %28 = vector.extract_strided_slice %27 {offsets = [0, 0], sizes = [128, 128], strides = [1, 1]} : vector<512x128xbf16> to vector<128x128xbf16>
    %cst_27 = arith.constant dense<0.000000e+00> : vector<80x128xf32>
    %29 = tpu.matmul %25, %28, %cst_27 {dimension_numbers = #tpu.dot_dimension_numbers<[1], [0], [0], [1], [0, 0, 1, 1], [], []>} : vector<80x128xbf16>, vector<128x128xbf16>, vector<80x128xf32> -> vector<80x128xf32>
    %c0_28 = arith.constant 0 : index
    %c0_29 = arith.constant 0 : index
    %30 = vector.load %arg7[%c0_28, %c0_29] : memref<80x128xf32, #tpu.memory_space<vmem>>, vector<80x128xf32>
    %31 = arith.addf %30, %29 : vector<80x128xf32>
    %c0_30 = arith.constant 0 : index
    %c0_31 = arith.constant 0 : index
    %32 = vector.load %arg7[%c0_30, %c0_31] : memref<80x128xf32, #tpu.memory_space<vmem>>, vector<80x128xf32>
    tpu.vector_store %arg7[%c0_30, %c0_31], %31 {strides = array<i32>} : memref<80x128xf32, #tpu.memory_space<vmem>>, vector<80x128xf32>,
    %c0_32 = arith.constant 0 : index
    %c0_33 = arith.constant 0 : index
    %33 = vector.load %arg7[%c0_32, %c0_33] : memref<80x128xf32, #tpu.memory_space<vmem>>, vector<80x128xf32>
    %34 = arith.truncf %33 : vector<80x128xf32> to vector<80x128xbf16>
    %c0_34 = arith.constant 0 : index
    %c0_35 = arith.constant 0 : index
    %c0_36 = arith.constant 0 : index
    %35 = vector.load %arg4[%c0_34, %c0_35, %c0_36] : memref<1x80x128xbf16, #tpu.memory_space<vmem>>, vector<1x80x128xbf16>
    %36 = vector.shape_cast %35 : vector<1x80x128xbf16> to vector<80x128xbf16>
    %37 = vector.shape_cast %34 : vector<80x128xbf16> to vector<1x80x128xbf16>
    tpu.vector_store %arg4[%c0_34, %c0_35, %c0_36], %37 {strides = array<i32>} : memref<1x80x128xbf16, #tpu.memory_space<vmem>>, vector<1x80x128xbf16>,
    %38 = tpu.iota {dimensions = array<i32: 0>} : vector<80x1xi32>
    %c10_i32 = arith.constant 10 : i32
    %c0_i32 = arith.constant 0 : i32
    %39 = arith.cmpi eq, %c10_i32, %c0_i32 : i32
    %c1_i32 = arith.constant 1 : i32
    %40 = arith.select %39, %c1_i32, %c10_i32 : i32
    %41 = vector.broadcast %40 : i32 to vector<80x1xi32>
    %42 = arith.remsi %38, %41 : vector<80x1xi32>
    %c0_i32_37 = arith.constant 0 : i32
    %43 = vector.broadcast %c0_i32_37 : i32 to vector<80x1xi32>
    %44 = arith.cmpi ne, %42, %43 : vector<80x1xi32>
    %c0_i32_38 = arith.constant 0 : i32
    %45 = vector.broadcast %c0_i32_38 : i32 to vector<80x1xi32>
    %46 = arith.cmpi slt, %42, %45 : vector<80x1xi32>
    %c0_i32_39 = arith.constant 0 : i32
    %47 = arith.cmpi slt, %40, %c0_i32_39 : i32
    %48 = vector.broadcast %47 : i1 to vector<80x1xi1>
    %49 = vector.broadcast %48 : vector<80x1xi1> to vector<80x1xi1>
    %50 = arith.xori %46, %49 : vector<80x1xi1>
    %51 = arith.andi %50, %44 : vector<80x1xi1>
    %52 = vector.broadcast %40 : i32 to vector<80x1xi32>
    %53 = arith.addi %42, %52 : vector<80x1xi32>
    %54 = arith.select %51, %53, %42 : vector<80x1xi1>, vector<80x1xi32>
    %c1_i32_40 = arith.constant 1 : i32
    %55 = vector.broadcast %c1_i32_40 : i32 to vector<80x1xi32>
    %56 = arith.cmpi sge, %54, %55 : vector<80x1xi32>
    %c8_i32 = arith.constant 8 : i32
    %57 = vector.broadcast %c8_i32 : i32 to vector<80x1xi32>
    %58 = arith.cmpi sle, %54, %57 : vector<80x1xi32>
    %59 = arith.andi %56, %58 : vector<80x1xi1>
    %cst_41 = arith.constant 0.000000e+00 : f32
    %60 = vector.shape_cast %59 : vector<80x1xi1> to vector<80x1xi1>
    %61 = vector.broadcast %60 : vector<80x1xi1> to vector<80x128xi1>
    %62 = vector.broadcast %cst_41 : f32 to vector<80x128xf32>
    %63 = arith.select %61, %33, %62 : vector<80x128xi1>, vector<80x128xf32>
    %cst_42 = arith.constant dense<0.000000e+00> : vector<128xf32>
    %64 = vector.multi_reduction <add>, %63, %cst_42 [0] : vector<80x128xf32> to vector<128xf32>
    %65 = vector.shape_cast %64 : vector<128xf32> to vector<1x128xf32>
    %66 = arith.mulf %63, %63 : vector<80x128xf32>
    %cst_43 = arith.constant dense<0.000000e+00> : vector<128xf32>
    %67 = vector.multi_reduction <add>, %66, %cst_43 [0] : vector<80x128xf32> to vector<128xf32>
    %68 = vector.shape_cast %67 : vector<128xf32> to vector<1x128xf32>
    %c0_44 = arith.constant 0 : index
    %c9_45 = arith.constant 9 : index
    %c384 = arith.constant 384 : index
    %69 = vector.load %arg1[%c0_44, %c9_45, %c384] : memref<1x100x512xbf16, #tpu.memory_space<vmem>>, vector<1x80x128xbf16>
    %70 = vector.shape_cast %69 : vector<1x80x128xbf16> to vector<80x128xbf16>
    %c0_46 = arith.constant 0 : index
    %c0_47 = arith.constant 0 : index
    %71 = vector.load %arg3[%c0_46, %c0_47] : memref<128x128xbf16, #tpu.memory_space<vmem>>, vector<128x128xbf16>
    %cst_48 = arith.constant dense<0.000000e+00> : vector<80x128xf32>
    %72 = tpu.matmul %70, %71, %cst_48 {dimension_numbers = #tpu.dot_dimension_numbers<[1], [0], [0], [1], [0, 0, 1, 1], [], []>} : vector<80x128xbf16>, vector<128x128xbf16>, vector<80x128xf32> -> vector<80x128xf32>
    %73 = arith.truncf %72 : vector<80x128xf32> to vector<80x128xbf16>
    %c0_49 = arith.constant 0 : index
    %c0_50 = arith.constant 0 : index
    %c0_51 = arith.constant 0 : index
    %74 = vector.load %arg6[%c0_49, %c0_50, %c0_51] : memref<1x80x128xbf16, #tpu.memory_space<vmem>>, vector<1x80x128xbf16>
    %75 = vector.shape_cast %74 : vector<1x80x128xbf16> to vector<80x128xbf16>
    %76 = vector.shape_cast %73 : vector<80x128xbf16> to vector<1x80x128xbf16>
    tpu.vector_store %arg6[%c0_49, %c0_50, %c0_51], %76 {strides = array<i32>} : memref<1x80x128xbf16, #tpu.memory_space<vmem>>, vector<1x80x128xbf16>,
    %cst_52 = arith.constant 0.000000e+00 : f32
    %77 = vector.shape_cast %59 : vector<80x1xi1> to vector<80x1xi1>
    %78 = vector.broadcast %77 : vector<80x1xi1> to vector<80x128xi1>
    %79 = vector.broadcast %cst_52 : f32 to vector<80x128xf32>
    %80 = arith.select %78, %72, %79 : vector<80x128xi1>, vector<80x128xf32>
    %cst_53 = arith.constant dense<0.000000e+00> : vector<128xf32>
    %81 = vector.multi_reduction <add>, %80, %cst_53 [0] : vector<80x128xf32> to vector<128xf32>
    %82 = vector.shape_cast %81 : vector<128xf32> to vector<1x128xf32>
    %83 = arith.mulf %80, %80 : vector<80x128xf32>
    %cst_54 = arith.constant dense<0.000000e+00> : vector<128xf32>
    %84 = vector.multi_reduction <add>, %83, %cst_54 [0] : vector<80x128xf32> to vector<128xf32>
    %85 = vector.shape_cast %84 : vector<128xf32> to vector<1x128xf32>
    %cst_55 = arith.constant 0.000000e+00 : f32
    %86 = vector.broadcast %cst_55 : f32 to vector<4x128xf32>
    %87 = tpu.concatenate %65, %68, %82, %85, %86 in 0 : vector<1x128xf32>, vector<1x128xf32>, vector<1x128xf32>, vector<1x128xf32>, vector<4x128xf32> -> vector<8x128xf32>
    %c0_56 = arith.constant 0 : index
    %c0_57 = arith.constant 0 : index
    %c0_58 = arith.constant 0 : index
    %88 = vector.load %arg5[%c0_56, %c0_57, %c0_58] : memref<1x8x128xf32, #tpu.memory_space<vmem>>, vector<1x8x128xf32>
    %89 = vector.shape_cast %88 : vector<1x8x128xf32> to vector<8x128xf32>
    %90 = vector.shape_cast %87 : vector<8x128xf32> to vector<1x8x128xf32>
    tpu.vector_store %arg5[%c0_56, %c0_57, %c0_58], %90 {strides = array<i32>} : memref<1x8x128xf32, #tpu.memory_space<vmem>>, vector<1x8x128xf32>,
    return
  }
  func.func @transform_0(%arg0: i32) -> (i32, i32, i32) {
    %c0_i32 = arith.constant 0 : i32
    %c0_i32_0 = arith.constant 0 : i32
    %c0_i32_1 = arith.constant 0 : i32
    return %arg0, %c0_i32, %c0_i32_0 : i32, i32, i32
  }
  func.func @transform_1(%arg0: i32) -> (i32, i32, i32) {
    %c0_i32 = arith.constant 0 : i32
    %c0_i32_0 = arith.constant 0 : i32
    %c0_i32_1 = arith.constant 0 : i32
    %c0_i32_2 = arith.constant 0 : i32
    return %c0_i32, %c0_i32_0, %c0_i32_1 : i32, i32, i32
  }
  func.func @transform_2(%arg0: i32) -> (i32, i32) {
    %c0_i32 = arith.constant 0 : i32
    %c0_i32_0 = arith.constant 0 : i32
    %c0_i32_1 = arith.constant 0 : i32
    return %c0_i32, %c0_i32_0 : i32, i32
  }
  func.func @transform_3(%arg0: i32) -> (i32, i32, i32) {
    %c0_i32 = arith.constant 0 : i32
    %c0_i32_0 = arith.constant 0 : i32
    %c0_i32_1 = arith.constant 0 : i32
    return %arg0, %c0_i32, %c0_i32_0 : i32, i32, i32
  }
  func.func @transform_4(%arg0: i32) -> (i32, i32, i32) {
    %c0_i32 = arith.constant 0 : i32
    %c0_i32_0 = arith.constant 0 : i32
    %c0_i32_1 = arith.constant 0 : i32
    return %arg0, %c0_i32, %c0_i32_0 : i32, i32, i32
  }
  func.func @transform_5(%arg0: i32) -> (i32, i32, i32) {
    %c0_i32 = arith.constant 0 : i32
    %c0_i32_0 = arith.constant 0 : i32
    %c0_i32_1 = arith.constant 0 : i32
    return %arg0, %c0_i32, %c0_i32_0 : i32, i32, i32
  }
}

module attributes {stable_mosaic.version = 11 : i64} {
  func.func @kernel(%arg0: i32, %arg1: memref<1x80x128xbf16, #tpu.memory_space<vmem>>, %arg2: memref<8x128xf32, #tpu.memory_space<vmem>>, %arg3: memref<3x384x128xbf16, #tpu.memory_space<vmem>>, %arg4: memref<1x80x128xbf16, #tpu.memory_space<vmem>>, %arg5: memref<1x8x128xf32, #tpu.memory_space<vmem>>, %arg6: memref<120x128xbf16, #tpu.memory_space<vmem>>, %arg7: memref<80x128xf32, #tpu.memory_space<vmem>>) attributes {dimension_semantics = [#tpu.dimension_semantics<parallel>], iteration_bounds = array<i64: 2>, scalar_prefetch = 0 : i64, scratch_operands = 2 : i64, tpu.core_type = #tpu.core_type<tc>, window_params = [{transform_indices = @transform_0, window_bounds = array<i64: 1, 80, 128>}, {pipeline_mode = #tpu.pipeline_mode<synchronous>, transform_indices = @transform_1, window_bounds = array<i64: 8, 128>}, {pipeline_mode = #tpu.pipeline_mode<synchronous>, transform_indices = @transform_2, window_bounds = array<i64: 3, 384, 128>}, {transform_indices = @transform_3, window_bounds = array<i64: 1, 80, 128>}, {transform_indices = @transform_4, window_bounds = array<i64: 1, 8, 128>}]} {
    %0 = tpu.iota {dimensions = array<i32: 0>} : vector<80x1xi32>
    %c10_i32 = arith.constant 10 : i32
    %c0_i32 = arith.constant 0 : i32
    %1 = arith.cmpi eq, %c10_i32, %c0_i32 : i32
    %c1_i32 = arith.constant 1 : i32
    %2 = arith.select %1, %c1_i32, %c10_i32 : i32
    %3 = vector.broadcast %2 : i32 to vector<80x1xi32>
    %4 = arith.remsi %0, %3 : vector<80x1xi32>
    %c0_i32_0 = arith.constant 0 : i32
    %5 = vector.broadcast %c0_i32_0 : i32 to vector<80x1xi32>
    %6 = arith.cmpi ne, %4, %5 : vector<80x1xi32>
    %c0_i32_1 = arith.constant 0 : i32
    %7 = vector.broadcast %c0_i32_1 : i32 to vector<80x1xi32>
    %8 = arith.cmpi slt, %4, %7 : vector<80x1xi32>
    %c0_i32_2 = arith.constant 0 : i32
    %9 = arith.cmpi slt, %2, %c0_i32_2 : i32
    %10 = vector.broadcast %9 : i1 to vector<80x1xi1>
    %11 = vector.broadcast %10 : vector<80x1xi1> to vector<80x1xi1>
    %12 = arith.xori %8, %11 : vector<80x1xi1>
    %13 = arith.andi %12, %6 : vector<80x1xi1>
    %14 = vector.broadcast %2 : i32 to vector<80x1xi32>
    %15 = arith.addi %4, %14 : vector<80x1xi32>
    %16 = arith.select %13, %15, %4 : vector<80x1xi1>, vector<80x1xi32>
    %c1_i32_3 = arith.constant 1 : i32
    %17 = vector.broadcast %c1_i32_3 : i32 to vector<80x1xi32>
    %18 = arith.cmpi sge, %16, %17 : vector<80x1xi32>
    %c8_i32 = arith.constant 8 : i32
    %19 = vector.broadcast %c8_i32 : i32 to vector<80x1xi32>
    %20 = arith.cmpi sle, %16, %19 : vector<80x1xi32>
    %21 = arith.andi %18, %20 : vector<80x1xi1>
    %c0 = arith.constant 0 : index
    %c0_4 = arith.constant 0 : index
    %22 = vector.load %arg2[%c0, %c0_4] : memref<8x128xf32, #tpu.memory_space<vmem>>, vector<1x128xf32>
    %c1 = arith.constant 1 : index
    %c0_5 = arith.constant 0 : index
    %23 = vector.load %arg2[%c1, %c0_5] : memref<8x128xf32, #tpu.memory_space<vmem>>, vector<1x128xf32>
    %c0_6 = arith.constant 0 : index
    %c0_7 = arith.constant 0 : index
    %c0_8 = arith.constant 0 : index
    %24 = vector.load %arg1[%c0_6, %c0_7, %c0_8] : memref<1x80x128xbf16, #tpu.memory_space<vmem>>, vector<1x80x128xbf16>
    %25 = vector.shape_cast %24 : vector<1x80x128xbf16> to vector<80x128xbf16>
    %26 = arith.extf %25 : vector<80x128xbf16> to vector<80x128xf32>
    %27 = vector.broadcast %22 : vector<1x128xf32> to vector<80x128xf32>
    %28 = arith.mulf %26, %27 : vector<80x128xf32>
    %29 = vector.broadcast %23 : vector<1x128xf32> to vector<80x128xf32>
    %30 = arith.addf %28, %29 : vector<80x128xf32>
    %cst = arith.constant 0.000000e+00 : f32
    %31 = vector.broadcast %cst : f32 to vector<80x128xf32>
    %32 = arith.maximumf %30, %31 : vector<80x128xf32>
    %cst_9 = arith.constant 0.000000e+00 : f32
    %33 = vector.shape_cast %21 : vector<80x1xi1> to vector<80x1xi1>
    %34 = vector.broadcast %33 : vector<80x1xi1> to vector<80x128xi1>
    %35 = vector.broadcast %cst_9 : f32 to vector<80x128xf32>
    %36 = arith.select %34, %32, %35 : vector<80x128xi1>, vector<80x128xf32>
    %cst_10 = arith.constant 0.000000e+00 : bf16
    %37 = vector.broadcast %cst_10 : bf16 to vector<10x128xbf16>
    %c10 = arith.constant 10 : index
    %c0_11 = arith.constant 0 : index
    %38 = vector.load %arg6[%c10, %c0_11] : memref<120x128xbf16, #tpu.memory_space<vmem>>, vector<10x128xbf16>
    tpu.vector_store %arg6[%c10, %c0_11], %37 {strides = array<i32>} : memref<120x128xbf16, #tpu.memory_space<vmem>>, vector<10x128xbf16>,
    %c100 = arith.constant 100 : index
    %c0_12 = arith.constant 0 : index
    %39 = vector.load %arg6[%c100, %c0_12] : memref<120x128xbf16, #tpu.memory_space<vmem>>, vector<10x128xbf16>
    tpu.vector_store %arg6[%c100, %c0_12], %37 {strides = array<i32>} : memref<120x128xbf16, #tpu.memory_space<vmem>>, vector<10x128xbf16>,
    %40 = arith.truncf %36 : vector<80x128xf32> to vector<80x128xbf16>
    %c20 = arith.constant 20 : index
    %c0_13 = arith.constant 0 : index
    %41 = vector.load %arg6[%c20, %c0_13] : memref<120x128xbf16, #tpu.memory_space<vmem>>, vector<80x128xbf16>
    tpu.vector_store %arg6[%c20, %c0_13], %40 {strides = array<i32>} : memref<120x128xbf16, #tpu.memory_space<vmem>>, vector<80x128xbf16>,
    %c9 = arith.constant 9 : index
    %c0_14 = arith.constant 0 : index
    %42 = vector.load %arg6[%c9, %c0_14] : memref<120x128xbf16, #tpu.memory_space<vmem>>, vector<80x128xbf16>
    %c10_15 = arith.constant 10 : index
    %c0_16 = arith.constant 0 : index
    %43 = vector.load %arg6[%c10_15, %c0_16] : memref<120x128xbf16, #tpu.memory_space<vmem>>, vector<80x128xbf16>
    %c11 = arith.constant 11 : index
    %c0_17 = arith.constant 0 : index
    %44 = vector.load %arg6[%c11, %c0_17] : memref<120x128xbf16, #tpu.memory_space<vmem>>, vector<80x128xbf16>
    %45 = tpu.concatenate %42, %43, %44 in 1 : vector<80x128xbf16>, vector<80x128xbf16>, vector<80x128xbf16> -> vector<80x384xbf16>
    %c0_18 = arith.constant 0 : index
    %c0_19 = arith.constant 0 : index
    %c0_20 = arith.constant 0 : index
    %46 = vector.load %arg3[%c0_18, %c0_19, %c0_20] : memref<3x384x128xbf16, #tpu.memory_space<vmem>>, vector<1x384x128xbf16>
    %47 = vector.shape_cast %46 : vector<1x384x128xbf16> to vector<384x128xbf16>
    %cst_21 = arith.constant dense<0.000000e+00> : vector<80x128xf32>
    %48 = tpu.matmul %45, %47, %cst_21 {dimension_numbers = #tpu.dot_dimension_numbers<[1], [0], [0], [1], [0, 0, 1, 1], [], []>} : vector<80x384xbf16>, vector<384x128xbf16>, vector<80x128xf32> -> vector<80x128xf32>
    %c0_22 = arith.constant 0 : index
    %c0_23 = arith.constant 0 : index
    %49 = vector.load %arg7[%c0_22, %c0_23] : memref<80x128xf32, #tpu.memory_space<vmem>>, vector<80x128xf32>
    tpu.vector_store %arg7[%c0_22, %c0_23], %48 {strides = array<i32>} : memref<80x128xf32, #tpu.memory_space<vmem>>, vector<80x128xf32>,
    %c19 = arith.constant 19 : index
    %c0_24 = arith.constant 0 : index
    %50 = vector.load %arg6[%c19, %c0_24] : memref<120x128xbf16, #tpu.memory_space<vmem>>, vector<80x128xbf16>
    %c20_25 = arith.constant 20 : index
    %c0_26 = arith.constant 0 : index
    %51 = vector.load %arg6[%c20_25, %c0_26] : memref<120x128xbf16, #tpu.memory_space<vmem>>, vector<80x128xbf16>
    %c21 = arith.constant 21 : index
    %c0_27 = arith.constant 0 : index
    %52 = vector.load %arg6[%c21, %c0_27] : memref<120x128xbf16, #tpu.memory_space<vmem>>, vector<80x128xbf16>
    %53 = tpu.concatenate %50, %51, %52 in 1 : vector<80x128xbf16>, vector<80x128xbf16>, vector<80x128xbf16> -> vector<80x384xbf16>
    %c1_28 = arith.constant 1 : index
    %c0_29 = arith.constant 0 : index
    %c0_30 = arith.constant 0 : index
    %54 = vector.load %arg3[%c1_28, %c0_29, %c0_30] : memref<3x384x128xbf16, #tpu.memory_space<vmem>>, vector<1x384x128xbf16>
    %55 = vector.shape_cast %54 : vector<1x384x128xbf16> to vector<384x128xbf16>
    %cst_31 = arith.constant dense<0.000000e+00> : vector<80x128xf32>
    %56 = tpu.matmul %53, %55, %cst_31 {dimension_numbers = #tpu.dot_dimension_numbers<[1], [0], [0], [1], [0, 0, 1, 1], [], []>} : vector<80x384xbf16>, vector<384x128xbf16>, vector<80x128xf32> -> vector<80x128xf32>
    %c0_32 = arith.constant 0 : index
    %c0_33 = arith.constant 0 : index
    %57 = vector.load %arg7[%c0_32, %c0_33] : memref<80x128xf32, #tpu.memory_space<vmem>>, vector<80x128xf32>
    %58 = arith.addf %57, %56 : vector<80x128xf32>
    %c0_34 = arith.constant 0 : index
    %c0_35 = arith.constant 0 : index
    %59 = vector.load %arg7[%c0_34, %c0_35] : memref<80x128xf32, #tpu.memory_space<vmem>>, vector<80x128xf32>
    tpu.vector_store %arg7[%c0_34, %c0_35], %58 {strides = array<i32>} : memref<80x128xf32, #tpu.memory_space<vmem>>, vector<80x128xf32>,
    %c29 = arith.constant 29 : index
    %c0_36 = arith.constant 0 : index
    %60 = vector.load %arg6[%c29, %c0_36] : memref<120x128xbf16, #tpu.memory_space<vmem>>, vector<80x128xbf16>
    %c30 = arith.constant 30 : index
    %c0_37 = arith.constant 0 : index
    %61 = vector.load %arg6[%c30, %c0_37] : memref<120x128xbf16, #tpu.memory_space<vmem>>, vector<80x128xbf16>
    %c31 = arith.constant 31 : index
    %c0_38 = arith.constant 0 : index
    %62 = vector.load %arg6[%c31, %c0_38] : memref<120x128xbf16, #tpu.memory_space<vmem>>, vector<80x128xbf16>
    %63 = tpu.concatenate %60, %61, %62 in 1 : vector<80x128xbf16>, vector<80x128xbf16>, vector<80x128xbf16> -> vector<80x384xbf16>
    %c2 = arith.constant 2 : index
    %c0_39 = arith.constant 0 : index
    %c0_40 = arith.constant 0 : index
    %64 = vector.load %arg3[%c2, %c0_39, %c0_40] : memref<3x384x128xbf16, #tpu.memory_space<vmem>>, vector<1x384x128xbf16>
    %65 = vector.shape_cast %64 : vector<1x384x128xbf16> to vector<384x128xbf16>
    %cst_41 = arith.constant dense<0.000000e+00> : vector<80x128xf32>
    %66 = tpu.matmul %63, %65, %cst_41 {dimension_numbers = #tpu.dot_dimension_numbers<[1], [0], [0], [1], [0, 0, 1, 1], [], []>} : vector<80x384xbf16>, vector<384x128xbf16>, vector<80x128xf32> -> vector<80x128xf32>
    %c0_42 = arith.constant 0 : index
    %c0_43 = arith.constant 0 : index
    %67 = vector.load %arg7[%c0_42, %c0_43] : memref<80x128xf32, #tpu.memory_space<vmem>>, vector<80x128xf32>
    %68 = arith.addf %67, %66 : vector<80x128xf32>
    %c0_44 = arith.constant 0 : index
    %c0_45 = arith.constant 0 : index
    %69 = vector.load %arg7[%c0_44, %c0_45] : memref<80x128xf32, #tpu.memory_space<vmem>>, vector<80x128xf32>
    tpu.vector_store %arg7[%c0_44, %c0_45], %68 {strides = array<i32>} : memref<80x128xf32, #tpu.memory_space<vmem>>, vector<80x128xf32>,
    %c0_46 = arith.constant 0 : index
    %c0_47 = arith.constant 0 : index
    %70 = vector.load %arg7[%c0_46, %c0_47] : memref<80x128xf32, #tpu.memory_space<vmem>>, vector<80x128xf32>
    %71 = arith.truncf %70 : vector<80x128xf32> to vector<80x128xbf16>
    %c0_48 = arith.constant 0 : index
    %c0_49 = arith.constant 0 : index
    %c0_50 = arith.constant 0 : index
    %72 = vector.load %arg4[%c0_48, %c0_49, %c0_50] : memref<1x80x128xbf16, #tpu.memory_space<vmem>>, vector<1x80x128xbf16>
    %73 = vector.shape_cast %72 : vector<1x80x128xbf16> to vector<80x128xbf16>
    %74 = vector.shape_cast %71 : vector<80x128xbf16> to vector<1x80x128xbf16>
    tpu.vector_store %arg4[%c0_48, %c0_49, %c0_50], %74 {strides = array<i32>} : memref<1x80x128xbf16, #tpu.memory_space<vmem>>, vector<1x80x128xbf16>,
    %cst_51 = arith.constant 0.000000e+00 : f32
    %75 = vector.shape_cast %21 : vector<80x1xi1> to vector<80x1xi1>
    %76 = vector.broadcast %75 : vector<80x1xi1> to vector<80x128xi1>
    %77 = vector.broadcast %cst_51 : f32 to vector<80x128xf32>
    %78 = arith.select %76, %70, %77 : vector<80x128xi1>, vector<80x128xf32>
    %cst_52 = arith.constant dense<0.000000e+00> : vector<128xf32>
    %79 = vector.multi_reduction <add>, %78, %cst_52 [0] : vector<80x128xf32> to vector<128xf32>
    %80 = vector.shape_cast %79 : vector<128xf32> to vector<1x128xf32>
    %81 = arith.mulf %78, %78 : vector<80x128xf32>
    %cst_53 = arith.constant dense<0.000000e+00> : vector<128xf32>
    %82 = vector.multi_reduction <add>, %81, %cst_53 [0] : vector<80x128xf32> to vector<128xf32>
    %83 = vector.shape_cast %82 : vector<128xf32> to vector<1x128xf32>
    %cst_54 = arith.constant 0.000000e+00 : f32
    %84 = vector.broadcast %cst_54 : f32 to vector<6x128xf32>
    %85 = tpu.concatenate %80, %83, %84 in 0 : vector<1x128xf32>, vector<1x128xf32>, vector<6x128xf32> -> vector<8x128xf32>
    %c0_55 = arith.constant 0 : index
    %c0_56 = arith.constant 0 : index
    %c0_57 = arith.constant 0 : index
    %86 = vector.load %arg5[%c0_55, %c0_56, %c0_57] : memref<1x8x128xf32, #tpu.memory_space<vmem>>, vector<1x8x128xf32>
    %87 = vector.shape_cast %86 : vector<1x8x128xf32> to vector<8x128xf32>
    %88 = vector.shape_cast %85 : vector<8x128xf32> to vector<1x8x128xf32>
    tpu.vector_store %arg5[%c0_55, %c0_56, %c0_57], %88 {strides = array<i32>} : memref<1x8x128xf32, #tpu.memory_space<vmem>>, vector<1x8x128xf32>,
    return
  }
  func.func @transform_0(%arg0: i32) -> (i32, i32, i32) {
    %c0_i32 = arith.constant 0 : i32
    %c0_i32_0 = arith.constant 0 : i32
    %c0_i32_1 = arith.constant 0 : i32
    return %arg0, %c0_i32, %c0_i32_0 : i32, i32, i32
  }
  func.func @transform_1(%arg0: i32) -> (i32, i32) {
    %c0_i32 = arith.constant 0 : i32
    %c0_i32_0 = arith.constant 0 : i32
    %c0_i32_1 = arith.constant 0 : i32
    return %c0_i32, %c0_i32_0 : i32, i32
  }
  func.func @transform_2(%arg0: i32) -> (i32, i32, i32) {
    %c0_i32 = arith.constant 0 : i32
    %c0_i32_0 = arith.constant 0 : i32
    %c0_i32_1 = arith.constant 0 : i32
    %c0_i32_2 = arith.constant 0 : i32
    return %c0_i32, %c0_i32_0, %c0_i32_1 : i32, i32, i32
  }
  func.func @transform_3(%arg0: i32) -> (i32, i32, i32) {
    %c0_i32 = arith.constant 0 : i32
    %c0_i32_0 = arith.constant 0 : i32
    %c0_i32_1 = arith.constant 0 : i32
    return %arg0, %c0_i32, %c0_i32_0 : i32, i32, i32
  }
  func.func @transform_4(%arg0: i32) -> (i32, i32, i32) {
    %c0_i32 = arith.constant 0 : i32
    %c0_i32_0 = arith.constant 0 : i32
    %c0_i32_1 = arith.constant 0 : i32
    return %arg0, %c0_i32, %c0_i32_0 : i32, i32, i32
  }
}

module attributes {stable_mosaic.version = 11 : i64} {
  func.func @kernel(%arg0: i32, %arg1: memref<1x80x128xbf16, #tpu.memory_space<vmem>>, %arg2: memref<1x80x128xbf16, #tpu.memory_space<vmem>>, %arg3: memref<8x128xf32, #tpu.memory_space<vmem>>, %arg4: memref<1x80x128xf32, #tpu.memory_space<vmem>>) attributes {dimension_semantics = [#tpu.dimension_semantics<parallel>], iteration_bounds = array<i64: 2>, scalar_prefetch = 0 : i64, scratch_operands = 0 : i64, tpu.core_type = #tpu.core_type<tc>, window_params = [{transform_indices = @transform_0, window_bounds = array<i64: 1, 80, 128>}, {transform_indices = @transform_1, window_bounds = array<i64: 1, 80, 128>}, {pipeline_mode = #tpu.pipeline_mode<synchronous>, transform_indices = @transform_2, window_bounds = array<i64: 8, 128>}, {transform_indices = @transform_3, window_bounds = array<i64: 1, 80, 128>}]} {
    %c0 = arith.constant 0 : index
    %c0_0 = arith.constant 0 : index
    %0 = vector.load %arg3[%c0, %c0_0] : memref<8x128xf32, #tpu.memory_space<vmem>>, vector<1x128xf32>
    %c1 = arith.constant 1 : index
    %c0_1 = arith.constant 0 : index
    %1 = vector.load %arg3[%c1, %c0_1] : memref<8x128xf32, #tpu.memory_space<vmem>>, vector<1x128xf32>
    %c0_2 = arith.constant 0 : index
    %c0_3 = arith.constant 0 : index
    %c0_4 = arith.constant 0 : index
    %2 = vector.load %arg1[%c0_2, %c0_3, %c0_4] : memref<1x80x128xbf16, #tpu.memory_space<vmem>>, vector<1x80x128xbf16>
    %3 = vector.shape_cast %2 : vector<1x80x128xbf16> to vector<80x128xbf16>
    %4 = arith.extf %3 : vector<80x128xbf16> to vector<80x128xf32>
    %5 = vector.broadcast %0 : vector<1x128xf32> to vector<80x128xf32>
    %6 = arith.mulf %4, %5 : vector<80x128xf32>
    %7 = vector.broadcast %1 : vector<1x128xf32> to vector<80x128xf32>
    %8 = arith.addf %6, %7 : vector<80x128xf32>
    %c0_5 = arith.constant 0 : index
    %c0_6 = arith.constant 0 : index
    %c0_7 = arith.constant 0 : index
    %9 = vector.load %arg2[%c0_5, %c0_6, %c0_7] : memref<1x80x128xbf16, #tpu.memory_space<vmem>>, vector<1x80x128xbf16>
    %10 = vector.shape_cast %9 : vector<1x80x128xbf16> to vector<80x128xbf16>
    %11 = arith.extf %10 : vector<80x128xbf16> to vector<80x128xf32>
    %c2 = arith.constant 2 : index
    %c0_8 = arith.constant 0 : index
    %12 = vector.load %arg3[%c2, %c0_8] : memref<8x128xf32, #tpu.memory_space<vmem>>, vector<1x128xf32>
    %13 = vector.broadcast %12 : vector<1x128xf32> to vector<80x128xf32>
    %14 = arith.mulf %11, %13 : vector<80x128xf32>
    %c3 = arith.constant 3 : index
    %c0_9 = arith.constant 0 : index
    %15 = vector.load %arg3[%c3, %c0_9] : memref<8x128xf32, #tpu.memory_space<vmem>>, vector<1x128xf32>
    %16 = vector.broadcast %15 : vector<1x128xf32> to vector<80x128xf32>
    %17 = arith.addf %14, %16 : vector<80x128xf32>
    %18 = arith.addf %8, %17 : vector<80x128xf32>
    %cst = arith.constant 0.000000e+00 : f32
    %19 = vector.broadcast %cst : f32 to vector<80x128xf32>
    %20 = arith.maximumf %18, %19 : vector<80x128xf32>
    %c0_10 = arith.constant 0 : index
    %c0_11 = arith.constant 0 : index
    %c0_12 = arith.constant 0 : index
    %21 = vector.load %arg4[%c0_10, %c0_11, %c0_12] : memref<1x80x128xf32, #tpu.memory_space<vmem>>, vector<1x80x128xf32>
    %22 = vector.shape_cast %21 : vector<1x80x128xf32> to vector<80x128xf32>
    %23 = vector.shape_cast %20 : vector<80x128xf32> to vector<1x80x128xf32>
    tpu.vector_store %arg4[%c0_10, %c0_11, %c0_12], %23 {strides = array<i32>} : memref<1x80x128xf32, #tpu.memory_space<vmem>>, vector<1x80x128xf32>,
    return
  }
  func.func @transform_0(%arg0: i32) -> (i32, i32, i32) {
    %c0_i32 = arith.constant 0 : i32
    %c0_i32_0 = arith.constant 0 : i32
    %c0_i32_1 = arith.constant 0 : i32
    return %arg0, %c0_i32, %c0_i32_0 : i32, i32, i32
  }
  func.func @transform_1(%arg0: i32) -> (i32, i32, i32) {
    %c0_i32 = arith.constant 0 : i32
    %c0_i32_0 = arith.constant 0 : i32
    %c0_i32_1 = arith.constant 0 : i32
    return %arg0, %c0_i32, %c0_i32_0 : i32, i32, i32
  }
  func.func @transform_2(%arg0: i32) -> (i32, i32) {
    %c0_i32 = arith.constant 0 : i32
    %c0_i32_0 = arith.constant 0 : i32
    %c0_i32_1 = arith.constant 0 : i32
    return %c0_i32, %c0_i32_0 : i32, i32
  }
  func.func @transform_3(%arg0: i32) -> (i32, i32, i32) {
    %c0_i32 = arith.constant 0 : i32
    %c0_i32_0 = arith.constant 0 : i32
    %c0_i32_1 = arith.constant 0 : i32
    return %arg0, %c0_i32, %c0_i32_0 : i32, i32, i32
  }
}

</mosaic_0001>

<bundles_post_ra>
// kernel: basic_block_forward.5
= control target key start
LH: loop header
LB: loop body
LE: loop exit
PB: predicated region body
PF: predicated region fallthrough
CT: control target
= control target key end

     0   :  { %s476_s12 = smov 0   ;;  %s586_s0 = inlined_call_operand.vmem [shape: bf16[2,80,128], index: 0, kind: input, shape index: {}]   ;;  %s587_s1 = inlined_call_operand.vmem [shape: bf16[2,80,128], index: 1, kind: input, shape index: {}]   ;;  %s588_s2 = inlined_call_operand.vmem [shape: f32[8,128], index: 2, kind: input, shape index: {}]   ;;  %s589_s3 = inlined_call_operand.vmem [shape: f32[2,80,128], index: 3, kind: output, shape index: {}]  }
   0x1 LB: > { %s376_s13 = sadd.s32 4294967295, %s454_s12   ;;  %p380_p0 = scmp.ge.s32.totalorder %s454_s12, 1  ;;  %s454_s12 = sphi %s476_s12, %s13_s12  }
   0x2   : > { %p147_p1 = scmp.lt.s32.totalorder %s454_s12, 3 }
   0x4   : > { %p148_p2 = pnand %p380_p0, %p147_p1 }
   0x5   : > { %p176_p3 = scmp.lt.s32.totalorder (!%p148_p2), %s376_s13, 1 }
   0x6   : > { %151 = sbr.rel (%p148_p2) target bundleno = 43 (0x2b), region = 32 }
   0xb   : > { %s591_s13 = smov (!%p176_p3, %s376_s13), 1  ;;  %v500_v0 = vld [vmem:[%s588_s2] ss:$0 sm:$0xff]  ;;  %v505_v1 = vld [vmem:[%s588_s2 + $0x2] ss:$0 sm:$0xff] }
   0xc   : > { %s434_s14 = smul.u32 40, %s591_s13  ;;  %v513_v6 = vld [vmem:[%s588_s2 + $0x1] ss:$0 sm:$0xff]  ;;  %v518_v8 = vld [vmem:[%s588_s2 + $0x3] ss:$0 sm:$0xff] }
   0xd   : > { %s435_s29 = smul.u32 80, %s591_s13 }
   0xe   : > { %s490_s17 = scalar_lea.vmem %s586_s0, %s434_s14  ;;  %s495_s20 = scalar_lea.vmem %s587_s1, %s434_s14 }
   0xf   : > { %v387_v2 = vld [vmem:[%s490_s17] sm:$0xff]   ;;  %v426_v4 = vld [vmem:[%s490_s17 + $0x8] sm:$0xff]   ;;  %v427_v24 = vld [vmem:[%s490_s17 + $0x10] sm:$0xff]   ;;  %s543_s5 = scalar_lea.vmem %s589_s3, %s435_s29 }
  0x10   : > { %v407_v3 = vld [vmem:[%s495_s20] sm:$0xff]   ;;  %v388_v5 = vunpack.c.l.bf16 %v387_v2  ;;  %v389_v9 = vunpack.c.h.bf16 %v387_v2  ;;  %v430_v11 = vld [vmem:[%s495_s20 + $0x8] sm:$0xff]   ;;  %v392_v12 = vunpack.c.l.bf16 %v426_v4  ;;  %v393_v14 = vunpack.c.h.bf16 %v426_v4  ;;  %v431_v25 = vld [vmem:[%s495_s20 + $0x10] sm:$0xff]  }
  0x11   : > { %v408_v7 = vunpack.c.l.bf16 %v407_v3  ;;  %v409_v10 = vunpack.c.h.bf16 %v407_v3  ;;  %v412_v13 = vunpack.c.l.bf16 %v430_v11  ;;  %v413_v15 = vunpack.c.h.bf16 %v430_v11  ;;  %v428_v42 = vld [vmem:[%s490_s17 + $0x18] sm:$0xff]   ;;  %v429_v52 = vld [vmem:[%s490_s17 + $0x20] sm:$0xff]  }
  0x12   : > { %v214_v16 = vmul.f32 %v500_v0, %v388_v5  ;;  %v215_v18 = vmul.f32 %v500_v0, %v389_v9  ;;  %v216_v20 = vmul.f32 %v500_v0, %v392_v12  ;;  %v217_v22 = vmul.f32 %v500_v0, %v393_v14  ;;  %v432_v43 = vld [vmem:[%s495_s20 + $0x18] sm:$0xff]   ;;  %v433_v57 = vld [vmem:[%s495_s20 + $0x20] sm:$0xff]  }
  0x13   : > { %v257_v17 = vmul.f32 %v505_v1, %v408_v7  ;;  %v258_v19 = vmul.f32 %v505_v1, %v409_v10  ;;  %v259_v21 = vmul.f32 %v505_v1, %v412_v13  ;;  %v260_v23 = vmul.f32 %v505_v1, %v413_v15 }
  0x14   : > { %v225_v26 = vadd.f32 %v513_v6, %v214_v16  ;;  %v226_v28 = vadd.f32 %v513_v6, %v215_v18  ;;  %v227_v30 = vadd.f32 %v513_v6, %v216_v20  ;;  %v228_v32 = vadd.f32 %v513_v6, %v217_v22 }
  0x15   : > { %v269_v27 = vadd.f32 %v518_v8, %v257_v17  ;;  %v270_v29 = vadd.f32 %v518_v8, %v258_v19  ;;  %v271_v31 = vadd.f32 %v518_v8, %v259_v21  ;;  %v272_v33 = vadd.f32 %v518_v8, %v260_v23 }
  0x16   : > { %v396_v36 = vunpack.c.l.bf16 %v427_v24  ;;  %v416_v37 = vunpack.c.l.bf16 %v431_v25  ;;  %v397_v40 = vunpack.c.h.bf16 %v427_v24  ;;  %v417_v41 = vunpack.c.h.bf16 %v431_v25 }
  0x17   : > { %v279_v34 = vadd.f32 %v269_v27, %v225_v26  ;;  %v280_v35 = vadd.f32 %v270_v29, %v226_v28  ;;  %v281_v38 = vadd.f32 %v271_v31, %v227_v30  ;;  %v282_v39 = vadd.f32 %v272_v33, %v228_v32 }
  0x18   : > { %v218_v46 = vmul.f32 %v500_v0, %v396_v36  ;;  %v261_v47 = vmul.f32 %v505_v1, %v416_v37  ;;  %v219_v50 = vmul.f32 %v500_v0, %v397_v40  ;;  %v262_v51 = vmul.f32 %v505_v1, %v417_v41 }
  0x19   : > { %v289_v44 = vmax.f32 %v279_v34, 0.0  ;;  %v290_v45 = vmax.f32 %v280_v35, 0.0  ;;  %v291_v48 = vmax.f32 %v281_v38, 0.0  ;;  %v292_v49 = vmax.f32 %v282_v39, 0.0 }
  0x1a   : > { %v229_v53 = vadd.f32 %v513_v6, %v218_v46  ;;  %v273_v54 = vadd.f32 %v518_v8, %v261_v47  ;;  %v400_v55 = vunpack.c.l.bf16 %v428_v42  ;;  %v420_v56 = vunpack.c.l.bf16 %v432_v43 }
  0x1b   : > { %299 = vst [vmem:[%s543_s5] sm:$0xff] %v289_v44  ;;  %v230_v58 = vadd.f32 %v513_v6, %v219_v50  ;;  %v274_v59 = vadd.f32 %v518_v8, %v262_v51  ;;  %v401_v60 = vunpack.c.h.bf16 %v428_v42  ;;  %v421_v61 = vunpack.c.h.bf16 %v432_v43 }
  0x1c   : > { %300 = vst [vmem:[%s543_s5 + $0x8] sm:$0xff] %v290_v45  ;;  %v283_v62 = vadd.f32 %v273_v54, %v229_v53  ;;  %v220_v63 = vmul.f32 %v500_v0, %v400_v55  ;;  %v263_v2 = vmul.f32 %v505_v1, %v420_v56  ;;  %v404_v3 = vunpack.c.l.bf16 %v429_v52 }
  0x1d   : > { %301 = vst [vmem:[%s543_s5 + $0x10] sm:$0xff] %v291_v48  ;;  %v284_v4 = vadd.f32 %v274_v59, %v230_v58  ;;  %v221_v5 = vmul.f32 %v500_v0, %v401_v60  ;;  %v264_v7 = vmul.f32 %v505_v1, %v421_v61  ;;  %v424_v9 = vunpack.c.l.bf16 %v433_v57 }
  0x1e   : > { %302 = vst [vmem:[%s543_s5 + $0x18] sm:$0xff] %v292_v49  ;;  %v293_v10 = vmax.f32 %v283_v62, 0.0  ;;  %v231_v11 = vadd.f32 %v513_v6, %v220_v63  ;;  %v275_v12 = vadd.f32 %v518_v8, %v263_v2  ;;  %v222_v13 = vmul.f32 %v500_v0, %v404_v3 }
  0x1f   : > { %v294_v14 = vmax.f32 %v284_v4, 0.0  ;;  %v232_v15 = vadd.f32 %v513_v6, %v221_v5  ;;  %v276_v16 = vadd.f32 %v518_v8, %v264_v7  ;;  %v265_v17 = vmul.f32 %v505_v1, %v424_v9 }
  0x20   : > { %303 = vst [vmem:[%s543_s5 + $0x20] sm:$0xff] %v293_v10  ;;  %v285_v18 = vadd.f32 %v275_v12, %v231_v11  ;;  %v233_v19 = vadd.f32 %v513_v6, %v222_v13  ;;  %v405_v20 = vunpack.c.h.bf16 %v429_v52  ;;  %v425_v21 = vunpack.c.h.bf16 %v433_v57 }
  0x21   : > { %304 = vst [vmem:[%s543_s5 + $0x28] sm:$0xff] %v294_v14  ;;  %v286_v22 = vadd.f32 %v276_v16, %v232_v15  ;;  %v277_v23 = vadd.f32 %v518_v8, %v265_v17 }
  0x22   : > { %v295_v24 = vmax.f32 %v285_v18, 0.0  ;;  %v223_v25 = vmul.f32 %v500_v0, %v405_v20  ;;  %v266_v26 = vmul.f32 %v505_v1, %v425_v21 }
  0x23   : > { %v296_v27 = vmax.f32 %v286_v22, 0.0  ;;  %v287_v28 = vadd.f32 %v277_v23, %v233_v19 }
  0x24   : > { %305 = vst [vmem:[%s543_s5 + $0x30] sm:$0xff] %v295_v24  ;;  %v234_v29 = vadd.f32 %v513_v6, %v223_v25  ;;  %v278_v30 = vadd.f32 %v518_v8, %v266_v26 }
  0x25   : > { %306 = vst [vmem:[%s543_s5 + $0x38] sm:$0xff] %v296_v27  ;;  %v297_v31 = vmax.f32 %v287_v28, 0.0 }
  0x26   : > { %v288_v32 = vadd.f32 %v278_v30, %v234_v29 }
  0x27   : > { %307 = vst [vmem:[%s543_s5 + $0x40] sm:$0xff] %v297_v31 }
  0x28   : > { %v298_v33 = vmax.f32 %v288_v32, 0.0 }
  0x2a   : > { %308 = vst [vmem:[%s543_s5 + $0x48] sm:$0xff] %v298_v33 }
  0x2b PF: > { %s13_s12 = sadd.s32 1, %s454_s12  }
  0x2c   : > { %p10_p4 = scmp.ge.s32.totalorder %s13_s12, 4  }
  0x2e   :  { %12 = sbr.rel (!%p10_p4) target bundleno = 1 (0x1), region = 65 }

// kernel: basic_block_forward.4
= control target key start
LH: loop header
LB: loop body
LE: loop exit
PB: predicated region body
PF: predicated region fallthrough
CT: control target
= control target key end

     0   :  { %s3249_s15 = smov 0   ;;  %s4176_s0 = inlined_call_operand.vmem [shape: bf16[2,80,128], index: 0, kind: input, shape index: {}]   ;;  %s4177_s1 = inlined_call_operand.vmem [shape: f32[8,128], index: 1, kind: input, shape index: {}]   ;;  %s4178_s2 = inlined_call_operand.vmem [shape: bf16[3,384,128], index: 2, kind: input, shape index: {}]   ;;  %s4179_s3 = inlined_call_operand.vmem [shape: bf16[2,80,128], index: 3, kind: output, shape index: {0}]   ;;  %s4180_s4 = inlined_call_operand.vmem [shape: f32[2,8,128], index: 4, kind: output, shape index: {1}]  }
   0x1 LB: > { %s2605_s16 = sadd.s32 4294967295, %s3221_s15   ;;  %p2609_p0 = scmp.ge.s32.totalorder %s3221_s15, 1  ;;  %s3221_s15 = sphi %s3249_s15, %s15_s15  }
   0x2   : > { %p165_p1 = scmp.lt.s32.totalorder %s3221_s15, 3 }
   0x4   : > { %p166_p2 = pnand %p2609_p0, %p165_p1 }
   0x5   : > { %p195_p3 = scmp.lt.s32.totalorder (!%p166_p2), %s2605_s16, 1 }
   0x6   : > { %169 = sbr.rel (%p166_p2) target bundleno = 467 (0x1d3), region = 32 }
   0xb   : > { %v3058_v0 = vld [vmem:[%s4178_s2 + $0x38] sm:$0xff]  ;;  %v210_v1 = vlaneseq  ;;  %v3223_v2 = vmov 0   ;;  %v3057_v3 = vld [vmem:[%s4178_s2 + $0x30] sm:$0xff]  ;;  %s4206_s16 = smov (!%p195_p3, %s2605_s16), 1  ;;  %v3056_v11 = vld [vmem:[%s4178_s2 + $0x28] sm:$0xff]  ;;  %vm4181_vm8 = vcmask 1041408  }
   0xc   : > { %675 = vst [vmem:[#allocation2 + $0x4] sm:$0xe] %v3223_v2  ;;  %3185 = vmatpush.bf16.msra.mxu2 %v3058_v0  ;;  %1162 = vmatpush.bf16.msra.mxu0 %v3058_v0  ;;  %v3086_v5 = vld [vmem:[%s4178_s2 + $0xf8] sm:$0xff]  ;;  %v3085_v10 = vld [vmem:[%s4178_s2 + $0xf0] sm:$0xff]  ;;  %s3200_s27 = smul.u32 40, %s4206_s16  ;;  %v3084_v19 = vld [vmem:[%s4178_s2 + $0xe8] sm:$0xff] }
   0xd   : > { %v3264_v4 = vshrl.u32 %v210_v1, 7  ;;  %3184 = vmatpush.bf16.msra.mxu1 %v3058_v0  ;;  %676 = vst [vmem:[#allocation2 + $0x8] sm:$0x3] %v3223_v2  ;;  %1722 = vmatpush.bf16.msra.mxu3 %v3086_v5  ;;  %v3055_v28 = vld [vmem:[%s4178_s2 + $0x20] sm:$0xff]  ;;  %v3054_v42 = vld [vmem:[%s4178_s2 + $0x18] sm:$0xff]  ;;  %v3053_v61 = vld [vmem:[%s4178_s2 + $0x10] sm:$0xff] }
   0xe   : > { %677 = vst [vmem:[#allocation2 + $0x30] sm:$0xc] %v3223_v2  ;;  %s3312_s8 = scalar_lea.vmem %s4176_s0, %s3200_s27  ;;  %v3331_v52 = vld [vmem:[%s4177_s1] ss:$0 sm:$0xff]  ;;  %v3338_v60 = vld [vmem:[%s4177_s1 + $0x1] ss:$0 sm:$0xff]  ;;  %s4131_s7 = scalar_lea.vmem %s4179_s3, %s3200_s27 }
   0xf   : > { %v3273_v6 = vadd.s32 8, %v3264_v4  ;;  %v3276_v7 = vadd.s32 16, %v3264_v4  ;;  %v224_v8 = vand.u32 65535, %v3264_v4  ;;  %v225_v9 = vshrl.u32 %v3264_v4, 16  ;;  %678 = vst [vmem:[#allocation2 + $0x34] sm:$0x7] %v3223_v2 }
  0x10   : > { %3187 = vmatpush.bf16.msra.mxu2 %v3057_v3  ;;  %1163 = vmatpush.bf16.msra.mxu0 %v3057_v3  ;;  %v3132_v47 = vld [vmem:[%s3312_s8] sm:$0xff]   ;;  %v3326_v51 = vld [vmem:[%s3312_s8 + $0x8] sm:$0xff]   ;;  %vm700_vm9 = vcmask 1045508   ;;  %s2612_s27 = sshll.u32 %s4206_s16, 3 }
  0x11   : > { %v227_v12 = vmul.u32 52429, %v224_v8  ;;  %v228_v13 = vmul.u32 52428, %v224_v8  ;;  %v3286_v14 = vmul.u32 52429, %v225_v9  ;;  %3186 = vmatpush.bf16.msra.mxu1 %v3057_v3  ;;  %v230_v15 = vmul.u32 52428, %v225_v9  ;;  %1723 = vmatpush.bf16.msra.mxu3 %v3085_v10  ;;  %s208_s11 = scalar_lea.vmem %s4180_s4, %s2612_s27 }
  0x12   : > { %v253_v16 = vand.u32 65535, %v3273_v6  ;;  %v254_v17 = vshrl.u32 %v3273_v6, 16  ;;  %v282_v18 = vand.u32 65535, %v3276_v7  ;;  %v283_v23 = vshrl.u32 %v3276_v7, 16 }
  0x13   : > { %v231_v20 = vshll.u32 %v228_v13, 16  ;;  %v232_v21 = vshrl.u32 %v228_v13, 16  ;;  %v233_v22 = vshll.u32 %v3286_v14, 16  ;;  %v234_v24 = vshrl.u32 %v3286_v14, 16 }
  0x14   : > { %v256_v25 = vmul.u32 52429, %v253_v16  ;;  %v257_v26 = vmul.u32 52428, %v253_v16  ;;  %v3298_v27 = vmul.u32 52429, %v254_v17  ;;  %3189 = vmatpush.bf16.msra.mxu2 %v3056_v11  ;;  %1164 = vmatpush.bf16.msra.mxu0 %v3056_v11  ;;  %v259_v30 = vmul.u32 52428, %v254_v17 }
  0x15   : > { %vm235_vm0 = vc.u32 %v227_v12, %v231_v20  ;;  %v237_v29 = vadd.s32 %v231_v20, %v227_v12  ;;  %v3304_v31 = vmul.u32 52428, %v282_v18  ;;  %3188 = vmatpush.bf16.msra.mxu1 %v3056_v11  ;;  %v285_v35 = vmul.u32 52429, %v282_v18  ;;  %1724 = vmatpush.bf16.msra.mxu3 %v3084_v19 }
  0x16   : > { %v236_v32 = vsel %vm235_vm0, 1, %v3223_v2  ;;  %v260_v33 = vshll.u32 %v257_v26, 16  ;;  %v262_v34 = vshll.u32 %v3298_v27, 16  ;;  %v261_v37 = vshrl.u32 %v257_v26, 16 }
  0x17   : > { %v238_v36 = vadd.s32 %v236_v32, %v230_v15  ;;  %vm239_vm1 = vc.u32 %v237_v29, %v233_v22  ;;  %v287_v38 = vmul.u32 52429, %v283_v23  ;;  %v263_v40 = vshrl.u32 %v3298_v27, 16  ;;  %v3052_v15 = vld [vmem:[%s4178_s2 + $0x8] sm:$0xff] }
  0x18   : > { %v240_v39 = vsel %vm239_vm1, 1, %v3223_v2  ;;  %vm264_vm2 = vc.u32 %v256_v25, %v260_v33  ;;  %v266_v41 = vadd.s32 %v260_v33, %v256_v25  ;;  %3191 = vmatpush.bf16.msra.mxu2 %v3055_v28  ;;  %1165 = vmatpush.bf16.msra.mxu0 %v3055_v28  ;;  %v288_v45 = vmul.u32 52428, %v283_v23  ;;  %v3074_v33 = vld [vmem:[%s4178_s2 + $0xb8] sm:$0xff] }
  0x19   : > { %v242_v43 = vadd.s32 %v240_v39, %v238_v36  ;;  %v265_v44 = vsel %vm264_vm2, 1, %v3223_v2  ;;  %v289_v46 = vshll.u32 %v3304_v31, 16  ;;  %3190 = vmatpush.bf16.msra.mxu1 %v3055_v28  ;;  %v290_v49 = vshrl.u32 %v3304_v31, 16  ;;  %v3083_v28 = vld [vmem:[%s4178_s2 + $0xe0] sm:$0xff] }
  0x1a   : > { %v267_v48 = vadd.s32 %v265_v44, %v259_v30  ;;  %vm268_vm3 = vc.u32 %v266_v41, %v262_v34  ;;  %v291_v50 = vshll.u32 %v287_v38, 16  ;;  %v3133_v58 = vunpack.c.l.bf16 %v3132_v47  ;;  %v3051_v30 = vld [vmem:[%s4178_s2] sm:$0xff]  ;;  %1725 = vmatpush.bf16.msra.mxu3 %v3083_v28 }
  0x1b   : > { %v243_v53 = vadd.s32 %v242_v43, %v232_v21  ;;  %v269_v54 = vsel %vm268_vm3, 1, %v3223_v2  ;;  %vm293_vm4 = vc.u32 %v285_v35, %v289_v46  ;;  %v295_v55 = vadd.s32 %v289_v46, %v285_v35  ;;  %v3073_v46 = vld [vmem:[%s4178_s2 + $0xb0] sm:$0xff] }
  0x1c   : > { %v271_v56 = vadd.s32 %v269_v54, %v267_v48  ;;  %v294_v57 = vsel %vm293_vm4, 1, %v3223_v2  ;;  %v3134_v59 = vunpack.c.h.bf16 %v3132_v47  ;;  %3193 = vmatpush.bf16.msra.mxu2 %v3054_v42  ;;  %1166 = vmatpush.bf16.msra.mxu0 %v3054_v42  ;;  %v3137_v0 = vunpack.c.l.bf16 %v3326_v51 }
  0x1d   : > { %v244_v62 = vadd.s32 %v243_v53, %v234_v24  ;;  %v296_v63 = vadd.s32 %v294_v57, %v288_v45  ;;  %vm297_vm5 = vc.u32 %v295_v55, %v291_v50  ;;  %3192 = vmatpush.bf16.msra.mxu1 %v3054_v42  ;;  %v292_v3 = vshrl.u32 %v287_v38, 16 }
  0x1e   : > { %v272_v1 = vadd.s32 %v271_v56, %v261_v37  ;;  %v298_v5 = vsel %vm297_vm5, 1, %v3223_v2  ;;  %v614_v8 = vmul.f32 %v3331_v52, %v3133_v58  ;;  %v615_v11 = vmul.f32 %v3331_v52, %v3134_v59 }
  0x1f   : > { %v245_v9 = vshrl.u32 %v244_v62, 3  ;;  %v300_v10 = vadd.s32 %v298_v5, %v296_v63  ;;  %v616_v12 = vmul.f32 %v3331_v52, %v3137_v0  ;;  %v3361_v21 = vadd.s32 24, %v3264_v4  ;;  %v3072_v63 = vld [vmem:[%s4178_s2 + $0xa8] sm:$0xff] }
  0x20   : > { %v273_v13 = vadd.s32 %v272_v1, %v263_v40  ;;  %v3349_v14 = vadd.f32 %v3338_v60, %v614_v8  ;;  %3195 = vmatpush.bf16.msra.mxu2 %v3053_v61  ;;  %1167 = vmatpush.bf16.msra.mxu0 %v3053_v61  ;;  %v3355_v18 = vadd.f32 %v3338_v60, %v615_v11  ;;  %v3371_v29 = vadd.s32 32, %v3264_v4  ;;  %v3094_v40 = vld [vmem:[%s4178_s2 + $0x138] sm:$0xff] }
  0x21   : > { %v246_v16 = vmul.u32 10, %v245_v9  ;;  %v301_v17 = vadd.s32 %v300_v10, %v290_v49  ;;  %v3358_v19 = vadd.f32 %v3338_v60, %v616_v12  ;;  %3194 = vmatpush.bf16.msra.mxu1 %v3053_v61  ;;  %v3381_v35 = vadd.s32 40, %v3264_v4 }
  0x22   : > { %v274_v20 = vshrl.u32 %v273_v13, 3  ;;  %v635_v24 = vmax.f32 %v3349_v14, 0.0  ;;  %v636_v26 = vmax.f32 %v3355_v18, 0.0  ;;  %v311_v36 = vand.u32 65535, %v3361_v21  ;;  %v3071_v18 = vld [vmem:[%s4178_s2 + $0xa0] sm:$0xff] }
  0x23   : > { %v247_v22 = vsub.s32 %v3264_v4, %v246_v16  ;;  %v302_v23 = vadd.s32 %v301_v17, %v292_v3  ;;  %v637_v27 = vmax.f32 %v3358_v19, 0.0  ;;  %v312_v37 = vshrl.u32 %v3361_v21, 16 }
  0x24   : > { %v275_v25 = vmul.u32 10, %v274_v20  ;;  %3197 = vmatpush.bf16.msra.mxu2 %v3052_v15  ;;  %1168 = vmatpush.bf16.msra.mxu0 %v3052_v15  ;;  %v3389_v41 = vadd.s32 48, %v3264_v4  ;;  %v3393_v44 = vmul.u32 52428, %v311_v36  ;;  %v341_v45 = vshrl.u32 %v3371_v29, 16 }
  0x25   : > { %v303_v31 = vshrl.u32 %v302_v23, 3  ;;  %vm511_vm6 = vcmp.ne.s32.totalorder %v247_v22, 0  ;;  %vm521_vm7 = vcmp.lt.s32.totalorder %v247_v22, 0  ;;  %v541_v32 = vadd.s32 10, %v247_v22  ;;  %3196 = vmatpush.bf16.msra.mxu1 %v3052_v15 }
  0x26   : > { %v276_v34 = vsub.s32 %v3273_v6, %v275_v25  ;;  %vm531_vm10 = vmand %vm521_vm7, %vm511_vm6  ;;  %v340_v6 = vand.u32 65535, %v3371_v29  ;;  %v314_v49 = vmul.u32 52429, %v311_v36  ;;  %v3403_v50 = vmul.u32 52429, %v312_v37 }
  0x27   : > { %v304_v38 = vmul.u32 10, %v303_v31  ;;  %v551_v39 = vsel %vm531_vm10, %v541_v32, %v247_v22  ;;  %v318_v55 = vshll.u32 %v3393_v44, 16  ;;  %v319_v61 = vshrl.u32 %v3393_v44, 16 }
  0x28   : > { %vm512_vm11 = vcmp.ne.s32.totalorder %v276_v34, 0  ;;  %vm522_vm12 = vcmp.lt.s32.totalorder %v276_v34, 0  ;;  %v542_v42 = vadd.s32 10, %v276_v34  ;;  %vm561_vm13 = vcmp.ge.s32.totalorder %v551_v39, 1  ;;  %3199 = vmatpush.bf16.msra.mxu2 %v3051_v30  ;;  %1169 = vmatpush.bf16.msra.mxu0 %v3051_v30 }
  0x29   : > { %v305_v43 = vsub.s32 %v3276_v7, %v304_v38  ;;  %vm532_vm14 = vmand %vm522_vm12, %vm512_vm11  ;;  %vm571_vm15 = vcmp.le.s32.totalorder %v551_v39, 8  ;;  %3198 = vmatpush.bf16.msra.mxu1 %v3051_v30  ;;  %v317_v7 = vmul.u32 52428, %v312_v37  ;;  %v343_v56 = vmul.u32 52429, %v340_v6 }
  0x2a   : > { %v552_v47 = vsel %vm532_vm14, %v542_v42, %v276_v34  ;;  %vm3399_vm0 = vmand %vm561_vm13, %vm571_vm15  ;;  %v320_v62 = vshll.u32 %v3403_v50, 16  ;;  %vm322_vm11 = vc.u32 %v314_v49, %v318_v55  ;;  %v324_v9 = vadd.s32 %v318_v55, %v314_v49 }
  0x2b   : > { %vm513_vm1 = vcmp.ne.s32.totalorder %v305_v43, 0  ;;  %vm523_vm2 = vcmp.lt.s32.totalorder %v305_v43, 0  ;;  %v543_v53 = vadd.s32 10, %v305_v43  ;;  %vm562_vm3 = vcmp.ge.s32.totalorder %v552_v47, 1  ;;  %vm3432_vm13 = vmor %vm4181_vm8, %vm700_vm9 }
  0x2c   : > { %1230 = vmatpush.bf16.msrb.mxu2 %v3074_v33  ;;  %1756 = vmatpush.bf16.msrb.mxu0 %v3094_v40  ;;  %vm533_vm4 = vmand %vm523_vm2, %vm513_vm1  ;;  %vm572_vm5 = vcmp.le.s32.totalorder %v552_v47, 8  ;;  %v665_v54 = vsel %vm3399_vm0, %v635_v24, 0.0  ;;  %v323_v8 = vsel %vm322_vm11, 1, %v3223_v2  ;;  %v344_v13 = vmul.u32 52428, %v340_v6 }
  0x2d   : > { %v553_v57 = vsel %vm533_vm4, %v543_v53, %v305_v43  ;;  %vm3408_vm6 = vmand %vm562_vm3, %vm572_vm5  ;;  %v679_v59 = vpack.c.bf16 %v665_v54, %v665_v54  ;;  %v325_v12 = vadd.s32 %v323_v8, %v317_v7  ;;  %v345_v14 = vmul.u32 52429, %v341_v45 }
  0x2e   : > { %vm563_vm7 = vcmp.ge.s32.totalorder %v553_v57, 1  ;;  %vm573_vm10 = vcmp.le.s32.totalorder %v553_v57, 8  ;;  %v666_v0 = vsel %vm3408_vm6, %v636_v26, 0.0  ;;  %vm326_vm14 = vc.u32 %v324_v9, %v320_v62 }
  0x2f   : > { %vm3421_vm12 = vmand %vm563_vm7, %vm573_vm10  ;;  %v680_v3 = vpack.c.bf16 %v666_v0, %v666_v0  ;;  %v702_v5 = vrot.slane %v679_v59, 6  ;;  %v321_v19 = vshrl.u32 %v3403_v50, 16  ;;  %v327_v20 = vsel %vm326_vm14, 1, %v3223_v2 }
  0x30   : > { %1231 = vmatpush.bf16.msrb.mxu2 %v3073_v46  ;;  %v667_v10 = vsel %vm3421_vm12, %v637_v27, 0.0  ;;  %v346_v22 = vmul.u32 52428, %v341_v45  ;;  %v347_v23 = vshll.u32 %v344_v13, 16  ;;  %v329_v27 = vadd.s32 %v327_v20, %v325_v12 }
  0x31   : > { %v681_v15 = vpack.c.bf16 %v667_v10, %v667_v10  ;;  %v703_v16 = vrot.slane %v702_v5, 4  ;;  %v704_v17 = vrot.slane %v680_v3, 6  ;;  %742 = vst [vmem:[#allocation2 + $0x8] sm:$0xc] %v702_v5  ;;  %v3138_v28 = vunpack.c.h.bf16 %v3326_v51 }
  0x32   : > { %v349_v30 = vshll.u32 %v345_v14, 16  ;;  %vm351_vm9 = vc.u32 %v343_v56, %v347_v23  ;;  %v353_v31 = vadd.s32 %v347_v23, %v343_v56  ;;  %v330_v33 = vadd.s32 %v329_v27, %v319_v61 }
  0x33   : > { %v705_v24 = vsel %vm3432_vm13, %v703_v16, %v704_v17  ;;  %v706_v25 = vrot.slane %v704_v17, 4  ;;  %v3443_v26 = vrot.slane %v681_v15, 6  ;;  %v348_v34 = vshrl.u32 %v344_v13, 16 }
  0x34   : > { %1232 = vmatpush.bf16.msrb.mxu2 %v3072_v63  ;;  %743 = vst [vmem:[#allocation2 + $0xc] sm:$0xf] %v705_v24  ;;  %v352_v36 = vsel %vm351_vm9, 1, %v3223_v2  ;;  %vm355_vm15 = vc.u32 %v353_v31, %v349_v30  ;;  %v369_v38 = vand.u32 65535, %v3381_v35  ;;  %v370_v39 = vshrl.u32 %v3381_v35, 16 }
  0x35   : > { %v708_v32 = vsel %vm3432_vm13, %v706_v25, %v3443_v26  ;;  %v354_v37 = vadd.s32 %v352_v36, %v346_v22  ;;  %v331_v40 = vadd.s32 %v330_v33, %v321_v19  ;;  %v350_v6 = vshrl.u32 %v345_v14, 16 }
  0x36   : > { %744 = vst [vmem:[#allocation2 + $0x10] sm:$0xf] %v708_v32  ;;  %v356_v42 = vsel %vm355_vm15, 1, %v3223_v2  ;;  %v398_v43 = vand.u32 65535, %v3389_v41  ;;  %vm797_vm1 = vsmask.f32 7424 }
  0x37   : > { %v358_v46 = vadd.s32 %v356_v42, %v354_v37  ;;  %v372_v47 = vmul.u32 52429, %v369_v38  ;;  %v373_v49 = vmul.u32 52428, %v369_v38  ;;  %v374_v50 = vmul.u32 52429, %v370_v39  ;;  %v3177_v38 = vld [vmem:[%s3312_s8 + $0x10] sm:$0xff]  }
  0x38   : > { %1233 = vmatpush.bf16.msrb.mxu2 %v3071_v18  ;;  %v753_v44 = vld [vmem:[#allocation2 + $0x4] sm:$0xff]   ;;  %v332_v7 = vshrl.u32 %v331_v40, 3  ;;  %v399_v53 = vshrl.u32 %v3389_v41, 16  ;;  %v375_v55 = vmul.u32 52428, %v370_v39  ;;  %v401_v3 = vmul.u32 52429, %v398_v43 }
  0x39   : > { %v3454_v45 = vld [vmem:[#allocation2 + $0x4] sm:$0xf0]  ;;  %v359_v54 = vadd.s32 %v358_v46, %v348_v34  ;;  %v376_v56 = vshll.u32 %v373_v49, 16  ;;  %v378_v57 = vshll.u32 %v374_v50, 16  ;;  %v377_v61 = vshrl.u32 %v373_v49, 16 }
  0x3a   : > { %v333_v59 = vmul.u32 10, %v332_v7  ;;  %v379_v62 = vshrl.u32 %v374_v50, 16  ;;  %v908_v8 = vshrl.u32 %v753_v44, 16  ;;  %v910_v9 = vshll.u32 %v753_v44, 16 }
  0x3b   : > { %v360_v63 = vadd.s32 %v359_v54, %v350_v6  ;;  %vm380_vm2 = vc.u32 %v372_v47, %v376_v56  ;;  %v382_v0 = vadd.s32 %v376_v56, %v372_v47  ;;  %v402_v15 = vmul.u32 52428, %v398_v43  ;;  %v3471_v6 = vld [vmem:[%s3312_s8 + $0x18] sm:$0xff]  }
  0x3c   : > { %v334_v10 = vsub.s32 %v3361_v21, %v333_v59  ;;  %v381_v12 = vsel %vm380_vm2, 1, %v3223_v2  ;;  %v912_v17 = vrot.slane %v910_v9, 1  ;;  %v403_v19 = vmul.u32 52429, %v399_v53 }
  0x3d   : > { %v3457_v5 = vld [vmem:[#allocation2 + $0xc] sm:$0xff]  ;;  %v361_v13 = vshrl.u32 %v360_v63, 3  ;;  %v383_v14 = vadd.s32 %v381_v12, %v375_v55  ;;  %vm384_vm3 = vc.u32 %v382_v0, %v378_v57  ;;  %v404_v23 = vmul.u32 52428, %v399_v53 }
  0x3e   : > { %v806_v16 = vshll.u32 %v3457_v5, 16  ;;  %v385_v18 = vsel %vm384_vm3, 1, %v3223_v2  ;;  %v405_v24 = vshll.u32 %v402_v15, 16  ;;  %v913_v21 = vor.u32 %v912_v17, %v908_v8 }
  0x3f   : > { %v362_v20 = vmul.u32 10, %v361_v13  ;;  %v387_v22 = vadd.s32 %v385_v18, %v383_v14  ;;  %v406_v27 = vshrl.u32 %v402_v15, 16  ;;  %v407_v30 = vshll.u32 %v403_v19, 16  ;;  %v3066_v15 = vld [vmem:[%s4178_s2 + $0x78] sm:$0xff] }
  0x40   : > { %v3463_v25 = vrot.slane %v806_v16, 1  ;;  %v408_v33 = vshrl.u32 %v403_v19, 16  ;;  %vm409_vm4 = vc.u32 %v401_v3, %v405_v24  ;;  %v411_v37 = vadd.s32 %v405_v24, %v401_v3  ;;  %1196 = vmatpush.bf16.msrb.mxu1 %v3066_v15 }
  0x41   : > { %v363_v31 = vsub.s32 %v3371_v29, %v362_v20  ;;  %v388_v32 = vadd.s32 %v387_v22, %v377_v61  ;;  %v410_v36 = vsel %vm409_vm4, 1, %v3223_v2  ;;  %vm514_vm5 = vcmp.ne.s32.totalorder %v334_v10, 0 }
  0x42   : > { %v914_v34 = vsel %vm797_vm1, %v913_v21, %v3463_v25  ;;  %v412_v40 = vadd.s32 %v410_v36, %v404_v23  ;;  %vm524_vm10 = vcmp.lt.s32.totalorder %v334_v10, 0  ;;  %vm413_vm11 = vc.u32 %v411_v37, %v407_v30 }
  0x43   : > { %1170 = vmatmul.bf16.vlgmr.msra.gmra.mxu0 %v914_v34  ;;  %v389_v39 = vadd.s32 %v388_v32, %v379_v62  ;;  %vm515_vm7 = vcmp.ne.s32.totalorder %v363_v31, 0  ;;  %vm525_vm14 = vcmp.lt.s32.totalorder %v363_v31, 0  ;;  %vm534_vm9 = vmand %vm524_vm10, %vm514_vm5  ;;  %v544_v29 = vadd.s32 10, %v334_v10 }
  0x44   : > { %v545_v42 = vadd.s32 10, %v363_v31  ;;  %v414_v44 = vsel %vm413_vm11, 1, %v3223_v2  ;;  %vm535_vm15 = vmand %vm525_vm14, %vm515_vm7  ;;  %v3141_v46 = vunpack.c.l.bf16 %v3177_v38  ;;  %v3142_v47 = vunpack.c.h.bf16 %v3177_v38 }
  0x45   : > { %v390_v43 = vshrl.u32 %v389_v39, 3  ;;  %v416_v49 = vadd.s32 %v414_v44, %v412_v40  ;;  %v554_v50 = vsel %vm534_vm9, %v544_v29, %v334_v10  ;;  %v3145_v53 = vunpack.c.l.bf16 %v3471_v6 }
  0x46   : > { %v555_v7 = vsel %vm535_vm15, %v545_v42, %v363_v31  ;;  %vm564_vm2 = vcmp.ge.s32.totalorder %v554_v50, 1  ;;  %vm574_vm4 = vcmp.le.s32.totalorder %v554_v50, 8  ;;  %v617_v56 = vmul.f32 %v3331_v52, %v3138_v28 }
  0x47   : > { %v391_v54 = vmul.u32 10, %v390_v43  ;;  %vm565_vm3 = vcmp.ge.s32.totalorder %v555_v7, 1  ;;  %v417_v55 = vadd.s32 %v416_v49, %v406_v27  ;;  %vm575_vm8 = vcmp.le.s32.totalorder %v555_v7, 8  ;;  %vm3486_vm5 = vmand %vm564_vm2, %vm574_vm4 }
  0x48   : > { %v618_v57 = vmul.f32 %v3331_v52, %v3141_v46  ;;  %v619_v61 = vmul.f32 %v3331_v52, %v3142_v47  ;;  %v620_v62 = vmul.f32 %v3331_v52, %v3145_v53  ;;  %v3483_v63 = vadd.s32 56, %v3264_v4  ;;  %vm3494_vm11 = vmand %vm565_vm3, %vm575_vm8 }
  0x49   : > { %v392_v59 = vsub.s32 %v3381_v35, %v391_v54  ;;  %v709_v0 = vrot.slane %v3443_v26, 4  ;;  %v418_v3 = vadd.s32 %v417_v55, %v408_v33  ;;  %v628_v51 = vadd.f32 %v3338_v60, %v617_v56 }
  0x4a   : > { %v629_v28 = vadd.f32 %v3338_v60, %v618_v57  ;;  %v630_v26 = vadd.f32 %v3338_v60, %v619_v61  ;;  %v631_v12 = vadd.f32 %v3338_v60, %v620_v62  ;;  %v3504_v18 = vadd.s32 64, %v3264_v4 }
  0x4b   : > { %vm516_vm7 = vcmp.ne.s32.totalorder %v392_v59, 0  ;;  %vm526_vm10 = vcmp.lt.s32.totalorder %v392_v59, 0  ;;  %v546_v35 = vadd.s32 10, %v392_v59  ;;  %v419_v10 = vshrl.u32 %v418_v3, 3 }
  0x4c   : > { %vm536_vm14 = vmand %vm526_vm10, %vm516_vm7  ;;  %v638_v13 = vmax.f32 %v628_v51, 0.0  ;;  %v639_v14 = vmax.f32 %v629_v28, 0.0  ;;  %v640_v17 = vmax.f32 %v630_v26, 0.0  ;;  %v427_v19 = vand.u32 65535, %v3483_v63 }
  0x4d   : > { %v556_v16 = vsel %vm536_vm14, %v546_v35, %v392_v59  ;;  %v420_v20 = vmul.u32 10, %v419_v10  ;;  %v3508_v22 = vadd.s32 72, %v3264_v4  ;;  %v641_v24 = vmax.f32 %v631_v12, 0.0 }
  0x4e   : > { %vm566_vm8 = vcmp.ge.s32.totalorder %v556_v16, 1  ;;  %vm576_vm9 = vcmp.le.s32.totalorder %v556_v16, 8  ;;  %v668_v21 = vsel %vm3486_vm5, %v638_v13, 0.0  ;;  %v669_v27 = vsel %vm3494_vm11, %v639_v14, 0.0 }
  0x4f   : > { %vm3510_vm15 = vmand %vm566_vm8, %vm576_vm9  ;;  %v428_v30 = vshrl.u32 %v3483_v63, 16  ;;  %v421_v31 = vsub.s32 %v3389_v41, %v420_v20  ;;  %v682_v4 = vpack.c.bf16 %v668_v21, %v668_v21  ;;  %v683_v33 = vpack.c.bf16 %v669_v27, %v669_v27 }
  0x50   : > { %v670_v32 = vsel %vm3510_vm15, %v640_v17, 0.0  ;;  %v430_v36 = vmul.u32 52429, %v427_v19  ;;  %v431_v37 = vmul.u32 52428, %v427_v19  ;;  %v456_v62 = vand.u32 65535, %v3504_v18 }
  0x51   : > { %v684_v34 = vpack.c.bf16 %v670_v32, %v670_v32  ;;  %v432_v38 = vmul.u32 52429, %v428_v30  ;;  %vm517_vm2 = vcmp.ne.s32.totalorder %v421_v31, 0  ;;  %vm527_vm3 = vcmp.lt.s32.totalorder %v421_v31, 0 }
  0x52   : > { %v547_v39 = vadd.s32 10, %v421_v31  ;;  %v710_v40 = vrot.slane %v682_v4, 6  ;;  %vm537_vm4 = vmand %vm527_vm3, %vm517_vm2  ;;  %v713_v29 = vrot.slane %v683_v33, 6  ;;  %v433_v43 = vmul.u32 52428, %v428_v30 }
  0x53   : > { %v716_v42 = vrot.slane %v684_v34, 6  ;;  %v434_v44 = vshll.u32 %v431_v37, 16  ;;  %v436_v49 = vshll.u32 %v432_v38, 16  ;;  %v435_v7 = vshrl.u32 %v431_v37, 16 }
  0x54   : > { %v557_v46 = vsel %vm537_vm4, %v547_v39, %v421_v31  ;;  %v711_v41 = vsel %vm3432_vm13, %v709_v0, %v710_v40  ;;  %v712_v47 = vrot.slane %v710_v40, 4  ;;  %v715_v50 = vrot.slane %v713_v29, 4 }
  0x55   : > { %vm567_vm7 = vcmp.ge.s32.totalorder %v557_v46, 1  ;;  %vm577_vm10 = vcmp.le.s32.totalorder %v557_v46, 8  ;;  %745 = vst [vmem:[#allocation2 + $0x14] sm:$0xf] %v711_v41  ;;  %v718_v55 = vrot.slane %v716_v42, 4  ;;  %vm438_vm8 = vc.u32 %v430_v36, %v434_v44  ;;  %v3179_v41 = vld [vmem:[%s3312_s8 + $0x20] sm:$0xff]  }
  0x56   : > { %vm3524_vm14 = vmand %vm567_vm7, %vm577_vm10  ;;  %v714_v54 = vsel %vm3432_vm13, %v712_v47, %v713_v29  ;;  %v440_v56 = vadd.s32 %v434_v44, %v430_v36  ;;  %v717_v59 = vsel %vm3432_vm13, %v715_v50, %v716_v42  ;;  %v439_v61 = vsel %vm438_vm8, 1, %v3223_v2 }
  0x57   : > { %v671_v57 = vsel %vm3524_vm14, %v641_v24, 0.0  ;;  %746 = vst [vmem:[#allocation2 + $0x18] sm:$0xf] %v714_v54  ;;  %v441_v3 = vadd.s32 %v439_v61, %v433_v43  ;;  %v457_v51 = vshrl.u32 %v3504_v18, 16  ;;  %v459_v35 = vmul.u32 52429, %v456_v62 }
  0x58   : > { %v685_v0 = vpack.c.bf16 %v671_v57, %v671_v57  ;;  %747 = vst [vmem:[#allocation2 + $0x1c] sm:$0xf] %v717_v59  ;;  %vm442_vm9 = vc.u32 %v440_v56, %v436_v49  ;;  %v460_v26 = vmul.u32 52428, %v456_v62  ;;  %v485_v10 = vand.u32 65535, %v3508_v22 }
  0x59   : > { %v443_v28 = vsel %vm442_vm9, 1, %v3223_v2  ;;  %v437_v13 = vshrl.u32 %v432_v38, 16  ;;  %v461_v15 = vmul.u32 52429, %v457_v51  ;;  %v462_v16 = vmul.u32 52428, %v457_v51 }
  0x5a   : > { %v3539_v12 = vrot.slane %v685_v0, 6  ;;  %v445_v14 = vadd.s32 %v443_v28, %v441_v3  ;;  %v463_v17 = vshll.u32 %v460_v26, 16  ;;  %v464_v19 = vshrl.u32 %v460_v26, 16  ;;  %v3213_v28 = vld [vmem:[#allocation2 + $0x4] sm:$0xe] }
  0x5b   : > { %v486_v20 = vshrl.u32 %v3508_v22, 16  ;;  %v465_v27 = vshll.u32 %v461_v15, 16  ;;  %v488_v30 = vmul.u32 52429, %v485_v10  ;;  %v489_v32 = vmul.u32 52428, %v485_v10 }
  0x5c   : > { %v720_v24 = vsel %vm3432_vm13, %v718_v55, %v3539_v12  ;;  %v446_v21 = vadd.s32 %v445_v14, %v435_v7  ;;  %vm467_vm2 = vc.u32 %v459_v35, %v463_v17  ;;  %v469_v31 = vadd.s32 %v463_v17, %v459_v35 }
  0x5d   : > { %748 = vst [vmem:[#allocation2 + $0x20] sm:$0xf] %v720_v24  ;;  %v490_v4 = vmul.u32 52429, %v486_v20  ;;  %v466_v36 = vshrl.u32 %v461_v15, 16  ;;  %v468_v37 = vsel %vm467_vm2, 1, %v3223_v2  ;;  %v491_v38 = vmul.u32 52428, %v486_v20 }
  0x5e   : > { %v3545_v33 = vld [vmem:[#allocation2 + $0x14] sm:$0xff]  ;;  %v447_v34 = vadd.s32 %v446_v21, %v437_v13  ;;  %v470_v39 = vadd.s32 %v468_v37, %v462_v16  ;;  %vm471_vm3 = vc.u32 %v469_v31, %v465_v27  ;;  %v492_v40 = vshll.u32 %v489_v32, 16 }
  0x5f   : > { %v3146_v29 = vunpack.c.h.bf16 %v3471_v6  ;;  %v814_v42 = vshll.u32 %v3545_v33, 16  ;;  %v472_v44 = vsel %vm471_vm3, 1, %v3223_v2  ;;  %v493_v46 = vshrl.u32 %v489_v32, 16 }
  0x60   : > { %v448_v43 = vshrl.u32 %v447_v34, 3  ;;  %v818_v47 = vshrl.u32 %v3545_v33, 16  ;;  %v474_v49 = vadd.s32 %v472_v44, %v470_v39  ;;  %v494_v50 = vshll.u32 %v490_v4, 16 }
  0x61   : > { %vm496_vm4 = vc.u32 %v488_v30, %v492_v40  ;;  %v3553_v7 = vrot.slane %v814_v42, 1  ;;  %v498_v56 = vadd.s32 %v492_v40, %v488_v30  ;;  %v495_v6 = vshrl.u32 %v490_v4, 16  ;;  %v3082_v40 = vld [vmem:[%s4178_s2 + $0xd8] sm:$0xff] }
  0x62   : > { %v449_v54 = vmul.u32 10, %v448_v43  ;;  %v497_v55 = vsel %vm496_vm4, 1, %v3223_v2  ;;  %v475_v57 = vadd.s32 %v474_v49, %v464_v19  ;;  %v3149_v61 = vunpack.c.l.bf16 %v3179_v41  ;;  %v3093_v43 = vld [vmem:[%s4178_s2 + $0x130] sm:$0xff]  ;;  %1726 = vmatpush.bf16.msra.mxu3 %v3082_v40  ;;  %v3062_v40 = vld [vmem:[%s4178_s2 + $0x58] sm:$0xff] }
  0x63   : > { %v499_v59 = vadd.s32 %v497_v55, %v491_v38  ;;  %vm500_vm7 = vc.u32 %v498_v56, %v494_v50  ;;  %v3150_v3 = vunpack.c.h.bf16 %v3179_v41  ;;  %v621_v51 = vmul.f32 %v3331_v52, %v3146_v29  ;;  %1757 = vmatpush.bf16.msrb.mxu0 %v3093_v43  ;;  %v3069_v49 = vld [vmem:[%s4178_s2 + $0x90] sm:$0xff]  ;;  %v3092_v50 = vld [vmem:[%s4178_s2 + $0x128] sm:$0xff] }
  0x64   : > { %v3556_v62 = vld [vmem:[#allocation2 + $0x1c] sm:$0xff]  ;;  %v450_v0 = vsub.s32 %v3483_v63, %v449_v54  ;;  %v820_v35 = vor.u32 %v818_v47, %v3553_v7  ;;  %v476_v26 = vadd.s32 %v475_v57, %v466_v36  ;;  %v501_v10 = vsel %vm500_vm7, 1, %v3223_v2  ;;  %v3064_v55 = vld [vmem:[%s4178_s2 + $0x68] sm:$0xff] }
  0x65   : > { %v622_v13 = vmul.f32 %v3331_v52, %v3149_v61  ;;  %v822_v14 = vshll.u32 %v3556_v62, 16  ;;  %v503_v15 = vadd.s32 %v501_v10, %v499_v59  ;;  %v632_v17 = vadd.f32 %v3338_v60, %v621_v51  ;;  %v3068_v51 = vld [vmem:[%s4178_s2 + $0x88] sm:$0xff]  ;;  %v3091_v10 = vld [vmem:[%s4178_s2 + $0x120] sm:$0xff] }
  0x66   : > { %vm518_vm10 = vcmp.ne.s32.totalorder %v450_v0, 0  ;;  %vm528_vm8 = vcmp.lt.s32.totalorder %v450_v0, 0  ;;  %v477_v16 = vshrl.u32 %v476_v26, 3  ;;  %v548_v63 = vadd.s32 10, %v450_v0 }
  0x67   : > { %vm538_vm9 = vmand %vm528_vm8, %vm518_vm10  ;;  %v3565_v19 = vrot.slane %v822_v14, 1  ;;  %v504_v20 = vadd.s32 %v503_v15, %v493_v46  ;;  %v623_v24 = vmul.f32 %v3331_v52, %v3150_v3  ;;  %v633_v2 = vadd.f32 %v3338_v60, %v622_v13  ;;  %1758 = vmatpush.bf16.msrb.mxu0 %v3092_v50  ;;  %v3063_v15 = vld [vmem:[%s4178_s2 + $0x60] sm:$0xff] }
  0x68   : > { %v478_v21 = vmul.u32 10, %v477_v16  ;;  %v558_v27 = vsel %vm538_vm9, %v548_v63, %v450_v0  ;;  %v642_v30 = vmax.f32 %v632_v17, 0.0  ;;  %v3580_v52 = vor.u32 %v3213_v28, %v3454_v45  ;;  %v3080_v28 = vld [vmem:[%s4178_s2 + $0xc8] sm:$0xff] }
  0x69   : > { %v3571_v31 = vsel %vm797_vm1, %v820_v35, %v3565_v19  ;;  %v505_v32 = vadd.s32 %v504_v20, %v495_v6  ;;  %vm568_vm2 = vcmp.ge.s32.totalorder %v558_v27, 1  ;;  %vm578_vm3 = vcmp.le.s32.totalorder %v558_v27, 8  ;;  %v1274_v63 = vld [vmem:[#allocation2 + $0x8] sm:$0xe] }
  0x6a   : > { %1180 = vmatmul.bf16.vlgmr.msra.gmra.mxu1 %v3571_v31  ;;  %v479_v4 = vsub.s32 %v3504_v18, %v478_v21  ;;  %vm3575_vm4 = vmand %vm568_vm2, %vm578_vm3  ;;  %v634_v39 = vadd.f32 %v3338_v60, %v623_v24  ;;  %v3070_v18 = vld [vmem:[%s4178_s2 + $0x98] sm:$0xff]  ;;  %v643_v45 = vmax.f32 %v633_v2, 0.0  ;;  %v721_v46 = vrot.slane %v3539_v12, 4  ;;  %v3065_v60 = vld [vmem:[%s4178_s2 + $0x70] sm:$0xff] }
  0x6b   : > { %v506_v36 = vshrl.u32 %v505_v32, 3  ;;  %v672_v37 = vsel %vm3575_vm4, %v642_v30, 0.0  ;;  %1234 = vmatpush.bf16.msrb.mxu2 %v3070_v18  ;;  %v3081_v12 = vld [vmem:[%s4178_s2 + $0xd0] sm:$0xff]  ;;  %1197 = vmatpush.bf16.msrb.mxu1 %v3065_v60  ;;  %v810_v56 = vshrl.u32 %v3457_v5, 16  ;;  %v848_v57 = vrot.slane %v3580_v52, 1  ;;  %v3067_v30 = vld [vmem:[%s4178_s2 + $0x80] sm:$0xff] }
  0x6c   : > { %vm519_vm7 = vcmp.ne.s32.totalorder %v479_v4, 0  ;;  %vm529_vm10 = vcmp.lt.s32.totalorder %v479_v4, 0  ;;  %v549_v38 = vadd.s32 10, %v479_v4  ;;  %v686_v42 = vpack.c.bf16 %v672_v37, %v672_v37  ;;  %1727 = vmatpush.bf16.msra.mxu3 %v3081_v12  ;;  %v3646_v24 = vld [vmem:[#allocation2 + $0xc] sm:$0xff]   ;;  %v3079_v32 = vld [vmem:[%s4178_s2 + $0xc0] sm:$0xff]  ;;  %1759 = vmatpush.bf16.msrb.mxu0 %v3091_v10  ;;  %v3090_v37 = vld [vmem:[%s4178_s2 + $0x118] sm:$0xff] }
  0x6d   : > { %v507_v29 = vmul.u32 10, %v506_v36  ;;  %vm539_vm8 = vmand %vm529_vm10, %vm519_vm7  ;;  %vm847_vm7 = vcmask 1046528   ;;  %v812_v35 = vor.u32 %v810_v56, %v3463_v25  ;;  %v849_v13 = vrot.slane %v3457_v5, 1  ;;  %v3648_v21 = vld [vmem:[#allocation2 + $0x10] sm:$0xff] }
  0x6e   : > { %v559_v44 = vsel %vm539_vm8, %v549_v38, %v479_v4  ;;  %v722_v47 = vrot.slane %v686_v42, 6  ;;  %v851_v20 = vrot.slane %v3545_v33, 1  ;;  %v1285_v4 = vld [vmem:[#allocation2 + $0x8] sm:$0xc]  ;;  %v1299_v42 = vunpack.c.l.b16 %v3646_v24 }
  0x6f   : > { %v508_v41 = vsub.s32 %v3508_v22, %v507_v29  ;;  %vm569_vm9 = vcmp.ge.s32.totalorder %v559_v44, 1  ;;  %vm579_vm2 = vcmp.le.s32.totalorder %v559_v44, 8  ;;  %v644_v22 = vmax.f32 %v634_v39, 0.0  ;;  %1235 = vmatpush.bf16.msrb.mxu2 %v3069_v49  ;;  %1198 = vmatpush.bf16.msrb.mxu1 %v3064_v55 }
  0x70   : > { %vm3608_vm3 = vmand %vm569_vm9, %vm579_vm2  ;;  %v723_v0 = vsel %vm3432_vm13, %v721_v46, %v722_v47  ;;  %v724_v3 = vrot.slane %v722_v47, 4  ;;  %v3637_v16 = vsel %vm797_vm1, %v812_v35, %v3553_v7  ;;  %v850_v5 = vsel %vm847_vm7, %v848_v57, %v849_v13  ;;  %1728 = vmatpush.bf16.msra.mxu3 %v3080_v28  ;;  %1760 = vmatpush.bf16.msrb.mxu0 %v3090_v37  ;;  %v3682_v57 = vld [vmem:[#allocation2 + $0x18] sm:$0xff]  ;;  %v3061_v28 = vld [vmem:[%s4178_s2 + $0x50] sm:$0xff] }
  0x71   : > { %vm520_vm10 = vcmp.ne.s32.totalorder %v508_v41, 0  ;;  %vm530_vm8 = vcmp.lt.s32.totalorder %v508_v41, 0  ;;  %v550_v6 = vadd.s32 10, %v508_v41  ;;  %v673_v59 = vsel %vm3608_vm3, %v643_v45, 0.0  ;;  %749 = vst [vmem:[#allocation2 + $0x24] sm:$0xf] %v723_v0  ;;  %1175 = vmatmul.bf16.gmra.mxu0 %v3637_v16 }
  0x72   : > { %vm540_vm9 = vmand %vm530_vm8, %vm520_vm10  ;;  %v687_v61 = vpack.c.bf16 %v673_v59, %v673_v59  ;;  %v3666_v38 = vsel %vm847_vm7, %v849_v13, %v851_v20  ;;  %v928_v39 = vshrl.u32 %v850_v5, 16  ;;  %v930_v18 = vshll.u32 %v850_v5, 16 }
  0x73   : > { %v560_v26 = vsel %vm540_vm9, %v550_v6, %v508_v41  ;;  %1236 = vmatpush.bf16.msrb.mxu2 %v3068_v51  ;;  %1199 = vmatpush.bf16.msrb.mxu1 %v3063_v15  ;;  %v935_v29 = vshll.u32 %v3666_v38, 16  ;;  %v1298_v45 = vunpack.c.l.b16 %v1274_v63  ;;  %v1316_v43 = vunpack.c.l.b16 %v1285_v4  ;;  %v3089_v51 = vld [vmem:[%s4178_s2 + $0x110] sm:$0xff]  ;;  %v3088_v15 = vld [vmem:[%s4178_s2 + $0x108] sm:$0xff]  ;;  %v3122_v63 = vld [vmem:[%s4178_s2 + $0x1f8] sm:$0xff] }
  0x74   : > { %vm570_vm2 = vcmp.ge.s32.totalorder %v560_v26, 1  ;;  %vm580_vm10 = vcmp.le.s32.totalorder %v560_v26, 8  ;;  %v725_v14 = vrot.slane %v687_v61, 6  ;;  %v932_v46 = vrot.slane %v930_v18, 1  ;;  %1729 = vmatpush.bf16.msra.mxu3 %v3079_v32  ;;  %1761 = vmatpush.bf16.msrb.mxu0 %v3089_v51  ;;  %v3060_v4 = vld [vmem:[%s4178_s2 + $0x48] sm:$0xff] }
  0x75   : > { %vm3639_vm8 = vmand %vm570_vm2, %vm580_vm10  ;;  %v1326_v60 = vshll.u32 %v3648_v21, 16  ;;  %v1330_v41 = vshrl.u32 %v3648_v21, 16  ;;  %v826_v47 = vshrl.u32 %v3556_v62, 16  ;;  %v3676_v49 = vrot.slane %v935_v29, 1 }
  0x76   : > { %v674_v27 = vsel %vm3639_vm8, %v644_v22, 0.0  ;;  %v726_v7 = vsel %vm3432_vm13, %v724_v3, %v725_v14  ;;  %v727_v2 = vrot.slane %v725_v14, 4  ;;  %v1309_v12 = vpack.c.b16 %v1299_v42, %v1298_v45 }
  0x77   : > { %v688_v36 = vpack.c.bf16 %v674_v27, %v674_v27  ;;  %750 = vst [vmem:[#allocation2 + $0x28] sm:$0xf] %v726_v7  ;;  %1237 = vmatpush.bf16.msrb.mxu2 %v3067_v30  ;;  %v933_v55 = vor.u32 %v932_v46, %v928_v39  ;;  %v3680_v56 = vpack.c.b16 %v1299_v42, %v1316_v43  ;;  %v1437_v61 = vrot.slane %v1330_v41, 1  ;;  %v3087_v43 = vld [vmem:[%s4178_s2 + $0x100] sm:$0xff] }
  0x78   : > { %1200 = vmatpush.bf16.msrb.mxu1 %v3062_v40  ;;  %v1430_v6 = vshrl.u32 %v1309_v12, 16  ;;  %v1433_v59 = vshll.u32 %v1309_v12, 16  ;;  %v1438_v0 = vrot.slane %v1326_v60, 2  ;;  %v1328_v11 = vrot.slane %v1326_v60, 1  ;;  %2336 = vmatpush.bf16.msrb.mxu3 %v3122_v63 }
  0x79   : > { %v728_v44 = vrot.slane %v688_v36, 6  ;;  %v3686_v3 = vsel %vm797_vm1, %v933_v55, %v3676_v49  ;;  %v1319_v5 = vshrl.u32 %v3680_v56, 16  ;;  %v1321_v27 = vshll.u32 %v3680_v56, 16  ;;  %1762 = vmatpush.bf16.msrb.mxu0 %v3088_v15 }
  0x7a   : > { %v1432_v26 = vrot.slane %v1430_v6, 1  ;;  %v1435_v10 = vrot.slane %v1433_v59, 2  ;;  %v3696_v13 = vor.u32 %v1438_v0, %v1437_v61  ;;  %v1332_v14 = vor.u32 %v1330_v41, %v1328_v11 }
  0x7b   : > { %v729_v50 = vsel %vm3432_vm13, %v727_v2, %v728_v44  ;;  %v730_v22 = vrot.slane %v728_v44, 4  ;;  %vm1428_vm13 = vsmask.f32 6400  ;;  %v1334_v7 = vshll.u32 %v3682_v57, 16 }
  0x7c   : > { %751 = vst [vmem:[#allocation2 + $0x2c] sm:$0xf] %v729_v50  ;;  %v828_v30 = vor.u32 %v826_v47, %v3565_v19  ;;  %v1436_v32 = vor.u32 %v1435_v10, %v1432_v26  ;;  %1201 = vmatpush.bf16.msrb.mxu1 %v3061_v28  ;;  %v801_v36 = vshll.u32 %v3580_v52, 16  ;;  %v1323_v37 = vrot.slane %v1321_v27, 1 }
  0x7d   : > { %752 = vst [vmem:[#allocation2 + $0x30] sm:$0x3] %v730_v22  ;;  %v3713_v39 = vrot.slane %v1334_v7, 1  ;;  %v853_v18 = vrot.slane %v3556_v62, 1  ;;  %v799_v45 = vshrl.u32 %v3580_v52, 16  ;;  %v947_v41 = vshrl.u32 %v3666_v38, 16  ;;  %1763 = vmatpush.bf16.msrb.mxu0 %v3087_v43 }
  0x7e   : > { %v3694_v35 = vld [vmem:[#allocation2 + $0x24] sm:$0xff]  ;;  %v1440_v19 = vsel %vm1428_vm13, %v1436_v32, %v3696_v13  ;;  %v1324_v44 = vor.u32 %v1323_v37, %v1319_v5  ;;  %v803_v60 = vrot.slane %v801_v36, 1  ;;  %v923_v22 = vshll.u32 %v3637_v16, 16  ;;  %v3102_v38 = vld [vmem:[%s4178_s2 + $0x178] sm:$0xff]  ;;  %v3117_v62 = vld [vmem:[%s4178_s2 + $0x1d0] sm:$0xff] }
  0x7f   : > { %v830_v2 = vshll.u32 %v3694_v35, 16  ;;  %v834_v29 = vshrl.u32 %v3694_v35, 16  ;;  %1730 = vmatmul.bf16.vlgmr.msra.gmra.mxu3 %v1440_v19  ;;  %v1337_v46 = vsel %vm797_vm1, %v1332_v14, %v3713_v39  ;;  %v3059_v52 = vld [vmem:[%s4178_s2 + $0x40] sm:$0xff]  ;;  %v3743_v59 = vsel %vm847_vm7, %v851_v20, %v853_v18 }
  0x80   : > { %1202 = vmatpush.bf16.msrb.mxu1 %v3060_v4  ;;  %v1450_v50 = vshrl.u32 %v1337_v46, 16  ;;  %v1329_v55 = vsel %vm797_vm1, %v1324_v44, %v1328_v11  ;;  %v1453_v6 = vshll.u32 %v1337_v46, 16  ;;  %v804_v10 = vor.u32 %v803_v60, %v799_v45  ;;  %v3758_v19 = vld [vmem:[#allocation2 + $0x20] sm:$0xff]  ;;  %v3130_v44 = vld [vmem:[%s4178_s2 + $0x238] sm:$0xff]  ;;  %v3121_v46 = vld [vmem:[%s4178_s2 + $0x1f0] sm:$0xff] }
  0x81   : > { %v832_v40 = vrot.slane %v830_v2, 1  ;;  %v1442_v0 = vshrl.u32 %v1329_v55, 16  ;;  %v1445_v51 = vshll.u32 %v1329_v55, 16  ;;  %v949_v14 = vor.u32 %v947_v41, %v3676_v49  ;;  %v3114_v49 = vld [vmem:[%s4178_s2 + $0x1b8] sm:$0xff]  ;;  %2370 = vmatpush.bf16.msra.mxu0 %v3130_v44  ;;  %2337 = vmatpush.bf16.msrb.mxu3 %v3121_v46  ;;  %v3129_v55 = vld [vmem:[%s4178_s2 + $0x230] sm:$0xff]  ;;  %v3127_v46 = vld [vmem:[%s4178_s2 + $0x220] sm:$0xff] }
  0x82   : > { %v1452_v28 = vrot.slane %v1450_v50, 1  ;;  %v1455_v11 = vrot.slane %v1453_v6, 2  ;;  %v951_v33 = vshll.u32 %v3743_v59, 16  ;;  %v809_v27 = vsel %vm797_vm1, %v804_v10, %v3463_v25  ;;  %v3101_v50 = vld [vmem:[%s4178_s2 + $0x170] sm:$0xff] }
  0x83   : > { %v763_v42 = vld [vmem:[#allocation2 + $0x2c] sm:$0x1]  ;;  %v3727_v12 = vsel %vm797_vm1, %v828_v30, %v832_v40  ;;  %v836_v26 = vor.u32 %v834_v29, %v832_v40  ;;  %v1444_v63 = vrot.slane %v1442_v0, 1  ;;  %v1447_v5 = vrot.slane %v1445_v51, 2 }
  0x84   : > { %v787_v47 = vunpack.c.l.b16 %v763_v42  ;;  %1185 = vmatmul.bf16.gmra.mxu1 %v3727_v12  ;;  %v1456_v20 = vor.u32 %v1455_v11, %v1452_v28  ;;  %v1338_v2 = vshrl.u32 %v3682_v57, 16  ;;  %v1476_v30 = vrot.slane %v1334_v7, 2  ;;  %v3112_v28 = vld [vmem:[%s4178_s2 + $0x1a8] sm:$0xff] }
  0x85   : > { %1203 = vmatpush.bf16.msrb.mxu1 %v3059_v52  ;;  %v1448_v4 = vor.u32 %v1447_v5, %v1444_v63  ;;  %v916_v36 = vshrl.u32 %v809_v27, 16  ;;  %v918_v37 = vshll.u32 %v809_v27, 16  ;;  %v3756_v40 = vrot.slane %v951_v33, 1  ;;  %v3113_v52 = vld [vmem:[%s4178_s2 + $0x1b0] sm:$0xff]  ;;  %2371 = vmatpush.bf16.msra.mxu0 %v3129_v55 }
  0x86   : > { %v3745_v61 = vpack.c.b16 %v787_v47, %v787_v47  ;;  %v1475_v29 = vrot.slane %v1338_v2, 1  ;;  %v925_v7 = vrot.slane %v923_v22, 1  ;;  %v1340_v41 = vor.u32 %v1338_v2, %v3713_v39 }
  0x87   : > { %v1457_v25 = vsel %vm1428_vm13, %v1448_v4, %v1456_v20  ;;  %v920_v42 = vrot.slane %v918_v37, 1  ;;  %v3767_v43 = vsel %vm797_vm1, %v949_v14, %v3756_v40  ;;  %v1342_v22 = vshll.u32 %v3758_v19, 16  ;;  %v3100_v4 = vld [vmem:[%s4178_s2 + $0x168] sm:$0xff] }
  0x88   : > { %v838_v15 = vshll.u32 %v3745_v61, 16  ;;  %1764 = vmatmul.bf16.vlgmr.msrb.gmra.mxu0 %v1457_v25  ;;  %v1477_v47 = vor.u32 %v1476_v30, %v1475_v29  ;;  %v1346_v14 = vshrl.u32 %v3758_v19, 16  ;;  %v943_v33 = vshll.u32 %v3571_v31, 16  ;;  %v3800_v30 = vld [vmem:[#allocation2 + $0x28] sm:$0xff] }
  0x89   : > { %1790 = vmatpush.bf16.msra.mxu1 %v3102_v38  ;;  %v921_v60 = vor.u32 %v920_v42, %v916_v36  ;;  %v1344_v6 = vrot.slane %v1342_v22, 1  ;;  %v3120_v38 = vld [vmem:[%s4178_s2 + $0x1e8] sm:$0xff]  ;;  %v1498_v5 = vrot.slane %v1342_v22, 2  ;;  %v939_v27 = vshrl.u32 %v3637_v16, 16  ;;  %v3111_v16 = vld [vmem:[%s4178_s2 + $0x1a0] sm:$0xff] }
  0x8a   : > { %v840_v32 = vrot.slane %v838_v15, 1  ;;  %v1478_v39 = vsel %vm1428_vm13, %v3696_v13, %v1477_v47  ;;  %2338 = vmatpush.bf16.msrb.mxu3 %v3120_v38  ;;  %v1497_v63 = vrot.slane %v1346_v14, 1  ;;  %v3128_v36 = vld [vmem:[%s4178_s2 + $0x228] sm:$0xff]  ;;  %v945_v37 = vrot.slane %v943_v33, 1  ;;  %v3099_v42 = vld [vmem:[%s4178_s2 + $0x160] sm:$0xff] }
  0x8b   : > { %v926_v0 = vsel %vm797_vm1, %v921_v60, %v925_v7  ;;  %v1345_v51 = vsel %vm797_vm1, %v1340_v41, %v1344_v6  ;;  %v941_v29 = vor.u32 %v939_v27, %v925_v7  ;;  %2372 = vmatpush.bf16.msra.mxu0 %v3128_v36  ;;  %v1284_v38 = vld [vmem:[#allocation2 + $0x30] sm:$0x3]  ;;  %vm2008_vm9 = vsmask.f32 5376 }
  0x8c   : > { %v3761_v45 = vsel %vm797_vm1, %v836_v26, %v840_v32  ;;  %v1480_v26 = vshrl.u32 %v1345_v51, 16  ;;  %v1483_v11 = vshll.u32 %v1345_v51, 16  ;;  %v1499_v32 = vor.u32 %v1498_v5, %v1497_v63  ;;  %v3110_v5 = vld [vmem:[%s4178_s2 + $0x198] sm:$0xff] }
  0x8d   : > { %1190 = vmatmul.bf16.vlgmr.msra.gmra.mxu2 %v3761_v45  ;;  %1791 = vmatpush.bf16.msra.mxu1 %v3101_v50  ;;  %v946_v60 = vsel %vm797_vm1, %v941_v29, %v945_v37  ;;  %v955_v51 = vshrl.u32 %v3571_v31, 16  ;;  %v3118_v31 = vld [vmem:[%s4178_s2 + $0x1d8] sm:$0xff] }
  0x8e   : > { %2302 = vmatpush.bf16.msra.mxu2 %v3114_v49  ;;  %v1482_v13 = vrot.slane %v1480_v26, 1  ;;  %v1485_v10 = vrot.slane %v1483_v11, 2  ;;  %v1348_v49 = vor.u32 %v1346_v14, %v1344_v6  ;;  %v1500_v44 = vsel %vm1428_vm13, %v1477_v47, %v1499_v32 }
  0x8f   : > { %1735 = vmatmul.bf16.gmra.mxu3 %v1478_v39  ;;  %2373 = vmatpush.bf16.msra.mxu0 %v3127_v46  ;;  %v1354_v47 = vshrl.u32 %v3800_v30, 16  ;;  %v855_v11 = vrot.slane %v3694_v35, 1  ;;  %v3098_v35 = vld [vmem:[%s4178_s2 + $0x158] sm:$0xff]  ;;  %v957_v27 = vor.u32 %v955_v51, %v945_v37 }
  0x90   : > { %v1486_v15 = vor.u32 %v1485_v10, %v1482_v13  ;;  %v765_v10 = vld [vmem:[#allocation2 + $0x2c] sm:$0x3] }
  0x91   : > { %1792 = vmatpush.bf16.msra.mxu1 %v3100_v4  ;;  %v1519_v39 = vrot.slane %v1354_v47, 1  ;;  %v845_v36 = vunpack.c.l.b16 %v765_v10  ;;  %v3108_v10 = vld [vmem:[%s4178_s2 + $0x188] sm:$0xff] }
  0x92   : > { %2303 = vmatpush.bf16.msra.mxu2 %v3113_v52  ;;  %v1487_v2 = vsel %vm1428_vm13, %v1456_v20, %v1486_v15  ;;  %v1350_v20 = vshll.u32 %v3800_v30, 16 }
  0x94   : > { %1204 = vmatmul.bf16.vlgmr.msrb.gmra.mxu1 %v926_v0  ;;  %v1352_v25 = vrot.slane %v1350_v20, 1  ;;  %v1520_v6 = vrot.slane %v1350_v20, 2  ;;  %v1308_v0 = vunpack.c.l.b16 %v1284_v38  ;;  %v1865_v38 = vld [vmem:[#allocation2 + $0xc] sm:$0x8] }
  0x95   : > { %1793 = vmatpush.bf16.msra.mxu1 %v3099_v42  ;;  %v3862_v42 = vpack.c.b16 %v845_v36, %v845_v36  ;;  %v1896_v51 = vunpack.c.l.b16 %v1865_v38 }
  0x96   : > { %2304 = vmatpush.bf16.msra.mxu2 %v3112_v28  ;;  %v1353_v7 = vsel %vm797_vm1, %v1348_v49, %v1352_v25  ;;  %v959_v28 = vshll.u32 %v3727_v12, 16  ;;  %v1314_v13 = vpack.c.b16 %v1308_v0, %v1308_v0  ;;  %v3830_v14 = vor.u32 %v1520_v6, %v1519_v39  ;;  %v3109_v49 = vld [vmem:[%s4178_s2 + $0x190] sm:$0xff] }
  0x97   : > { %v1502_v41 = vshrl.u32 %v1353_v7, 16  ;;  %v1505_v52 = vshll.u32 %v1353_v7, 16  ;;  %v1356_v63 = vor.u32 %v1354_v47, %v1352_v25  ;;  %v971_v47 = vshrl.u32 %v3727_v12, 16 }
  0x98   : > { %1769 = vmatmul.bf16.gmra.mxu0 %v1487_v2  ;;  %v961_v33 = vrot.slane %v959_v28, 1  ;;  %v3848_v2 = vsel %vm847_vm7, %v853_v18, %v855_v11  ;;  %v963_v18 = vshrl.u32 %v3743_v59, 16  ;;  %v1879_v0 = vunpack.c.h.b16 %v3646_v24 }
  0x99   : > { %v1504_v50 = vrot.slane %v1502_v41, 1  ;;  %v1507_v22 = vrot.slane %v1505_v52, 2  ;;  %1794 = vmatpush.bf16.msra.mxu1 %v3098_v35  ;;  %v967_v37 = vshll.u32 %v3848_v2, 16  ;;  %v975_v41 = vshll.u32 %v3761_v45, 16  ;;  %v3096_v35 = vld [vmem:[%s4178_s2 + $0x148] sm:$0xff] }
  0x9a   : > { %2305 = vmatpush.bf16.msra.mxu2 %v3111_v16  ;;  %v1522_v16 = vsel %vm1428_vm13, %v1499_v32, %v3830_v14  ;;  %v962_v29 = vsel %vm797_vm1, %v957_v27, %v961_v33  ;;  %v965_v46 = vor.u32 %v963_v18, %v3756_v40  ;;  %v857_v52 = vrot.slane %v3862_v42, 1  ;;  %v3912_v18 = vld [vmem:[#allocation2 + $0x1c] sm:$0xff] }
  0x9b   : > { %v1508_v55 = vor.u32 %v1507_v22, %v1504_v50  ;;  %v969_v7 = vrot.slane %v967_v37, 1  ;;  %v987_v40 = vshrl.u32 %v3761_v45, 16  ;;  %v977_v28 = vrot.slane %v975_v41, 1  ;;  %v3125_v45 = vld [vmem:[%s4178_s2 + $0x210] sm:$0xff] }
  0x9c   : > { %v973_v12 = vor.u32 %v971_v47, %v961_v33  ;;  %v1914_v41 = vshll.u32 %v3912_v18, 16 }
  0x9d   : > { %1238 = vmatmul.bf16.vlgmr.msrb.gmra.mxu2 %v3686_v3  ;;  %v3119_v3 = vld [vmem:[%s4178_s2 + $0x1e0] sm:$0xff]  ;;  %v1509_v26 = vsel %vm1428_vm13, %v1486_v15, %v1508_v55  ;;  %v1358_v15 = vshll.u32 %v1314_v13, 16  ;;  %v970_v39 = vsel %vm797_vm1, %v965_v46, %v969_v7  ;;  %v989_v27 = vor.u32 %v987_v40, %v977_v28 }
  0x9e   : > { %2339 = vmatpush.bf16.msrb.mxu3 %v3119_v3  ;;  %2306 = vmatpush.bf16.msra.mxu2 %v3110_v5  ;;  %v3892_v5 = vpack.c.b16 %v1879_v0, %v1896_v51 }
  0x9f   : > { %1740 = vmatmul.bf16.gmra.mxu3 %v1500_v44  ;;  %v1360_v4 = vrot.slane %v1358_v15, 1  ;;  %v1542_v22 = vrot.slane %v1358_v15, 2 }
  0xa1   : > { %v1361_v20 = vsel %vm797_vm1, %v1356_v63, %v1360_v4 }
  0xa2   : > { %2340 = vmatpush.bf16.msrb.mxu3 %v3118_v31  ;;  %v1524_v3 = vshrl.u32 %v1361_v20, 16  ;;  %v1527_v25 = vshll.u32 %v1361_v20, 16  ;;  %2307 = vmatpush.bf16.msra.mxu2 %v3109_v49  ;;  %v3116_v31 = vld [vmem:[%s4178_s2 + $0x1c8] sm:$0xff]  ;;  %v3900_v49 = vld [vmem:[#allocation2 + $0x14] sm:$0xff]  ;;  %v1901_v20 = vshll.u32 %v3892_v5, 16 }
  0xa4   : > { %1209 = vmatmul.bf16.gmra.mxu1 %v946_v60  ;;  %v1526_v32 = vrot.slane %v1524_v3, 1  ;;  %v1529_v44 = vrot.slane %v1527_v25, 2  ;;  %v1362_v60 = vshrl.u32 %v1314_v13, 16  ;;  %v1906_v25 = vshll.u32 %v3900_v49, 16 }
  0xa5   : > { %v1903_v46 = vrot.slane %v1901_v20, 1 }
  0xa6   : > { %2341 = vmatpush.bf16.msrb.mxu3 %v3117_v62  ;;  %v3865_v59 = vor.u32 %v1529_v44, %v1526_v32  ;;  %v1541_v50 = vrot.slane %v1362_v60, 1  ;;  %v1364_v63 = vor.u32 %v1362_v60, %v1360_v4  ;;  %2308 = vmatpush.bf16.msra.mxu2 %v3108_v10  ;;  %v3107_v62 = vld [vmem:[%s4178_s2 + $0x180] sm:$0xff]  ;;  %v1910_v32 = vshrl.u32 %v3900_v49, 16 }
  0xa7   : > { %v1899_v44 = vshrl.u32 %v3892_v5, 16 }
  0xa8   : > { %1774 = vmatmul.bf16.gmra.mxu0 %v1509_v26  ;;  %v1531_v6 = vsel %vm1428_vm13, %v1508_v55, %v3865_v59  ;;  %v3878_v26 = vsel %vm847_vm7, %v855_v11, %v857_v52  ;;  %v1543_v13 = vor.u32 %v1542_v22, %v1541_v50  ;;  %v3097_v55 = vld [vmem:[%s4178_s2 + $0x150] sm:$0xff]  ;;  %v842_v11 = vshrl.u32 %v3745_v61, 16 }
  0xa9   : > { %1795 = vmatpush.bf16.msra.mxu1 %v3097_v55  ;;  %v1546_v15 = vshrl.u32 %v1364_v63, 16  ;;  %v1549_v33 = vshll.u32 %v1364_v63, 16  ;;  %v979_v61 = vshrl.u32 %v3848_v2, 16  ;;  %v983_v4 = vshll.u32 %v3878_v26, 16 }
  0xaa   : > { %v1544_v36 = vsel %vm1428_vm13, %v3830_v14, %v1543_v13  ;;  %2342 = vmatpush.bf16.msrb.mxu3 %v3116_v31  ;;  %v978_v2 = vsel %vm797_vm1, %v973_v12, %v977_v28  ;;  %v3115_v14 = vld [vmem:[%s4178_s2 + $0x1c0] sm:$0xff]  ;;  %2309 = vmatpush.bf16.msra.mxu2 %v3107_v62  ;;  %v1908_v50 = vrot.slane %v1906_v25, 1  ;;  %v1904_v22 = vor.u32 %v1903_v46, %v1899_v44  ;;  %v1854_v44 = vld [vmem:[#allocation2 + $0xc] sm:$0xc] }
  0xab   : > { %v1548_v37 = vrot.slane %v1546_v15, 1  ;;  %v981_v47 = vor.u32 %v979_v61, %v969_v7  ;;  %v1949_v61 = vrot.slane %v3900_v49, 1  ;;  %v1371_v62 = vrot.slane %v3682_v57, 1 }
  0xac   : > { %v1912_v40 = vor.u32 %v1910_v32, %v1908_v50  ;;  %v1909_v51 = vsel %vm797_vm1, %v1904_v22, %v1908_v50  ;;  %v995_v20 = vshrl.u32 %v3878_v26, 16  ;;  %v999_v26 = vshll.u32 %v857_v52, 16 }
  0xad   : > { %1243 = vmatmul.bf16.gmra.mxu2 %v3767_v43  ;;  %v3126_v43 = vld [vmem:[%s4178_s2 + $0x218] sm:$0xff]  ;;  %1796 = vmatpush.bf16.msra.mxu1 %v3096_v35  ;;  %v2022_v28 = vshrl.u32 %v1909_v51, 16  ;;  %v2025_v13 = vshll.u32 %v1909_v51, 16 }
  0xae   : > { %2374 = vmatpush.bf16.msra.mxu0 %v3126_v43  ;;  %v991_v43 = vshll.u32 %v842_v11, 16  ;;  %2343 = vmatpush.bf16.msrb.mxu3 %v3115_v14  ;;  %v1001_v52 = vrot.slane %v999_v26, 1  ;;  %v2017_v26 = vrot.slane %v1910_v32, 2 }
  0xaf   : > { %1745 = vmatmul.bf16.gmra.mxu3 %v1522_v16  ;;  %v3124_v16 = vld [vmem:[%s4178_s2 + $0x208] sm:$0xff]  ;;  %v2024_v55 = vrot.slane %v2022_v28, 2 }
  0xb0   : > { %v993_v3 = vrot.slane %v991_v43, 1  ;;  %v1948_v43 = vrot.slane %v3892_v5, 1 }
  0xb2   : > { %2375 = vmatpush.bf16.msra.mxu0 %v3125_v45  ;;  %v3923_v60 = vsel %vm797_vm1, %v989_v27, %v993_v3  ;;  %v2027_v45 = vrot.slane %v2025_v13, 3  ;;  %v3123_v27 = vld [vmem:[%s4178_s2 + $0x200] sm:$0xff]  ;;  %v1878_v13 = vunpack.c.l.b16 %v1854_v44 }
  0xb3   : > { %v3959_v3 = vld [vmem:[#allocation2 + $0x24] sm:$0xff] }
  0xb4   : > { %1214 = vmatmul.bf16.gmra.mxu1 %v962_v29  ;;  %v1551_v29 = vrot.slane %v1549_v33, 2  ;;  %v2028_v35 = vor.u32 %v2027_v45, %v2024_v55  ;;  %v3095_v33 = vld [vmem:[%s4178_s2 + $0x140] sm:$0xff]  ;;  %v1922_v42 = vshll.u32 %v3959_v3, 16 }
  0xb5   : > { %1797 = vmatpush.bf16.msra.mxu1 %v3095_v33 }
  0xb6   : > { %2376 = vmatpush.bf16.msra.mxu0 %v3124_v16  ;;  %v1552_v38 = vor.u32 %v1551_v29, %v1548_v37  ;;  %v1369_v16 = vrot.slane %v3648_v21, 1  ;;  %v1918_v37 = vshrl.u32 %v3912_v18, 16 }
  0xb8   : > { %1779 = vmatmul.bf16.gmra.mxu0 %v1531_v6  ;;  %v985_v6 = vrot.slane %v983_v4, 1  ;;  %v1553_v63 = vsel %vm1428_vm13, %v3865_v59, %v1552_v38  ;;  %v1951_v59 = vrot.slane %v3912_v18, 1  ;;  %v1368_v4 = vrot.slane %v3680_v56, 1 }
  0xba   : > { %v986_v7 = vsel %vm797_vm1, %v981_v47, %v985_v6  ;;  %2377 = vmatpush.bf16.msra.mxu0 %v3123_v27  ;;  %v1952_v5 = vsel %vm847_vm7, %v1949_v61, %v1951_v59  ;;  %v1370_v50 = vsel %vm847_vm7, %v1368_v4, %v1369_v16  ;;  %v997_v28 = vor.u32 %v995_v20, %v985_v6 }
  0xbb   : > { %v2047_v21 = vshrl.u32 %v1952_v5, 16  ;;  %v2050_v46 = vshll.u32 %v1952_v5, 16  ;;  %v1459_v55 = vshrl.u32 %v1370_v50, 16  ;;  %v1462_v45 = vshll.u32 %v1370_v50, 16 }
  0xbc   : > { %v1889_v6 = vpack.c.b16 %v1879_v0, %v1878_v13  ;;  %v1953_v0 = vrot.slane %v3959_v3, 1  ;;  %v2018_v50 = vrot.slane %v1906_v25, 3 }
  0xbd   : > { %1248 = vmatmul.bf16.gmra.mxu2 %v970_v39  ;;  %v1916_v39 = vrot.slane %v1914_v41, 1  ;;  %v2049_v38 = vrot.slane %v2047_v21, 2  ;;  %v2052_v51 = vrot.slane %v2050_v46, 3  ;;  %v1373_v21 = vrot.slane %v3758_v19, 1  ;;  %v3986_v46 = vld [vmem:[#allocation2 + $0x2c] sm:$0xff] }
  0xbe   : > { %v2013_v5 = vshll.u32 %v1889_v6, 16  ;;  %v1954_v44 = vsel %vm847_vm7, %v1951_v59, %v1953_v0  ;;  %v1930_v32 = vshll.u32 %v3986_v46, 16 }
  0xbf   : > { %1750 = vmatmul.bf16.gmra.mxu3 %v1544_v36  ;;  %v1917_v12 = vsel %vm797_vm1, %v1912_v40, %v1916_v39  ;;  %v1372_v40 = vsel %vm847_vm7, %v1369_v16, %v1371_v62  ;;  %v1374_v49 = vsel %vm847_vm7, %v1371_v62, %v1373_v21 }
  0xc0   : > { %v2030_v10 = vshrl.u32 %v1917_v12, 16  ;;  %v2033_v11 = vshll.u32 %v1917_v12, 16  ;;  %v1920_v12 = vor.u32 %v1918_v37, %v1916_v39  ;;  %v1002_v39 = vsel %vm797_vm1, %v997_v28, %v1001_v52  ;;  %v3999_v25 = vpop.f32.mrf.mxu0 }
  0xc1   : > { %v2019_v52 = vor.u32 %v2018_v50, %v2017_v26  ;;  %v1375_v26 = vrot.slane %v3800_v30, 1 }
  0xc2   : > { %v2032_v31 = vrot.slane %v2030_v10, 2  ;;  %v2035_v15 = vrot.slane %v2033_v11, 3  ;;  %v1467_v10 = vshrl.u32 %v1372_v40, 16  ;;  %v1470_v11 = vshll.u32 %v1372_v40, 16 }
  0xc4   : > { %1219 = vmatmul.bf16.gmra.mxu1 %v978_v2  ;;  %v3947_v36 = vor.u32 %v2035_v15, %v2032_v31  ;;  %v1950_v2 = vsel %vm847_vm7, %v1948_v43, %v1949_v61  ;;  %v1924_v31 = vrot.slane %v1922_v42, 1  ;;  %v1461_v15 = vrot.slane %v1459_v55, 1 }
  0xc5   : > { %v2039_v29 = vshrl.u32 %v1950_v2, 16  ;;  %v2042_v14 = vshll.u32 %v1950_v2, 16  ;;  %v1464_v43 = vrot.slane %v1462_v45, 2  ;;  %v1469_v61 = vrot.slane %v1467_v10, 1 }
  0xc6   : > { %v2037_v56 = vsel %vm2008_vm9, %v2028_v35, %v3947_v36  ;;  %v1925_v35 = vsel %vm797_vm1, %v1920_v12, %v1924_v31  ;;  %v1472_v4 = vrot.slane %v1470_v11, 2  ;;  %v2010_v2 = vshrl.u32 %v1889_v6, 16 }
  0xc7   : > { %v2041_v22 = vrot.slane %v2039_v29, 2  ;;  %v2044_v47 = vrot.slane %v2042_v14, 3  ;;  %v2060_v33 = vshrl.u32 %v1925_v35, 16  ;;  %v2063_v27 = vshll.u32 %v1925_v35, 16 }
  0xc8   : > { %1784 = vmatmul.bf16.gmra.mxu0 %v1553_v63  ;;  %v2053_v63 = vor.u32 %v2052_v51, %v2049_v38  ;;  %v1465_v29 = vor.u32 %v1464_v43, %v1461_v15  ;;  %v1473_v14 = vor.u32 %v1472_v4, %v1469_v61  ;;  %v2072_v38 = vshll.u32 %v1954_v44, 16 }
  0xc9   : > { %v2062_v16 = vrot.slane %v2060_v33, 2  ;;  %v2065_v20 = vrot.slane %v2063_v27, 3  ;;  %v2012_v40 = vrot.slane %v2010_v2, 2  ;;  %v2015_v51 = vrot.slane %v2013_v5, 3  ;;  %v1864_v27 = vld [vmem:[#allocation2 + $0x34] sm:$0x7] }
  0xca   : > { %v1474_v28 = vsel %vm1428_vm13, %v1465_v29, %v1473_v14  ;;  %v2074_v13 = vrot.slane %v2072_v38, 3  ;;  %v1489_v55 = vshrl.u32 %v1374_v49, 16  ;;  %v1888_v43 = vunpack.c.l.b16 %v1864_v27 }
  0xcb   : > { %v2066_v24 = vor.u32 %v2065_v20, %v2062_v16  ;;  %v2016_v12 = vor.u32 %v2015_v51, %v2012_v40  ;;  %v1955_v16 = vrot.slane %v3986_v46, 1  ;;  %v2055_v2 = vrot.slane %v1918_v37, 2 }
  0xcc   : > { %v4011_v20 = vpack.c.b16 %v1888_v43, %v1888_v43  ;;  %v1376_v37 = vsel %vm847_vm7, %v1373_v21, %v1375_v26 }
  0xcd   : > { %1253 = vmatmul.bf16.gmra.mxu2 %v986_v7  ;;  %v2045_v7 = vor.u32 %v2044_v47, %v2041_v22  ;;  %v2067_v22 = vsel %vm2008_vm9, %v3947_v36, %v2066_v24  ;;  %v2069_v47 = vshrl.u32 %v1954_v44, 16  ;;  %v1932_v36 = vrot.slane %v1930_v32, 1 }
  0xce   : > { %v2020_v62 = vsel %vm2008_vm9, %v2016_v12, %v2019_v52  ;;  %v1956_v29 = vsel %vm847_vm7, %v1953_v0, %v1955_v16  ;;  %v1934_v44 = vshrl.u32 %v3986_v46, 16  ;;  %v1938_v50 = vshll.u32 %v4011_v20, 16 }
  0xcf   : > { %2344 = vmatmul.bf16.vlgmr.msrb.gmra.mxu3 %v2037_v56  ;;  %v1926_v56 = vshrl.u32 %v3959_v3, 16  ;;  %v2071_v59 = vrot.slane %v2069_v47, 2  ;;  %v2091_v47 = vshrl.u32 %v1956_v29, 16  ;;  %v2094_v38 = vshll.u32 %v1956_v29, 16 }
  0xd0   : > { %v1936_v18 = vor.u32 %v1934_v44, %v1932_v36 }
  0xd1   : > { %v1928_v19 = vor.u32 %v1926_v56, %v1924_v31  ;;  %v2075_v10 = vor.u32 %v2074_v13, %v2071_v59  ;;  %v2096_v0 = vrot.slane %v2094_v38, 3 }
  0xd3   : > { %v1933_v45 = vsel %vm797_vm1, %v1928_v19, %v1932_v36  ;;  %v2076_v35 = vsel %vm2008_vm9, %v2053_v63, %v2075_v10  ;;  %v1511_v19 = vshrl.u32 %v1376_v37, 16 }
  0xd4   : > { %1224 = vmatmul.bf16.gmra.mxu1 %v3923_v60  ;;  %v2054_v60 = vsel %vm2008_vm9, %v2045_v7, %v2053_v63  ;;  %v1492_v7 = vshll.u32 %v1374_v49, 16  ;;  %v2082_v11 = vshrl.u32 %v1933_v45, 16  ;;  %v2085_v31 = vshll.u32 %v1933_v45, 16 }
  0xd5   : > { %v2056_v63 = vrot.slane %v1914_v41, 3  ;;  %v1940_v41 = vrot.slane %v1938_v50, 1  ;;  %v1513_v45 = vrot.slane %v1511_v19, 1 }
  0xd6   : > { %v2084_v6 = vrot.slane %v2082_v11, 2  ;;  %v2087_v57 = vrot.slane %v2085_v31, 3  ;;  %v1494_v15 = vrot.slane %v1492_v7, 2  ;;  %v1866_v11 = vld [vmem:[#allocation2 + $0x34] sm:$0xf] }
  0xd7   : > { %v2057_v30 = vor.u32 %v2056_v63, %v2055_v2  ;;  %v1941_v40 = vsel %vm797_vm1, %v1936_v18, %v1940_v41  ;;  %v1946_v31 = vunpack.c.l.b16 %v1866_v11 }
  0xd8   : > { %2378 = vmatmul.bf16.vlgmr.msra.gmra.mxu0 %v2054_v60  ;;  %v2088_v33 = vor.u32 %v2087_v57, %v2084_v6  ;;  %v4006_v60 = vpop.f32.mrf.mxu0  ;;  %v2104_v59 = vshrl.u32 %v1941_v40, 16  ;;  %v2107_v13 = vshll.u32 %v1941_v40, 16  ;;  %v1286_v57 = vld [vmem:[#allocation2 + $0x30] sm:$0x7] }
  0xd9   : > { %v2058_v12 = vsel %vm2008_vm9, %v2019_v52, %v2057_v30  ;;  %v2077_v52 = vrot.slane %v1926_v56, 2 }
  0xda   : > { %v2089_v5 = vsel %vm2008_vm9, %v2066_v24, %v2088_v33  ;;  %v2093_v24 = vrot.slane %v2091_v47, 2  ;;  %v2106_v49 = vrot.slane %v2104_v59, 2  ;;  %v2109_v36 = vrot.slane %v2107_v13, 3 }
  0xdc   : > { %v2110_v6 = vor.u32 %v2109_v36, %v2106_v49 }
  0xdd   : > { %1258 = vmatmul.bf16.gmra.mxu2 %v1002_v39  ;;  %v1491_v39 = vrot.slane %v1489_v55, 1 }
  0xde   : > { %v2111_v43 = vsel %vm2008_vm9, %v2088_v33, %v2110_v6 }
  0xdf   : > { %2349 = vmatmul.bf16.gmra.mxu3 %v2067_v22  ;;  %v1495_v4 = vor.u32 %v1494_v15, %v1491_v39 }
  0xe1   : > { %v1496_v22 = vsel %vm1428_vm13, %v1473_v14, %v1495_v4  ;;  %v2097_v14 = vor.u32 %v2096_v0, %v2093_v24 }
  0xe3   : > { %v2098_v55 = vsel %vm2008_vm9, %v2075_v10, %v2097_v14  ;;  %v2078_v10 = vrot.slane %v1922_v42, 3 }
  0xe4   : > { %1798 = vmatmul.bf16.vlgmr.msra.gmra.mxu1 %v1474_v28  ;;  %v1514_v28 = vshll.u32 %v1376_v37, 16  ;;  %v1942_v37 = vshrl.u32 %v4011_v20, 16 }
  0xe5   : > { %v2079_v42 = vor.u32 %v2078_v10, %v2077_v52 }
  0xe6   : > { %v1516_v7 = vrot.slane %v1514_v28, 2  ;;  %v1944_v3 = vor.u32 %v1942_v37, %v1940_v41 }
  0xe7   : > { %v4008_v61 = vpop.f32.mrf.mxu1  ;;  %v2080_v13 = vsel %vm2008_vm9, %v2057_v30, %v2079_v42  ;;  %v2099_v30 = vrot.slane %v1934_v44, 2 }
  0xe8   : > { %2383 = vmatmul.bf16.gmra.mxu0 %v2076_v35  ;;  %v1366_v35 = vunpack.c.l.b16 %v1286_v57  ;;  %v1517_v39 = vor.u32 %v1516_v7, %v1513_v45  ;;  %v2126_v19 = vshrl.u32 %v1944_v3, 16 }
  0xea   : > { %v1367_v27 = vpack.c.b16 %v1366_v35, %v1366_v35  ;;  %v2128_v28 = vrot.slane %v2126_v19, 2 }
  0xed   : > { %2310 = vmatmul.bf16.vlgmr.msra.gmra.mxu2 %v2020_v62  ;;  %v1947_v62 = vpack.c.b16 %v1946_v31, %v1946_v31 }
  0xee   : > { %v4029_v51 = vpop.f32.mrf.mxu0 }
  0xef   : > { %2354 = vmatmul.bf16.gmra.mxu3 %v2089_v5  ;;  %v4031_v21 = vpop.f32.mrf.mxu1  ;;  %v1957_v15 = vrot.slane %v1947_v62, 1  ;;  %v1377_v5 = vrot.slane %v1367_v27, 1  ;;  %v2100_v62 = vrot.slane %v1930_v32, 3 }
  0xf1   : > { %v1958_v63 = vsel %vm847_vm7, %v1955_v16, %v1957_v15  ;;  %v1378_v33 = vsel %vm847_vm7, %v1375_v26, %v1377_v5  ;;  %v2138_v52 = vshll.u32 %v1957_v15, 16  ;;  %v1558_v46 = vshll.u32 %v1377_v5, 16 }
  0xf2   : > { %v2113_v47 = vshrl.u32 %v1958_v63, 16  ;;  %v2116_v38 = vshll.u32 %v1958_v63, 16  ;;  %v1533_v0 = vshrl.u32 %v1378_v33, 16  ;;  %v1536_v40 = vshll.u32 %v1378_v33, 16 }
  0xf3   : > { %v1555_v33 = vshrl.u32 %v1377_v5, 16 }
  0xf4   : > { %1803 = vmatmul.bf16.gmra.mxu1 %v1496_v22  ;;  %v1518_v22 = vsel %vm1428_vm13, %v1495_v4, %v1517_v39  ;;  %v2115_v18 = vrot.slane %v2113_v47, 2  ;;  %v2118_v24 = vrot.slane %v2116_v38, 3  ;;  %v2129_v4 = vshll.u32 %v1944_v3, 16 }
  0xf5   : > { %v2140_v47 = vrot.slane %v2138_v52, 3  ;;  %v1560_v3 = vrot.slane %v1558_v46, 2 }
  0xf6   : > { %v4036_v2 = vpop.f32.mrf.mxu0  ;;  %v2119_v16 = vor.u32 %v2118_v24, %v2115_v18  ;;  %v2131_v59 = vrot.slane %v2129_v4, 3 }
  0xf8   : > { %2388 = vmatmul.bf16.gmra.mxu0 %v2098_v55  ;;  %v2120_v36 = vsel %vm2008_vm9, %v2097_v14, %v2119_v16  ;;  %v1538_v55 = vrot.slane %v1536_v40, 2  ;;  %v2132_v41 = vor.u32 %v2131_v59, %v2128_v28  ;;  %v2122_v28 = vrot.slane %v1938_v50, 3 }
  0xfa   : > { %v2133_v57 = vsel %vm2008_vm9, %v2110_v6, %v2132_v41  ;;  %v2101_v6 = vor.u32 %v2100_v62, %v2099_v30 }
  0xfd   : > { %2315 = vmatmul.bf16.gmra.mxu2 %v2058_v12  ;;  %v1535_v12 = vrot.slane %v1533_v0, 1 }
  0xff   : > { %2359 = vmatmul.bf16.gmra.mxu3 %v2111_v43  ;;  %v1539_v11 = vor.u32 %v1538_v55, %v1535_v12  ;;  %v2135_v43 = vshrl.u32 %v1957_v15, 16 }
 0x101   : > { %v4043_v29 = vpop.f32.mrf.mxu1  ;;  %v1540_v35 = vsel %vm1428_vm13, %v1517_v39, %v1539_v11  ;;  %v2102_v39 = vsel %vm2008_vm9, %v2079_v42, %v2101_v6  ;;  %v2121_v42 = vrot.slane %v1942_v37, 2 }
 0x102   : > { %v1731_v56 = vpop.f32.mrf.mxu3 }
 0x104   : > { %1808 = vmatmul.bf16.gmra.mxu1 %v1518_v22  ;;  %v2137_v22 = vrot.slane %v2135_v43, 2 }
 0x105   : > { %v1765_v26 = vpop.f32.mrf.mxu0 }
 0x106   : > { %v4054_v45 = vadd.f32 %v1765_v26, %v1731_v56  ;;  %v2141_v44 = vor.u32 %v2140_v47, %v2137_v22 }
 0x108   : > { %2393 = vmatmul.bf16.gmra.mxu0 %v2120_v36  ;;  %v2142_v15 = vsel %vm2008_vm9, %v2119_v16, %v2141_v44  ;;  %v2123_v36 = vor.u32 %v2122_v28, %v2121_v42 }
 0x109   : > { %v4051_v49 = vpop.f32.mrf.mxu1 }
 0x10a   : > { %v1733_v7 = vpop.f32.mrf.mxu3 }
 0x10d   : > { %2320 = vmatmul.bf16.gmra.mxu2 %v2080_v13  ;;  %v1767_v27 = vpop.f32.mrf.mxu0 }
 0x10e   : > { %v4065_v63 = vadd.f32 %v1767_v27, %v1733_v7  ;;  %v2124_v7 = vsel %vm2008_vm9, %v2101_v6, %v2123_v36 }
 0x10f   : > { %2364 = vmatmul.bf16.gmra.mxu3 %v2133_v57 }
 0x110   : > { %v4056_v31 = vpop.f32.mrf.mxu2 }
 0x111   : > { %v1205_v14 = vpop.f32.mrf.mxu1 }
 0x112   : > { %v1206_v10 = vadd.f32 %v1205_v14, %v3999_v25  ;;  %v1736_v38 = vpop.f32.mrf.mxu3  ;;  %v1557_v25 = vrot.slane %v1555_v33, 1 }
 0x114   : > { %1813 = vmatmul.bf16.gmra.mxu1 %v1540_v35  ;;  %v1561_v19 = vor.u32 %v1560_v3, %v1557_v25 }
 0x115   : > { %v1770_v24 = vpop.f32.mrf.mxu0 }
 0x116   : > { %v4072_v0 = vadd.f32 %v1770_v24, %v1736_v38  ;;  %v1562_v59 = vsel %vm1428_vm13, %v1539_v11, %v1561_v19 }
 0x118   : > { %v4067_v32 = vpop.f32.mrf.mxu2  ;;  %2398 = vmatmul.bf16.gmra.mxu0 %v2142_v15 }
 0x119   : > { %v1207_v18 = vpop.f32.mrf.mxu1 }
 0x11a   : > { %v1208_v56 = vadd.f32 %v1207_v18, %v4006_v60  ;;  %v1738_v40 = vpop.f32.mrf.mxu3 }
 0x11d   : > { %2325 = vmatmul.bf16.gmra.mxu2 %v2102_v39  ;;  %v1772_v13 = vpop.f32.mrf.mxu0 }
 0x11e   : > { %v4082_v26 = vadd.f32 %v1772_v13, %v1738_v40 }
 0x120   : > { %v1239_v4 = vpop.f32.mrf.mxu2 }
 0x121   : > { %v4074_v5 = vadd.f32 %v1239_v4, %v1206_v10  ;;  %v1210_v16 = vpop.f32.mrf.mxu1 }
 0x122   : > { %v1211_v60 = vadd.f32 %v1210_v16, %v4029_v51  ;;  %v1741_v12 = vpop.f32.mrf.mxu3 }
 0x124   : > { %1818 = vmatmul.bf16.gmra.mxu1 %v1562_v59 }
 0x125   : > { %v1775_v37 = vpop.f32.mrf.mxu0 }
 0x126   : > { %v4086_v50 = vadd.f32 %v1775_v37, %v1741_v12 }
 0x128   : > { %v1241_v55 = vpop.f32.mrf.mxu2 }
 0x129   : > { %v1242_v41 = vadd.f32 %v1241_v55, %v1208_v56  ;;  %v1212_v57 = vpop.f32.mrf.mxu1 }
 0x12a   : > { %v1213_v20 = vadd.f32 %v1212_v57, %v4036_v2  ;;  %v1743_v11 = vpop.f32.mrf.mxu3 }
 0x12d   : > { %2330 = vmatmul.bf16.gmra.mxu2 %v2124_v7  ;;  %v1777_v14 = vpop.f32.mrf.mxu0 }
 0x12e   : > { %v4088_v35 = vadd.f32 %v1777_v14, %v1743_v11 }
 0x130   : > { %v1244_v30 = vpop.f32.mrf.mxu2 }
 0x131   : > { %v1245_v62 = vadd.f32 %v1244_v30, %v1211_v60  ;;  %v1215_v51 = vpop.f32.mrf.mxu1 }
 0x132   : > { %v1746_v27 = vpop.f32.mrf.mxu3  ;;  %v1216_v2 = vadd.f32 %v1215_v51, %v4008_v61 }
 0x135   : > { %v1780_v22 = vpop.f32.mrf.mxu0 }
 0x136   : > { %v4093_v6 = vadd.f32 %v1780_v22, %v1746_v27 }
 0x138   : > { %v1246_v43 = vpop.f32.mrf.mxu2 }
 0x139   : > { %v4090_v52 = vadd.f32 %v1246_v43, %v1213_v20  ;;  %v1217_v10 = vpop.f32.mrf.mxu1 }
 0x13a   : > { %v1218_v47 = vadd.f32 %v1217_v10, %v4031_v21  ;;  %v1748_v38 = vpop.f32.mrf.mxu3 }
 0x13d   : > { %v1782_v39 = vpop.f32.mrf.mxu0 }
 0x13e   : > { %v4099_v24 = vadd.f32 %v1782_v39, %v1748_v38 }
 0x140   : > { %v1249_v44 = vpop.f32.mrf.mxu2 }
 0x141   : > { %v4096_v33 = vadd.f32 %v1249_v44, %v1216_v2  ;;  %v1220_v46 = vpop.f32.mrf.mxu1 }
 0x142   : > { %v1221_v18 = vadd.f32 %v1220_v46, %v4043_v29  ;;  %v1751_v15 = vpop.f32.mrf.mxu3 }
 0x145   : > { %v1785_v21 = vpop.f32.mrf.mxu0 }
 0x146   : > { %v4104_v19 = vadd.f32 %v1785_v21, %v1751_v15 }
 0x148   : > { %v1251_v25 = vpop.f32.mrf.mxu2 }
 0x149   : > { %v4101_v3 = vadd.f32 %v1251_v25, %v1218_v47  ;;  %v1222_v56 = vpop.f32.mrf.mxu1 }
 0x14a   : > { %v1223_v40 = vadd.f32 %v1222_v56, %v4051_v49  ;;  %v1753_v42 = vpop.f32.mrf.mxu3 }
 0x14d   : > { %v1787_v16 = vpop.f32.mrf.mxu0 }
 0x14e   : > { %v4109_v59 = vadd.f32 %v1787_v16, %v1753_v42 }
 0x150   : > { %v1254_v61 = vpop.f32.mrf.mxu2 }
 0x151   : > { %v4106_v4 = vadd.f32 %v1254_v61, %v1221_v18  ;;  %v1225_v28 = vpop.f32.mrf.mxu1 }
 0x152   : > { %v1226_v29 = vadd.f32 %v1225_v28, %v4056_v31  ;;  %v2345_v55 = vpop.f32.mrf.mxu3 }
 0x155   : > { %v2379_v49 = vpop.f32.mrf.mxu0 }
 0x158   : > { %v1256_v13 = vpop.f32.mrf.mxu2 }
 0x159   : > { %v4111_v60 = vadd.f32 %v1256_v13, %v1223_v40  ;;  %v1227_v36 = vpop.f32.mrf.mxu1 }
 0x15a   : > { %v1228_v12 = vadd.f32 %v1227_v36, %v4067_v32  ;;  %v2347_v30 = vpop.f32.mrf.mxu3 }
 0x15d   : > { %v2381_v51 = vpop.f32.mrf.mxu0 }
 0x160   : > { %v1259_v7 = vpop.f32.mrf.mxu2 }
 0x161   : > { %v4114_v57 = vadd.f32 %v1259_v7, %v1226_v29  ;;  %v1799_v37 = vpop.f32.mrf.mxu1 }
 0x162   : > { %v1800_v20 = vadd.f32 %v1799_v37, %v4054_v45  ;;  %v2350_v22 = vpop.f32.mrf.mxu3 }
 0x164   : > { %v1834_v11 = vadd.f32 %v1800_v20, %v4074_v5 }
 0x165   : > { %v2384_v2 = vpop.f32.mrf.mxu0 }
 0x168   : > { %v1261_v31 = vpop.f32.mrf.mxu2 }
 0x169   : > { %v4118_v14 = vadd.f32 %v1261_v31, %v1228_v12  ;;  %v1801_v27 = vpop.f32.mrf.mxu1 }
 0x16a   : > { %v1802_v43 = vadd.f32 %v1801_v27, %v4065_v63  ;;  %v2352_v15 = vpop.f32.mrf.mxu3 }
 0x16c   : > { %v1835_v10 = vadd.f32 %v1802_v43, %v1242_v41 }
 0x16d   : > { %v2386_v63 = vpop.f32.mrf.mxu0 }
 0x170   : > { %v2311_v32 = vpop.f32.mrf.mxu2 }
 0x171   : > { %v2346_v47 = vadd.f32 %v2345_v55, %v2311_v32  ;;  %v1804_v38 = vpop.f32.mrf.mxu1 }
 0x172   : > { %v1805_v44 = vadd.f32 %v1804_v38, %v4072_v0  ;;  %v2355_v12 = vpop.f32.mrf.mxu3 }
 0x173   : > { %v2380_v45 = vadd.f32 %v2379_v49, %v2346_v47 }
 0x174   : > { %v1836_v46 = vadd.f32 %v1805_v44, %v1245_v62 }
 0x175   : > { %v2414_v39 = vadd.f32 %v2380_v45, %v1834_v11  ;;  %v2389_v7 = vpop.f32.mrf.mxu0 }
 0x177   : > { %v2464_v41 = vsel %vm3399_vm0, %v2414_v39, 0.0  ;;  %vm2514_vm0 = vcmask 1040384  }
 0x178   : > { %v2313_v5 = vpop.f32.mrf.mxu2  ;;  %v2489_v42 = vmul.f32 %v2464_v41, %v2464_v41 }
 0x179   : > { %v2348_v18 = vadd.f32 %v2347_v30, %v2313_v5  ;;  %v1806_v25 = vpop.f32.mrf.mxu1 }
 0x17a   : > { %v1807_v21 = vadd.f32 %v1806_v25, %v4082_v26  ;;  %v2357_v32 = vpop.f32.mrf.mxu3 }
 0x17b   : > { %v2382_v56 = vadd.f32 %v2381_v51, %v2348_v18 }
 0x17c   : > { %v1837_v61 = vadd.f32 %v1807_v21, %v4090_v52 }
 0x17d   : > { %v2415_v40 = vadd.f32 %v2382_v56, %v1835_v10  ;;  %v2391_v38 = vpop.f32.mrf.mxu0 }
 0x17f   : > { %v3154_v0 = vpack.c.bf16 %v2415_v40, %v2414_v39  ;;  %v2465_v62 = vsel %vm3408_vm6, %v2415_v40, 0.0  ;;  %vm4204_vm6 = vcmask 1041408  }
 0x180   : > { %v2474_v26 = vadd.f32 %v2465_v62, %v2464_v41  ;;  %v2490_v28 = vmul.f32 %v2465_v62, %v2465_v62  ;;  %v2316_v16 = vpop.f32.mrf.mxu2 }
 0x181   : > { %3155 = vst [vmem:[%s4131_s7] sm:$0xff] %v3154_v0   ;;  %v2351_v48 = vadd.f32 %v2350_v22, %v2316_v16  ;;  %v1809_v13 = vpop.f32.mrf.mxu1 }
 0x182   : > { %v2499_v29 = vadd.f32 %v2490_v28, %v2489_v42  ;;  %v1810_v36 = vadd.f32 %v1809_v13, %v4086_v50  ;;  %v2360_v56 = vpop.f32.mrf.mxu3 }
 0x183   : > { %v2385_v52 = vadd.f32 %v2384_v2, %v2351_v48 }
 0x184   : > { %v1838_v49 = vadd.f32 %v1810_v36, %v4096_v33 }
 0x185   : > { %v2416_v55 = vadd.f32 %v2385_v52, %v1836_v46  ;;  %v2394_v41 = vpop.f32.mrf.mxu0 }
 0x187   : > { %v2466_v58 = vsel %vm3421_vm12, %v2416_v55, 0.0 }
 0x188   : > { %v2475_v37 = vadd.f32 %v2474_v26, %v2466_v58  ;;  %v2491_v20 = vmul.f32 %v2466_v58, %v2466_v58  ;;  %v2318_v11 = vpop.f32.mrf.mxu2 }
 0x189   : > { %v2353_v30 = vadd.f32 %v2352_v15, %v2318_v11  ;;  %v1811_v51 = vpop.f32.mrf.mxu1 }
 0x18a   : > { %v2500_v31 = vadd.f32 %v2499_v29, %v2491_v20  ;;  %v1812_v43 = vadd.f32 %v1811_v51, %v4088_v35  ;;  %v2362_v29 = vpop.f32.mrf.mxu3 }
 0x18b   : > { %v2387_v27 = vadd.f32 %v2386_v63, %v2353_v30 }
 0x18c   : > { %v1839_v50 = vadd.f32 %v1812_v43, %v4101_v3 }
 0x18d   : > { %v2417_v10 = vadd.f32 %v2387_v27, %v1837_v61 }
 0x18f   : > { %v3159_v22 = vpack.c.bf16 %v2417_v10, %v2416_v55  ;;  %v2467_v33 = vsel %vm3486_vm5, %v2417_v10, 0.0 }
 0x190   : > { %v2476_v1 = vadd.f32 %v2475_v37, %v2467_v33  ;;  %v2492_v47 = vmul.f32 %v2467_v33, %v2467_v33  ;;  %v2321_v2 = vpop.f32.mrf.mxu2 }
 0x191   : > { %3180 = vst [vmem:[%s4131_s7 + $0x8] sm:$0xff] %v3159_v22   ;;  %v2356_v44 = vadd.f32 %v2355_v12, %v2321_v2  ;;  %v1814_v46 = vpop.f32.mrf.mxu1  ;;  %v2396_v12 = vpop.f32.mrf.mxu0 }
 0x192   : > { %v2501_v45 = vadd.f32 %v2500_v31, %v2492_v47  ;;  %v1815_v39 = vadd.f32 %v1814_v46, %v4093_v6  ;;  %v2365_v31 = vpop.f32.mrf.mxu3 }
 0x193   : > { %v2390_v5 = vadd.f32 %v2389_v7, %v2356_v44 }
 0x194   : > { %v1840_v18 = vadd.f32 %v1815_v39, %v4106_v4 }
 0x195   : > { %v2418_v35 = vadd.f32 %v2390_v5, %v1838_v49 }
 0x197   : > { %v2468_v3 = vsel %vm3494_vm11, %v2418_v35, 0.0 }
 0x198   : > { %v2477_v15 = vadd.f32 %v2476_v1, %v2468_v3  ;;  %v2493_v8 = vmul.f32 %v2468_v3, %v2468_v3  ;;  %v2323_v25 = vpop.f32.mrf.mxu2 }
 0x199   : > { %v2358_v21 = vadd.f32 %v2357_v32, %v2323_v25  ;;  %v1816_v40 = vpop.f32.mrf.mxu1  ;;  %v2399_v27 = vpop.f32.mrf.mxu0 }
 0x19a   : > { %v2502_v63 = vadd.f32 %v2501_v45, %v2493_v8  ;;  %v1817_v0 = vadd.f32 %v1816_v40, %v4099_v24  ;;  %v2367_v47 = vpop.f32.mrf.mxu3 }
 0x19b   : > { %v2392_v61 = vadd.f32 %v2391_v38, %v2358_v21 }
 0x19c   : > { %v1841_v6 = vadd.f32 %v1817_v0, %v4111_v60 }
 0x19d   : > { %v2419_v62 = vadd.f32 %v2392_v61, %v1839_v50 }
 0x19f   : > { %v3164_v42 = vpack.c.bf16 %v2419_v62, %v2418_v35  ;;  %v2469_v9 = vsel %vm3510_vm15, %v2419_v62, 0.0 }
 0x1a0   : > { %v2478_v4 = vadd.f32 %v2477_v15, %v2469_v9  ;;  %v2494_v26 = vmul.f32 %v2469_v9, %v2469_v9  ;;  %v2326_v28 = vpop.f32.mrf.mxu2 }
 0x1a1   : > { %3181 = vst [vmem:[%s4131_s7 + $0x10] sm:$0xff] %v3164_v42   ;;  %v2361_v16 = vadd.f32 %v2360_v56, %v2326_v28  ;;  %v1819_v13 = vpop.f32.mrf.mxu1  ;;  %v2401_v44 = vpop.f32.mrf.mxu0 }
 0x1a2   : > { %v2503_v48 = vadd.f32 %v2502_v63, %v2494_v26  ;;  %v1820_v36 = vadd.f32 %v1819_v13, %v4104_v19 }
 0x1a3   : > { %v2395_v52 = vadd.f32 %v2394_v41, %v2361_v16 }
 0x1a4   : > { %v1842_v55 = vadd.f32 %v1820_v36, %v4114_v57 }
 0x1a5   : > { %v2420_v24 = vadd.f32 %v2395_v52, %v1840_v18 }
 0x1a7   : > { %v2470_v60 = vsel %vm3524_vm14, %v2420_v24, 0.0 }
 0x1a8   : > { %v2479_v23 = vadd.f32 %v2478_v4, %v2470_v60  ;;  %v2495_v49 = vmul.f32 %v2470_v60, %v2470_v60  ;;  %v2328_v7 = vpop.f32.mrf.mxu2 }
 0x1a9   : > { %v2363_v58 = vadd.f32 %v2362_v29, %v2328_v7  ;;  %v1821_v20 = vpop.f32.mrf.mxu1 }
 0x1aa   : > { %v2504_v37 = vadd.f32 %v2503_v48, %v2495_v49  ;;  %v1822_v30 = vadd.f32 %v1821_v20, %v4109_v59 }
 0x1ab   : > { %v2397_v11 = vadd.f32 %v2396_v12, %v2363_v58 }
 0x1ac   : > { %v1843_v19 = vadd.f32 %v1822_v30, %v4118_v14 }
 0x1ad   : > { %v2421_v51 = vadd.f32 %v2397_v11, %v1841_v6 }
 0x1af   : > { %v3169_v43 = vpack.c.bf16 %v2421_v51, %v2420_v24  ;;  %v2471_v53 = vsel %vm3575_vm4, %v2421_v51, 0.0 }
 0x1b0   : > { %v2480_v57 = vadd.f32 %v2479_v23, %v2471_v53  ;;  %v2496_v10 = vmul.f32 %v2471_v53, %v2471_v53  ;;  %v2331_v50 = vpop.f32.mrf.mxu2 }
 0x1b1   : > { %3182 = vst [vmem:[%s4131_s7 + $0x18] sm:$0xff] %v3169_v43   ;;  %v2366_v32 = vadd.f32 %v2365_v31, %v2331_v50 }
 0x1b2   : > { %v2505_v22 = vadd.f32 %v2504_v37, %v2496_v10 }
 0x1b3   : > { %v2400_v33 = vadd.f32 %v2399_v27, %v2366_v32 }
 0x1b5   : > { %v2422_v1 = vadd.f32 %v2400_v33, %v1842_v55 }
 0x1b7   : > { %v2472_v59 = vsel %vm3608_vm3, %v2422_v1, 0.0 }
 0x1b8   : > { %v2481_v2 = vadd.f32 %v2480_v57, %v2472_v59  ;;  %v2497_v14 = vmul.f32 %v2472_v59, %v2472_v59  ;;  %v2333_v38 = vpop.f32.mrf.mxu2 }
 0x1b9   : > { %v2368_v45 = vadd.f32 %v2367_v47, %v2333_v38 }
 0x1ba   : > { %v2506_v34 = vadd.f32 %v2505_v22, %v2497_v14 }
 0x1bb   : > { %v2402_v46 = vadd.f32 %v2401_v44, %v2368_v45 }
 0x1bd   : > { %v2423_v5 = vadd.f32 %v2402_v46, %v1843_v19 }
 0x1bf   : > { %v3174_v39 = vpack.c.bf16 %v2423_v5, %v2422_v1  ;;  %v2473_v35 = vsel %vm3639_vm8, %v2423_v5, 0.0 }
 0x1c0   : > { %v2482_v18 = vadd.f32 %v2481_v2, %v2473_v35  ;;  %v2498_v3 = vmul.f32 %v2473_v35, %v2473_v35 }
 0x1c1   : > { %3183 = vst [vmem:[%s4131_s7 + $0x20] sm:$0xff] %v3174_v39  }
 0x1c2   : > { %v2483_v15 = vrot.slane %v2482_v18, 4  ;;  %v2507_v8 = vadd.f32 %v2506_v34, %v2498_v3 }
 0x1c4   : > { %v2484_v54 = vadd.f32 %v2483_v15, %v2482_v18  ;;  %v2508_v25 = vrot.slane %v2507_v8, 4 }
 0x1c6   : > { %v2485_v56 = vrot.slane %v2484_v54, 2  ;;  %v2509_v21 = vadd.f32 %v2508_v25, %v2507_v8 }
 0x1c8   : > { %v2486_v63 = vadd.f32 %v2485_v56, %v2484_v54  ;;  %v2510_v41 = vrot.slane %v2509_v21, 2 }
 0x1ca   : > { %v2487_v40 = vrot.slane %v2486_v63, 1  ;;  %v2511_v61 = vadd.f32 %v2510_v41, %v2509_v21 }
 0x1cc   : > { %v2512_v0 = vrot.slane %v2511_v61, 1  ;;  %v2488_v62 = vadd.f32 %v2487_v40, %v2486_v63 }
 0x1ce   : > { %v2513_v6 = vadd.f32 %v2512_v0, %v2511_v61 }
 0x1d0   : > { %v2515_v17 = vsel %vm2514_vm0, %v2488_v62, %v2513_v6 }
 0x1d1   : > { %v2517_v42 = vsel %vm4204_vm6, %v2515_v17, 0.0 }
 0x1d2   : > { %2518 = vst [vmem:[%s208_s11] sm:$0xff] %v2517_v42 }
 0x1d3 PF: > { %s15_s15 = sadd.s32 1, %s3221_s15  }
 0x1d4   : > { %p12_p4 = scmp.ge.s32.totalorder %s15_s15, 4  }
 0x1d6   :  { %14 = sbr.rel (!%p12_p4) target bundleno = 1 (0x1), region = 76 }

// kernel: basic_block_forward.3
= control target key start
LH: loop header
LB: loop body
LE: loop exit
PB: predicated region body
PF: predicated region fallthrough
CT: control target
= control target key end

     0   :  { %s3590_s18 = smov 0   ;;  %s4463_s0 = inlined_call_operand.vmem [shape: bf16[2,100,512], index: 0, kind: input, shape index: {}]   ;;  %s4464_s1 = inlined_call_operand.vmem [shape: bf16[4,512,128], index: 1, kind: input, shape index: {}]   ;;  %s4465_s2 = inlined_call_operand.vmem [shape: bf16[128,128], index: 2, kind: input, shape index: {}]   ;;  %s4466_s3 = inlined_call_operand.vmem [shape: bf16[2,80,128], index: 3, kind: output, shape index: {0}]   ;;  %s4467_s4 = inlined_call_operand.vmem [shape: f32[2,8,128], index: 4, kind: output, shape index: {1}]   ;;  %s4468_s5 = inlined_call_operand.vmem [shape: bf16[2,80,128], index: 5, kind: output, shape index: {2}]  }
   0x1 LB: > { %s2725_s19 = sadd.s32 4294967295, %s3557_s18   ;;  %p2729_p0 = scmp.ge.s32.totalorder %s3557_s18, 1  ;;  %s3557_s18 = sphi %s3590_s18, %s16_s18  }
   0x2   : > { %p192_p1 = scmp.lt.s32.totalorder %s3557_s18, 3 }
   0x4   : > { %p193_p2 = pnand %p2729_p0, %p192_p1 }
   0x5   : > { %p229_p3 = scmp.lt.s32.totalorder (!%p193_p2), %s2725_s19, 1 }
   0x6   : > { %196 = sbr.rel (%p193_p2) target bundleno = 406 (0x196), region = 32 }
   0xb   : > { %v3363_v0 = vld [vmem:[%s4464_s1 + $0x38] sm:$0xff]  ;;  %v3362_v2 = vld [vmem:[%s4464_s1 + $0x30] sm:$0xff]  ;;  %s4490_s19 = smov (!%p229_p3, %s2725_s19), 1  ;;  %v3361_v4 = vld [vmem:[%s4464_s1 + $0x28] sm:$0xff]  ;;  %vm424_vm0 = vsmask.f32 7424 }
   0xc   : > { %v3371_v1 = vld [vmem:[%s4464_s1 + $0x78] sm:$0xff]  ;;  %3524 = vmatpush.bf16.msra.mxu2 %v3363_v0  ;;  %v3370_v3 = vld [vmem:[%s4464_s1 + $0x70] sm:$0xff]  ;;  %813 = vmatpush.bf16.msra.mxu0 %v3363_v0  ;;  %s3540_s28 = smul.u32 208, %s4490_s19  ;;  %v3369_v5 = vld [vmem:[%s4464_s1 + $0x68] sm:$0xff]  ;;  %vm1048_vm1 = vcmask 1046528   ;;  %vm1731_vm2 = vcmask 1045504  }
   0xd   : > { %847 = vmatpush.bf16.msra.mxu1 %v3371_v1  ;;  %3532 = vmatpush.bf16.msra.mxu3 %v3371_v1  ;;  %v3360_v6 = vld [vmem:[%s4464_s1 + $0x20] sm:$0xff]  ;;  %v3359_v14 = vld [vmem:[%s4464_s1 + $0x18] sm:$0xff]  ;;  %v3358_v30 = vld [vmem:[%s4464_s1 + $0x10] sm:$0xff]  ;;  %vm1364_vm3 = vsmask.f32 6400  ;;  %s2732_s11 = sshll.u32 %s4490_s19, 3 }
   0xe   : > { %s3622_s10 = scalar_lea.vmem %s4463_s0, %s3540_s28  ;;  %v3368_v7 = vld [vmem:[%s4464_s1 + $0x60] sm:$0xff]  ;;  %v3367_v15 = vld [vmem:[%s4464_s1 + $0x58] sm:$0xff]  ;;  %v3366_v31 = vld [vmem:[%s4464_s1 + $0x50] sm:$0xff]  ;;  %s242_s14 = scalar_lea.vmem %s4467_s4, %s2732_s11 }
   0xf   : > { %v2768_v8 = vld [vmem:[%s3622_s10 + $0x50] sm:$0xf]  ;;  %v3346_v9 = vld [vmem:[%s3622_s10 + $0x5c] sm:$0xf0]  ;;  %v3336_v10 = vld [vmem:[%s3622_s10 + $0x14] sm:$0xf] }
  0x10   : > { %3525 = vmatpush.bf16.msra.mxu2 %v3362_v2  ;;  %814 = vmatpush.bf16.msra.mxu0 %v3362_v2  ;;  %v2738_v11 = vld [vmem:[%s3622_s10 + $0x20] sm:$0xf0]  ;;  %v3344_v12 = vld [vmem:[%s3622_s10 + $0x54] sm:$0xf]  ;;  %v2784_v16 = vld [vmem:[%s3622_s10 + $0x70] sm:$0xf]  ;;  %v2769_v17 = vor.u32 %v3346_v9, %v2768_v8 }
  0x11   : > { %848 = vmatpush.bf16.msra.mxu1 %v3370_v3  ;;  %3533 = vmatpush.bf16.msra.mxu3 %v3370_v3  ;;  %v2770_v13 = vld [vmem:[%s3622_s10 + $0x60] sm:$0xf0]  ;;  %v3350_v18 = vld [vmem:[%s3622_s10 + $0x7c] sm:$0xf0]  ;;  %v3340_v19 = vld [vmem:[%s3622_s10 + $0x34] sm:$0xf]  ;;  %v2741_v21 = vor.u32 %v3336_v10, %v2738_v11 }
  0x12   : > { %v2754_v20 = vld [vmem:[%s3622_s10 + $0x40] sm:$0xf0]  ;;  %v3348_v22 = vld [vmem:[%s3622_s10 + $0x74] sm:$0xf]  ;;  %v2773_v23 = vor.u32 %v3344_v12, %v2770_v13  ;;  %v2736_v25 = vld [vmem:[%s3622_s10 + $0x10] sm:$0xf]  ;;  %v3650_v27 = vor.u32 %v3350_v18, %v2784_v16 }
  0x13   : > { %v2786_v24 = vld [vmem:[%s3622_s10 + $0x80] sm:$0xf0]  ;;  %v3338_v26 = vld [vmem:[%s3622_s10 + $0x1c] sm:$0xf0]  ;;  %v477_v28 = vshll.u32 %v2769_v17, 16  ;;  %v3652_v29 = vor.u32 %v3340_v19, %v2754_v20  ;;  %v440_v32 = vshll.u32 %v2741_v21, 16 }
  0x14   : > { %3526 = vmatpush.bf16.msra.mxu2 %v3361_v4  ;;  %815 = vmatpush.bf16.msra.mxu0 %v3361_v4  ;;  %v2737_v33 = vor.u32 %v3338_v26, %v2736_v25  ;;  %v3660_v34 = vor.u32 %v3348_v22, %v2786_v24  ;;  %v485_v35 = vshll.u32 %v2773_v23, 16  ;;  %v2752_v36 = vld [vmem:[%s3622_s10 + $0x30] sm:$0xf]  ;;  %v3342_v37 = vld [vmem:[%s3622_s10 + $0x3c] sm:$0xf0]  ;;  %v505_v39 = vshrl.u32 %v2769_v17, 16 }
  0x15   : > { %849 = vmatpush.bf16.msra.mxu1 %v3369_v5  ;;  %3534 = vmatpush.bf16.msra.mxu3 %v3369_v5  ;;  %v3664_v38 = vrot.slane %v477_v28, 1  ;;  %v509_v40 = vshll.u32 %v3650_v27, 16  ;;  %v445_v41 = vshll.u32 %v3652_v29, 16  ;;  %v3357_v42 = vld [vmem:[%s4464_s1 + $0x8] sm:$0xff]  ;;  %v438_v44 = vshrl.u32 %v2741_v21, 16  ;;  %v3356_v54 = vld [vmem:[%s4464_s1] sm:$0xff] }
  0x16   : > { %v3365_v43 = vld [vmem:[%s4464_s1 + $0x48] sm:$0xff]  ;;  %v442_v45 = vrot.slane %v440_v32, 1  ;;  %v3674_v46 = vor.u32 %v3342_v37, %v2752_v36  ;;  %v428_v47 = vshll.u32 %v2737_v33, 16  ;;  %v3676_v48 = vrot.slane %v485_v35, 1  ;;  %v3364_v55 = vld [vmem:[%s4464_s1 + $0x40] sm:$0xff]  ;;  %v3379_v62 = vld [vmem:[%s4464_s1 + $0xb8] sm:$0xff] }
  0x17   : > { %v513_v49 = vshrl.u32 %v2773_v23, 16  ;;  %v517_v50 = vshll.u32 %v3660_v34, 16  ;;  %v507_v51 = vor.u32 %v505_v39, %v3664_v38  ;;  %v3680_v52 = vrot.slane %v509_v40, 1  ;;  %v3387_v63 = vld [vmem:[%s4464_s1 + $0xf8] sm:$0xff]  ;;  %v3412_v3 = vld [vmem:[%s4464_s1 + $0x170] sm:$0xff]  ;;  %v3377_v16 = vld [vmem:[%s4464_s1 + $0xa8] sm:$0xff] }
  0x18   : > { %3527 = vmatpush.bf16.msra.mxu2 %v3360_v6  ;;  %816 = vmatpush.bf16.msra.mxu0 %v3360_v6  ;;  %v3682_v53 = vrot.slane %v445_v41, 1  ;;  %v443_v56 = vor.u32 %v442_v45, %v438_v44  ;;  %v426_v57 = vshrl.u32 %v2737_v33, 16  ;;  %v430_v58 = vrot.slane %v428_v47, 1  ;;  %v3413_v0 = vld [vmem:[%s4464_s1 + $0x178] sm:$0xff]  ;;  %v3378_v4 = vld [vmem:[%s4464_s1 + $0xb0] sm:$0xff]  ;;  %v3411_v19 = vld [vmem:[%s4464_s1 + $0x168] sm:$0xff] }
  0x19   : > { %850 = vmatpush.bf16.msra.mxu1 %v3368_v7  ;;  %3535 = vmatpush.bf16.msra.mxu3 %v3368_v7  ;;  %v433_v59 = vshll.u32 %v3674_v46, 16  ;;  %v515_v60 = vor.u32 %v513_v49, %v3676_v48  ;;  %v519_v61 = vrot.slane %v517_v50, 1  ;;  %v512_v1 = vsel %vm424_vm0, %v507_v51, %v3680_v52  ;;  %v2800_v8 = vld [vmem:[%s3622_s10 + $0x90] sm:$0xf]  ;;  %v3354_v9 = vld [vmem:[%s3622_s10 + $0x9c] sm:$0xf0] }
  0x1a   : > { %v448_v2 = vsel %vm424_vm0, %v443_v56, %v3682_v53  ;;  %v431_v5 = vor.u32 %v430_v58, %v426_v57  ;;  %v3405_v10 = vld [vmem:[%s4464_s1 + $0x138] sm:$0xff]  ;;  %v3386_v11 = vld [vmem:[%s4464_s1 + $0xf0] sm:$0xff]  ;;  %v2802_v13 = vld [vmem:[%s3622_s10 + $0xa0] sm:$0xf0]  ;;  %v537_v21 = vshrl.u32 %v3650_v27, 16  ;;  %v481_v23 = vshrl.u32 %v3652_v29, 16 }
  0x1b   : > { %v435_v6 = vrot.slane %v433_v59, 1  ;;  %v520_v7 = vsel %vm424_vm0, %v515_v60, %v519_v61  ;;  %v3352_v12 = vld [vmem:[%s3622_s10 + $0x94] sm:$0xf]  ;;  %v3385_v20 = vld [vmem:[%s4464_s1 + $0xe8] sm:$0xff]  ;;  %v545_v24 = vshrl.u32 %v3660_v34, 16  ;;  %v3376_v26 = vld [vmem:[%s4464_s1 + $0xa0] sm:$0xff] }
  0x1c   : > { %3528 = vmatpush.bf16.msra.mxu2 %v3359_v14  ;;  %817 = vmatpush.bf16.msra.mxu0 %v3359_v14  ;;  %v3722_v14 = vor.u32 %v3354_v9, %v2800_v8  ;;  %v3728_v17 = vor.u32 %v3352_v12, %v2802_v13  ;;  %v3404_v18 = vld [vmem:[%s4464_s1 + $0x130] sm:$0xff]  ;;  %v3403_v28 = vld [vmem:[%s4464_s1 + $0x128] sm:$0xff]  ;;  %v3410_v27 = vld [vmem:[%s4464_s1 + $0x160] sm:$0xff]  ;;  %v483_v32 = vor.u32 %v481_v23, %v3682_v53  ;;  %v473_v34 = vshrl.u32 %v3674_v46, 16 }
  0x1d   : > { %851 = vmatpush.bf16.msra.mxu1 %v3367_v15  ;;  %3536 = vmatpush.bf16.msra.mxu3 %v3367_v15  ;;  %v436_v15 = vsel %vm424_vm0, %v431_v5, %v435_v6  ;;  %v3384_v29 = vld [vmem:[%s4464_s1 + $0xe0] sm:$0xff]  ;;  %v268_v33 = vld [vmem:[%s3622_s10 + $0xb0] sm:$0x11]  ;;  %v547_v35 = vor.u32 %v545_v24, %v519_v61  ;;  %v3375_v37 = vld [vmem:[%s4464_s1 + $0x98] sm:$0xff] }
  0x1e   : > { %v541_v22 = vshll.u32 %v3722_v14, 16  ;;  %v549_v25 = vshll.u32 %v3728_v17, 16  ;;  %v3402_v39 = vld [vmem:[%s4464_s1 + $0x120] sm:$0xff]  ;;  %v3409_v40 = vld [vmem:[%s4464_s1 + $0x158] sm:$0xff]  ;;  %v488_v45 = vsel %vm424_vm0, %v483_v32, %v3676_v48  ;;  %v475_v46 = vor.u32 %v473_v34, %v435_v6  ;;  %v3374_v49 = vld [vmem:[%s4464_s1 + $0x90] sm:$0xff] }
  0x1f   : > { %v3383_v41 = vld [vmem:[%s4464_s1 + $0xd8] sm:$0xff]  ;;  %v3408_v48 = vld [vmem:[%s4464_s1 + $0x150] sm:$0xff]  ;;  %v2986_v58 = vld [vmem:[%s3622_s10 + $0x40] sm:$0xf0] }
  0x20   : > { %3529 = vmatpush.bf16.msra.mxu2 %v3358_v30  ;;  %818 = vmatpush.bf16.msra.mxu0 %v3358_v30  ;;  %v539_v30 = vor.u32 %v537_v21, %v3680_v52  ;;  %v3762_v36 = vrot.slane %v549_v25, 1  ;;  %v3401_v50 = vld [vmem:[%s4464_s1 + $0x118] sm:$0xff]  ;;  %v3382_v51 = vld [vmem:[%s4464_s1 + $0xd0] sm:$0xff]  ;;  %v480_v57 = vsel %vm424_vm0, %v475_v46, %v3664_v38  ;;  %v3373_v59 = vld [vmem:[%s4464_s1 + $0x88] sm:$0xff] }
  0x21   : > { %852 = vmatpush.bf16.msra.mxu1 %v3366_v31  ;;  %3537 = vmatpush.bf16.msra.mxu3 %v3366_v31  ;;  %v3757_v31 = vrot.slane %v541_v22, 1  ;;  %v3390_v56 = vld [vmem:[%s3622_s10 + $0x34] sm:$0xf]  ;;  %v3407_v61 = vld [vmem:[%s4464_s1 + $0x148] sm:$0xff]  ;;  %v2976_v6 = vld [vmem:[%s3622_s10 + $0x10] sm:$0xe] }
  0x22   : > { %v552_v47 = vsel %vm424_vm0, %v547_v35, %v3762_v36  ;;  %v3400_v60 = vld [vmem:[%s4464_s1 + $0x110] sm:$0xff]  ;;  %v3381_v38 = vld [vmem:[%s4464_s1 + $0xc8] sm:$0xff]  ;;  %v3391_v9 = vld [vmem:[%s3622_s10 + $0x3c] sm:$0xf0] }
  0x23   : > { %v544_v44 = vsel %vm424_vm0, %v539_v30, %v3757_v31  ;;  %v3399_v5 = vld [vmem:[%s4464_s1 + $0x108] sm:$0xff]  ;;  %v2984_v8 = vld [vmem:[%s3622_s10 + $0x30] sm:$0xf]  ;;  %v3465_v21 = vld [vmem:[%s4465_s2 + $0x38] sm:$0xff] }
  0x24   : > { %3530 = vmatpush.bf16.msra.mxu2 %v3357_v42  ;;  %819 = vmatpush.bf16.msra.mxu0 %v3357_v42  ;;  %v396_v42 = vunpack.c.l.b16 %v268_v33  ;;  %v3398_v23 = vld [vmem:[%s4464_s1 + $0x100] sm:$0xff]  ;;  %v2744_v24 = vld [vmem:[%s3622_s10 + $0x18] sm:$0xf]  ;;  %v3339_v25 = vld [vmem:[%s3622_s10 + $0x24] sm:$0xf0] }
  0x25   : > { %853 = vmatpush.bf16.msra.mxu1 %v3365_v43  ;;  %3538 = vmatpush.bf16.msra.mxu3 %v3365_v43  ;;  %v397_v43 = vunpack.c.h.b16 %v268_v33  ;;  %v2760_v30 = vld [vmem:[%s3622_s10 + $0x38] sm:$0xf]  ;;  %v3343_v32 = vld [vmem:[%s3622_s10 + $0x44] sm:$0xf0]  ;;  %v2745_v33 = vor.u32 %v3339_v25, %v2744_v24  ;;  %v3392_v46 = vld [vmem:[%s3622_s10 + $0x54] sm:$0xf] }
  0x26   : > { %v420_v52 = vpack.c.b16 %v396_v42, %v396_v42  ;;  %v3438_v42 = vld [vmem:[%s4464_s1 + $0x270] sm:$0xff]  ;;  %v3462_v24 = vld [vmem:[%s4465_s2 + $0x20] sm:$0xff] }
  0x27   : > { %v421_v53 = vpack.c.b16 %v397_v43, %v397_v43  ;;  %v3869_v43 = vor.u32 %v3343_v32, %v2760_v30  ;;  %v3000_v30 = vld [vmem:[%s3622_s10 + $0x70] sm:$0xf] }
  0x28   : > { %3531 = vmatpush.bf16.msra.mxu2 %v3356_v54  ;;  %820 = vmatpush.bf16.msra.mxu0 %v3356_v54  ;;  %v3388_v54 = vld [vmem:[%s3622_s10 + $0x14] sm:$0xe] }
  0x29   : > { %854 = vmatpush.bf16.msra.mxu1 %v3364_v55  ;;  %3539 = vmatpush.bf16.msra.mxu3 %v3364_v55  ;;  %v2978_v55 = vld [vmem:[%s3622_s10 + $0x20] sm:$0xf0]  ;;  %v489_v25 = vshrl.u32 %v3869_v43, 16 }
  0x2b   : > { %831 = vmatmul.bf16.vlgmr.msra.gmra.mxu2 %v512_v1  ;;  %821 = vmatmul.bf16.vlgmr.msra.gmra.mxu0 %v436_v15  ;;  %v577_v1 = vshrl.u32 %v3728_v17, 16  ;;  %v3431_v15 = vld [vmem:[%s4464_s1 + $0x238] sm:$0xff] }
  0x2c   : > { %881 = vmatpush.bf16.msrb.mxu2 %v3379_v62  ;;  %855 = vmatmul.bf16.vlgmr.msra.gmra.mxu1 %v448_v2  ;;  %v569_v62 = vshrl.u32 %v3722_v14, 16  ;;  %v2981_v2 = vor.u32 %v3388_v54, %v2978_v55  ;;  %v3450_v54 = vld [vmem:[%s4464_s1 + $0x328] sm:$0xff]  ;;  %v450_v55 = vshrl.u32 %v2745_v33, 16 }
  0x2d   : > { %915 = vmatpush.bf16.msrb.mxu3 %v3387_v63  ;;  %1211 = vmatpush.bf16.msrb.mxu1 %v3413_v0  ;;  %v573_v63 = vshll.u32 %v420_v52, 16  ;;  %v581_v0 = vshll.u32 %v421_v53, 16  ;;  %v579_v22 = vor.u32 %v577_v1, %v3762_v36  ;;  %v3430_v36 = vld [vmem:[%s4464_s1 + $0x230] sm:$0xff]  ;;  %v3437_v52 = vld [vmem:[%s4464_s1 + $0x268] sm:$0xff] }
  0x2e   : > { %865 = vmatmul.bf16.vlgmr.msra.gmra.mxu3 %v520_v7  ;;  %1177 = vmatpush.bf16.msrb.mxu0 %v3405_v10  ;;  %v3389_v7 = vld [vmem:[%s3622_s10 + $0x1c] sm:$0xf0]  ;;  %v571_v12 = vor.u32 %v569_v62, %v3757_v31  ;;  %v1052_v17 = vrot.slane %v2981_v2, 1  ;;  %v3464_v53 = vld [vmem:[%s4465_s2 + $0x30] sm:$0xff] }
  0x2f   : > { %v3406_v10 = vld [vmem:[%s4464_s1 + $0x140] sm:$0xff]  ;;  %v575_v13 = vrot.slane %v573_v63, 1  ;;  %v583_v14 = vrot.slane %v581_v0, 1  ;;  %v2992_v62 = vld [vmem:[%s3622_s10 + $0x50] sm:$0xf] }
  0x30   : > { %882 = vmatpush.bf16.msrb.mxu2 %v3378_v4  ;;  %v3372_v4 = vld [vmem:[%s4464_s1 + $0x80] sm:$0xff] }
  0x31   : > { %1212 = vmatpush.bf16.msrb.mxu1 %v3412_v3  ;;  %916 = vmatpush.bf16.msrb.mxu3 %v3386_v11  ;;  %v2989_v3 = vor.u32 %v3390_v56, %v2986_v58  ;;  %v3380_v11 = vld [vmem:[%s4464_s1 + $0xc0] sm:$0xff]  ;;  %v457_v56 = vshll.u32 %v3869_v43, 16  ;;  %v2792_v43 = vld [vmem:[%s3622_s10 + $0x78] sm:$0xf] }
  0x32   : > { %1178 = vmatpush.bf16.msrb.mxu0 %v3404_v18  ;;  %v3393_v63 = vld [vmem:[%s3622_s10 + $0x5c] sm:$0xf0] }
  0x33   : > { %v3837_v18 = vrot.slane %v2989_v3, 1  ;;  %v3436_v0 = vld [vmem:[%s4464_s1 + $0x260] sm:$0xff]  ;;  %v459_v2 = vrot.slane %v457_v56, 1  ;;  %v3460_v56 = vld [vmem:[%s4465_s2 + $0x10] sm:$0xff] }
  0x34   : > { %883 = vmatpush.bf16.msrb.mxu2 %v3377_v16  ;;  %v3439_v16 = vld [vmem:[%s4464_s1 + $0x278] sm:$0xff] }
  0x35   : > { %1213 = vmatpush.bf16.msrb.mxu1 %v3411_v19  ;;  %917 = vmatpush.bf16.msrb.mxu3 %v3385_v20  ;;  %v2977_v19 = vor.u32 %v3389_v7, %v2976_v6  ;;  %v2985_v20 = vor.u32 %v3391_v9, %v2984_v8  ;;  %v1054_v31 = vsel %vm1048_vm1, %v1052_v17, %v3837_v18  ;;  %v3463_v17 = vld [vmem:[%s4465_s2 + $0x28] sm:$0xff] }
  0x36   : > { %1179 = vmatpush.bf16.msrb.mxu0 %v3403_v28  ;;  %v2746_v28 = vld [vmem:[%s3622_s10 + $0x28] sm:$0xf0]  ;;  %v491_v32 = vor.u32 %v489_v25, %v459_v2 }
  0x37   : > { %v1049_v34 = vrot.slane %v2977_v19, 1  ;;  %v3858_v35 = vrot.slane %v2985_v20, 1  ;;  %v3435_v19 = vld [vmem:[%s4464_s1 + $0x258] sm:$0xff] }
  0x38   : > { %884 = vmatpush.bf16.msrb.mxu2 %v3376_v26  ;;  %v3337_v26 = vld [vmem:[%s3622_s10 + $0x1c] sm:$0xf] }
  0x39   : > { %1214 = vmatpush.bf16.msrb.mxu1 %v3410_v27  ;;  %918 = vmatpush.bf16.msrb.mxu3 %v3384_v29  ;;  %v3452_v27 = vld [vmem:[%s4464_s1 + $0x338] sm:$0xff]  ;;  %v576_v29 = vsel %vm424_vm0, %v571_v12, %v575_v13  ;;  %v3347_v12 = vld [vmem:[%s3622_s10 + $0x64] sm:$0xf0] }
  0x3a   : > { %1180 = vmatpush.bf16.msrb.mxu0 %v3402_v39  ;;  %v3341_v39 = vld [vmem:[%s3622_s10 + $0x3c] sm:$0xf] }
  0x3b   : > { %836 = vmatmul.bf16.gmra.mxu2 %v544_v44  ;;  %826 = vmatmul.bf16.gmra.mxu0 %v480_v57  ;;  %v452_v44 = vshll.u32 %v2745_v33, 16  ;;  %v3345_v13 = vld [vmem:[%s3622_s10 + $0x5c] sm:$0xf] }
  0x3c   : > { %885 = vmatpush.bf16.msrb.mxu2 %v3375_v37  ;;  %860 = vmatmul.bf16.gmra.mxu1 %v488_v45  ;;  %v584_v37 = vsel %vm424_vm0, %v579_v22, %v583_v14  ;;  %v2778_v14 = vld [vmem:[%s3622_s10 + $0x68] sm:$0xf0]  ;;  %v3002_v22 = vld [vmem:[%s3622_s10 + $0x80] sm:$0xf0] }
  0x3d   : > { %1215 = vmatpush.bf16.msrb.mxu1 %v3409_v40  ;;  %919 = vmatpush.bf16.msrb.mxu3 %v3383_v41  ;;  %v2762_v40 = vld [vmem:[%s3622_s10 + $0x48] sm:$0xf0]  ;;  %v2749_v41 = vor.u32 %v3337_v26, %v2746_v28  ;;  %v454_v57 = vrot.slane %v452_v44, 1  ;;  %v3923_v20 = vor.u32 %v3345_v13, %v2778_v14  ;;  %v3351_v44 = vld [vmem:[%s3622_s10 + $0x84] sm:$0xf0] }
  0x3e   : > { %870 = vmatmul.bf16.gmra.mxu3 %v552_v47  ;;  %1181 = vmatpush.bf16.msrb.mxu0 %v3401_v50  ;;  %v3871_v45 = vor.u32 %v3341_v39, %v2762_v40  ;;  %v1051_v47 = vsel %vm1048_vm1, %v1049_v34, %v3858_v35  ;;  %v3451_v50 = vld [vmem:[%s4464_s1 + $0x330] sm:$0xff]  ;;  %v3355_v13 = vld [vmem:[%s3622_s10 + $0xa4] sm:$0xf0] }
  0x3f   : > { %v462_v58 = vshrl.u32 %v2749_v41, 16  ;;  %v455_v1 = vor.u32 %v454_v57, %v450_v55  ;;  %v3010_v55 = vld [vmem:[%s3622_s10 + $0xa0] sm:$0xf0]  ;;  %v3425_v57 = vld [vmem:[%s4464_s1 + $0x208] sm:$0xff] }
  0x40   : > { %886 = vmatpush.bf16.msrb.mxu2 %v3374_v49  ;;  %v3429_v49 = vld [vmem:[%s4464_s1 + $0x228] sm:$0xff] }
  0x41   : > { %1216 = vmatpush.bf16.msrb.mxu1 %v3408_v48  ;;  %920 = vmatpush.bf16.msrb.mxu3 %v3382_v51  ;;  %v464_v48 = vshll.u32 %v2749_v41, 16  ;;  %v2994_v51 = vld [vmem:[%s3622_s10 + $0x60] sm:$0xf0]  ;;  %v460_v7 = vsel %vm424_vm0, %v455_v1, %v459_v2  ;;  %v3397_v1 = vld [vmem:[%s3622_s10 + $0x9c] sm:$0xf0]  ;;  %v3459_v2 = vld [vmem:[%s4465_s2 + $0x8] sm:$0xff] }
  0x42   : > { %1182 = vmatpush.bf16.msrb.mxu0 %v3400_v60  ;;  %v2997_v60 = vor.u32 %v3392_v46, %v2994_v51  ;;  %v2794_v46 = vld [vmem:[%s3622_s10 + $0x88] sm:$0xf0]  ;;  %v3434_v51 = vld [vmem:[%s4464_s1 + $0x250] sm:$0xff] }
  0x44   : > { %887 = vmatpush.bf16.msrb.mxu2 %v3373_v59  ;;  %v469_v59 = vshll.u32 %v3871_v45, 16  ;;  %v1057_v3 = vrot.slane %v2997_v60, 1 }
  0x45   : > { %1217 = vmatpush.bf16.msrb.mxu1 %v3407_v61  ;;  %921 = vmatpush.bf16.msrb.mxu3 %v3381_v38  ;;  %v3428_v61 = vld [vmem:[%s4464_s1 + $0x220] sm:$0xff]  ;;  %v466_v38 = vrot.slane %v464_v48, 1  ;;  %v3426_v48 = vld [vmem:[%s4464_s1 + $0x210] sm:$0xff] }
  0x46   : > { %1183 = vmatpush.bf16.msrb.mxu0 %v3399_v5  ;;  %v471_v6 = vrot.slane %v469_v59, 1  ;;  %v1058_v8 = vsel %vm1048_vm1, %v3837_v18, %v1057_v3  ;;  %v3427_v18 = vld [vmem:[%s4464_s1 + $0x218] sm:$0xff] }
  0x47   : > { %v467_v5 = vor.u32 %v466_v38, %v462_v58  ;;  %v3433_v58 = vld [vmem:[%s4464_s1 + $0x248] sm:$0xff] }
  0x48   : > { %888 = vmatpush.bf16.msrb.mxu2 %v3372_v4  ;;  %v2993_v4 = vor.u32 %v3393_v63, %v2992_v62  ;;  %v3447_v62 = vld [vmem:[%s4464_s1 + $0x310] sm:$0xff] }
  0x49   : > { %1218 = vmatpush.bf16.msrb.mxu1 %v3406_v10  ;;  %922 = vmatpush.bf16.msrb.mxu3 %v3380_v11  ;;  %v472_v10 = vsel %vm424_vm0, %v467_v5, %v471_v6  ;;  %v2776_v11 = vld [vmem:[%s3622_s10 + $0x58] sm:$0xf] }
  0x4a   : > { %1184 = vmatpush.bf16.msrb.mxu0 %v3398_v23  ;;  %v1055_v9 = vrot.slane %v2993_v4, 1  ;;  %v3449_v23 = vld [vmem:[%s4464_s1 + $0x320] sm:$0xff] }
  0x4b   : > { %841 = vmatmul.bf16.gmra.mxu2 %v576_v29  ;;  %v501_v29 = vshll.u32 %v3923_v20, 16 }
  0x4c   : > { %1577 = vmatpush.bf16.msra.mxu2 %v3431_v15  ;;  %1219 = vmatmul.bf16.vlgmr.msrb.gmra.mxu1 %v1054_v31  ;;  %v3910_v15 = vor.u32 %v3347_v12, %v2776_v11  ;;  %v3395_v31 = vld [vmem:[%s3622_s10 + $0x7c] sm:$0xf0]  ;;  %v2808_v12 = vld [vmem:[%s3622_s10 + $0x98] sm:$0xf] }
  0x4d   : > { %1611 = vmatpush.bf16.msra.mxu3 %v3439_v16  ;;  %2493 = vmatpush.bf16.msra.mxu1 %v3465_v21  ;;  %v1056_v16 = vsel %vm1048_vm1, %v3858_v35, %v1055_v9  ;;  %v3394_v21 = vld [vmem:[%s3622_s10 + $0x74] sm:$0xf]  ;;  %v3001_v35 = vor.u32 %v3395_v31, %v3000_v30 }
  0x4e   : > { %1796 = vmatpush.bf16.msra.mxu0 %v3452_v27  ;;  %875 = vmatmul.bf16.gmra.mxu3 %v584_v37  ;;  %v493_v26 = vshll.u32 %v3910_v15, 16  ;;  %v3005_v28 = vor.u32 %v3394_v21, %v3002_v22  ;;  %v497_v27 = vshrl.u32 %v3871_v45, 16  ;;  %v503_v37 = vrot.slane %v501_v29, 1  ;;  %v3349_v45 = vld [vmem:[%s3622_s10 + $0x7c] sm:$0xf]  ;;  %v3424_v22 = vld [vmem:[%s4464_s1 + $0x200] sm:$0xff] }
  0x4f   : > { %1185 = vmatmul.bf16.vlgmr.msrb.gmra.mxu0 %v1051_v47  ;;  %v3941_v41 = vrot.slane %v3001_v35, 1  ;;  %v3461_v47 = vld [vmem:[%s4465_s2 + $0x18] sm:$0xff]  ;;  %v521_v59 = vshrl.u32 %v3910_v15, 16 }
  0x50   : > { %1578 = vmatpush.bf16.msra.mxu2 %v3430_v36  ;;  %v495_v33 = vrot.slane %v493_v26, 1  ;;  %v1061_v34 = vrot.slane %v3005_v28, 1  ;;  %v499_v36 = vor.u32 %v497_v27, %v471_v6  ;;  %v269_v35 = vld [vmem:[%s3622_s10 + $0xb8] sm:$0x11] }
  0x51   : > { %1612 = vmatpush.bf16.msra.mxu3 %v3438_v42  ;;  %2494 = vmatpush.bf16.msra.mxu1 %v3464_v53  ;;  %v3964_v53 = vor.u32 %v3349_v45, %v2794_v46  ;;  %v399_v45 = vunpack.c.h.b16 %v269_v35  ;;  %v3288_v46 = vld [vmem:[%s3622_s10 + $0x3c] sm:$0xf] }
  0x52   : > { %1797 = vmatpush.bf16.msra.mxu0 %v3451_v50  ;;  %v496_v39 = vsel %vm424_vm0, %v491_v32, %v495_v33  ;;  %v1062_v40 = vsel %vm1048_vm1, %v1057_v3, %v1061_v34  ;;  %v504_v42 = vsel %vm424_vm0, %v499_v36, %v503_v37  ;;  %v1060_v50 = vsel %vm1048_vm1, %v1055_v9, %v3941_v41  ;;  %v3458_v9 = vld [vmem:[%s4465_s2] sm:$0xff] }
  0x53   : > { %v533_v63 = vshll.u32 %v3964_v53, 16  ;;  %v523_v3 = vor.u32 %v521_v59, %v495_v33  ;;  %v561_v30 = vshrl.u32 %v3964_v53, 16 }
  0x54   : > { %1579 = vmatpush.bf16.msra.mxu2 %v3429_v49  ;;  %v3951_v49 = vor.u32 %v3351_v44, %v2792_v43  ;;  %v398_v43 = vunpack.c.l.b16 %v269_v35 }
  0x55   : > { %1613 = vmatpush.bf16.msra.mxu3 %v3437_v52  ;;  %2495 = vmatpush.bf16.msra.mxu1 %v3463_v17  ;;  %v3448_v52 = vld [vmem:[%s4464_s1 + $0x318] sm:$0xff] }
  0x56   : > { %1798 = vmatpush.bf16.msra.mxu0 %v3450_v54  ;;  %v3396_v54 = vld [vmem:[%s3622_s10 + $0x94] sm:$0xf]  ;;  %v525_v60 = vshll.u32 %v3951_v49, 16  ;;  %v3353_v17 = vld [vmem:[%s3622_s10 + $0x9c] sm:$0xf]  ;;  %v553_v26 = vshrl.u32 %v3951_v49, 16 }
  0x57   : > { %v3013_v38 = vor.u32 %v3396_v54, %v3010_v55  ;;  %v423_v54 = vpack.c.b16 %v399_v45, %v399_v45 }
  0x58   : > { %1580 = vmatpush.bf16.msra.mxu2 %v3428_v61  ;;  %v529_v61 = vshrl.u32 %v3923_v20, 16  ;;  %v527_v4 = vrot.slane %v525_v60, 1 }
  0x59   : > { %1614 = vmatpush.bf16.msra.mxu3 %v3436_v0  ;;  %2496 = vmatpush.bf16.msra.mxu1 %v3462_v24  ;;  %v3008_v0 = vld [vmem:[%s3622_s10 + $0x90] sm:$0xf]  ;;  %v1065_v5 = vrot.slane %v3013_v38, 1  ;;  %v3446_v24 = vld [vmem:[%s4464_s1 + $0x308] sm:$0xff] }
  0x5a   : > { %1799 = vmatpush.bf16.msra.mxu0 %v3449_v23  ;;  %v3009_v6 = vor.u32 %v3397_v1, %v3008_v0  ;;  %v3432_v23 = vld [vmem:[%s4464_s1 + $0x240] sm:$0xff]  ;;  %v555_v32 = vor.u32 %v553_v26, %v527_v4  ;;  %v3440_v0 = vld [vmem:[%s3622_s10 + $0x30] sm:$0xf0] }
  0x5b   : > { %889 = vmatmul.bf16.vlgmr.msrb.gmra.mxu2 %v460_v7  ;;  %v531_v7 = vor.u32 %v529_v61, %v503_v37  ;;  %v1066_v11 = vsel %vm1048_vm1, %v1061_v34, %v1065_v5  ;;  %v597_v61 = vshll.u32 %v423_v54, 16  ;;  %v3236_v1 = vld [vmem:[%s3622_s10 + $0x44] sm:$0xf] }
  0x5c   : > { %1224 = vmatmul.bf16.gmra.mxu1 %v1058_v8  ;;  %1581 = vmatpush.bf16.msra.mxu2 %v3427_v18  ;;  %v535_v8 = vrot.slane %v533_v63, 1  ;;  %v1063_v14 = vrot.slane %v3009_v6, 1  ;;  %v2810_v18 = vld [vmem:[%s3622_s10 + $0xa8] sm:$0xf0]  ;;  %v3232_v63 = vld [vmem:[%s3622_s10 + $0x24] sm:$0xc] }
  0x5d   : > { %1615 = vmatpush.bf16.msra.mxu3 %v3435_v19  ;;  %2497 = vmatpush.bf16.msra.mxu1 %v3461_v47  ;;  %v2809_v19 = vor.u32 %v3355_v13, %v2808_v12  ;;  %v2813_v25 = vor.u32 %v3353_v17, %v2810_v18  ;;  %v3454_v47 = vld [vmem:[%s3622_s10 + $0x48] sm:$0xf0]  ;;  %v3112_v6 = vld [vmem:[%s3622_s10 + $0x24] sm:$0xe]  ;;  %v3416_v17 = vld [vmem:[%s3622_s10 + $0x48] sm:$0xf] }
  0x5e   : > { %923 = vmatmul.bf16.vlgmr.msrb.gmra.mxu3 %v472_v10  ;;  %1800 = vmatpush.bf16.msra.mxu0 %v3448_v52  ;;  %v528_v10 = vsel %vm424_vm0, %v523_v3, %v527_v4  ;;  %v536_v15 = vsel %vm424_vm0, %v531_v7, %v535_v8  ;;  %v1064_v21 = vsel %vm1048_vm1, %v3941_v41, %v1063_v14  ;;  %v3453_v41 = vld [vmem:[%s3622_s10 + $0x28] sm:$0xf0]  ;;  %v3122_v18 = vld [vmem:[%s3622_s10 + $0x54] sm:$0xf0] }
  0x5f   : > { %1190 = vmatmul.bf16.gmra.mxu0 %v1056_v16  ;;  %v969_v16 = vld [vmem:[%s3622_s10 + $0xb0] sm:$0x11]  ;;  %v557_v28 = vshll.u32 %v2809_v19, 16  ;;  %v565_v31 = vshll.u32 %v2813_v25, 16  ;;  %v563_v37 = vor.u32 %v561_v30, %v535_v8  ;;  %v422_v52 = vpack.c.b16 %v398_v43, %v398_v43 }
  0x60   : > { %1582 = vmatpush.bf16.msra.mxu2 %v3426_v48  ;;  %v1035_v20 = vunpack.c.h.b16 %v969_v16  ;;  %v1034_v29 = vunpack.c.l.b16 %v969_v16  ;;  %v3445_v48 = vld [vmem:[%s4464_s1 + $0x300] sm:$0xff]  ;;  %v4024_v53 = vor.u32 %v3454_v47, %v3288_v46  ;;  %v593_v60 = vshrl.u32 %v2813_v25, 16  ;;  %v3415_v8 = vld [vmem:[%s3622_s10 + $0x30] sm:$0xf0]  ;;  %v3114_v16 = vld [vmem:[%s3622_s10 + $0x34] sm:$0xf0] }
  0x61   : > { %1616 = vmatpush.bf16.msra.mxu3 %v3434_v51  ;;  %2498 = vmatpush.bf16.msra.mxu1 %v3460_v56  ;;  %v559_v33 = vrot.slane %v557_v28, 1  ;;  %v3125_v28 = vor.u32 %v3416_v17, %v3122_v18 }
  0x62   : > { %1801 = vmatpush.bf16.msra.mxu0 %v3447_v62  ;;  %v1047_v27 = vpack.c.b16 %v1035_v20, %v1035_v20  ;;  %v1046_v36 = vpack.c.b16 %v1034_v29, %v1034_v29  ;;  %v2404_v59 = vshll.u32 %v4024_v53, 16  ;;  %v3113_v20 = vor.u32 %v3415_v8, %v3112_v6  ;;  %v3455_v29 = vld [vmem:[%s3622_s10 + $0x68] sm:$0xf0]  ;;  %v3296_v6 = vld [vmem:[%s3622_s10 + $0x7c] sm:$0xf] }
  0x63   : > { %v2408_v47 = vshrl.u32 %v4024_v53, 16 }
  0x64   : > { %1583 = vmatpush.bf16.msra.mxu2 %v3425_v57  ;;  %v1069_v34 = vrot.slane %v1047_v27, 1  ;;  %v585_v57 = vshrl.u32 %v2809_v19, 16  ;;  %v3292_v27 = vld [vmem:[%s3622_s10 + $0x5c] sm:$0xf]  ;;  %v1366_v30 = vshrl.u32 %v3113_v20, 16 }
  0x65   : > { %1617 = vmatpush.bf16.msra.mxu3 %v3433_v58  ;;  %2499 = vmatpush.bf16.msra.mxu1 %v3459_v2  ;;  %v589_v58 = vshll.u32 %v422_v52, 16  ;;  %v3441_v2 = vld [vmem:[%s3622_s10 + $0x50] sm:$0xf0] }
  0x66   : > { %1802 = vmatpush.bf16.msra.mxu0 %v3446_v24  ;;  %v1070_v44 = vsel %vm1048_vm1, %v1065_v5, %v1069_v34  ;;  %v587_v3 = vor.u32 %v585_v57, %v559_v33  ;;  %v2406_v5 = vrot.slane %v2404_v59, 1  ;;  %v3237_v12 = vor.u32 %v3441_v2, %v3236_v1  ;;  %v3442_v52 = vld [vmem:[%s3622_s10 + $0x70] sm:$0xf0] }
  0x67   : > { %v591_v4 = vrot.slane %v589_v58, 1  ;;  %v3128_v58 = vld [vmem:[%s3622_s10 + $0x64] sm:$0xf]  ;;  %v3419_v59 = vld [vmem:[%s3622_s10 + $0x70] sm:$0xf0] }
  0x68   : > { %1584 = vmatpush.bf16.msra.mxu2 %v3424_v22  ;;  %v1733_v25 = vrot.slane %v3237_v12, 2 }
  0x69   : > { %2500 = vmatpush.bf16.msra.mxu1 %v3458_v9  ;;  %1618 = vmatpush.bf16.msra.mxu3 %v3432_v23  ;;  %v3120_v9 = vld [vmem:[%s3622_s10 + $0x44] sm:$0xf]  ;;  %v592_v19 = vsel %vm424_vm0, %v587_v3, %v591_v4 }
  0x6a   : > { %1803 = vmatpush.bf16.msra.mxu0 %v3445_v48 }
  0x6b   : > { %894 = vmatmul.bf16.gmra.mxu2 %v496_v39  ;;  %v567_v39 = vrot.slane %v565_v31, 1  ;;  %v1369_v31 = vshll.u32 %v3113_v20, 16 }
  0x6c   : > { %1229 = vmatmul.bf16.gmra.mxu1 %v1062_v40  ;;  %v3284_v40 = vld [vmem:[%s3622_s10 + $0x1c] sm:$0xf] }
  0x6d   : > { %v3285_v49 = vor.u32 %v3453_v41, %v3284_v40  ;;  %v568_v51 = vsel %vm424_vm0, %v563_v37, %v567_v39  ;;  %v595_v13 = vor.u32 %v593_v60, %v567_v39  ;;  %v1391_v39 = vshrl.u32 %v3125_v28, 16 }
  0x6e   : > { %928 = vmatmul.bf16.gmra.mxu3 %v504_v42  ;;  %v560_v42 = vsel %vm424_vm0, %v555_v32, %v559_v33  ;;  %v1394_v40 = vshll.u32 %v3125_v28, 16  ;;  %v1368_v41 = vrot.slane %v1366_v30, 1  ;;  %v3443_v28 = vld [vmem:[%s3622_s10 + $0x90] sm:$0xf0] }
  0x6f   : > { %1195 = vmatmul.bf16.gmra.mxu0 %v1060_v50  ;;  %v1067_v50 = vrot.slane %v1046_v36, 1  ;;  %v2399_v55 = vshll.u32 %v3285_v49, 16  ;;  %v2397_v38 = vshrl.u32 %v3285_v49, 16  ;;  %v4045_v36 = vor.u32 %v3455_v29, %v3292_v27 }
  0x70   : > { %v1396_v48 = vrot.slane %v1394_v40, 2  ;;  %v3138_v40 = vld [vmem:[%s3622_s10 + $0x94] sm:$0xf0] }
  0x71   : > { %v1068_v56 = vsel %vm1048_vm1, %v1063_v14, %v1067_v50  ;;  %v2401_v62 = vrot.slane %v2399_v55, 1  ;;  %v599_v14 = vrot.slane %v597_v61, 1  ;;  %v2412_v49 = vshll.u32 %v4045_v36, 16 }
  0x72   : > { %v1393_v50 = vrot.slane %v1391_v39, 1  ;;  %v3420_v39 = vld [vmem:[%s3622_s10 + $0x88] sm:$0xf] }
  0x73   : > { %v2402_v7 = vor.u32 %v2401_v62, %v2397_v38  ;;  %v600_v26 = vsel %vm424_vm0, %v595_v13, %v599_v14  ;;  %v2414_v57 = vrot.slane %v2412_v49, 1  ;;  %v3418_v38 = vld [vmem:[%s3622_s10 + $0x68] sm:$0xf]  ;;  %v3130_v62 = vld [vmem:[%s3622_s10 + $0x74] sm:$0xf0] }
  0x74   : > { %v1397_v53 = vor.u32 %v1396_v48, %v1393_v50  ;;  %v3141_v50 = vor.u32 %v3420_v39, %v3138_v40  ;;  %v3300_v48 = vld [vmem:[%s3622_s10 + $0x9c] sm:$0xf] }
  0x75   : > { %v2407_v22 = vsel %vm424_vm0, %v2402_v7, %v2406_v5  ;;  %v3456_v7 = vld [vmem:[%s3622_s10 + $0x88] sm:$0xf0] }
  0x7b   : > { %899 = vmatmul.bf16.gmra.mxu2 %v528_v10  ;;  %v3417_v10 = vld [vmem:[%s3622_s10 + $0x50] sm:$0xf0] }
  0x7c   : > { %1234 = vmatmul.bf16.gmra.mxu1 %v1066_v11  ;;  %v3233_v11 = vor.u32 %v3440_v0, %v3232_v63  ;;  %v3129_v63 = vor.u32 %v3419_v59, %v3128_v58  ;;  %v1427_v59 = vshrl.u32 %v3141_v50, 16 }
  0x7e   : > { %933 = vmatmul.bf16.gmra.mxu3 %v536_v15  ;;  %v3414_v15 = vld [vmem:[%s3622_s10 + $0x28] sm:$0xe]  ;;  %v1732_v24 = vrot.slane %v3233_v11, 2  ;;  %v1400_v8 = vshrl.u32 %v3129_v63, 16  ;;  %v4061_v11 = vor.u32 %v3456_v7, %v3296_v6  ;;  %v3444_v6 = vld [vmem:[%s3622_s10 + $0xb0] sm:$0xf0] }
  0x7f   : > { %1200 = vmatmul.bf16.gmra.mxu0 %v1064_v21  ;;  %v3121_v21 = vor.u32 %v3417_v10, %v3120_v9  ;;  %v3117_v23 = vor.u32 %v3414_v15, %v3114_v16  ;;  %v1403_v10 = vshll.u32 %v3129_v63, 16 }
  0x80   : > { %v1734_v37 = vsel %vm1731_vm2, %v1732_v24, %v1733_v25  ;;  %v1402_v18 = vrot.slane %v1400_v8, 1 }
  0x81   : > { %v1374_v32 = vshrl.u32 %v3121_v21, 16  ;;  %v1377_v33 = vshll.u32 %v3121_v21, 16  ;;  %v1383_v34 = vshrl.u32 %v3117_v23, 16  ;;  %v1386_v35 = vshll.u32 %v3117_v23, 16 }
  0x82   : > { %v1405_v21 = vrot.slane %v1403_v10, 2  ;;  %v2420_v23 = vshll.u32 %v4061_v11, 16 }
  0x83   : > { %v1376_v43 = vrot.slane %v1374_v32, 1  ;;  %v1385_v45 = vrot.slane %v1383_v34, 1  ;;  %v1388_v46 = vrot.slane %v1386_v35, 2  ;;  %v3136_v32 = vld [vmem:[%s3622_s10 + $0x84] sm:$0xf] }
  0x84   : > { %v1406_v27 = vor.u32 %v1405_v21, %v1402_v18  ;;  %v2422_v30 = vrot.slane %v2420_v23, 1  ;;  %v2351_v18 = vld [vmem:[%s3622_s10 + $0xbc] sm:$0x1]  ;;  %v3146_v21 = vld [vmem:[%s3622_s10 + $0xb4] sm:$0xf0] }
  0x85   : > { %v1389_v61 = vor.u32 %v1388_v46, %v1385_v45 }
  0x87   : > { %v1398_v4 = vsel %vm1364_vm3, %v1389_v61, %v1397_v53 }
  0x8b   : > { %904 = vmatmul.bf16.gmra.mxu2 %v560_v42  ;;  %v1371_v42 = vrot.slane %v1369_v31, 2 }
  0x8c   : > { %1239 = vmatmul.bf16.gmra.mxu1 %v1070_v44  ;;  %v1379_v44 = vrot.slane %v1377_v33, 2  ;;  %v3421_v33 = vld [vmem:[%s3622_s10 + $0x90] sm:$0xf0] }
  0x8d   : > { %v1372_v54 = vor.u32 %v1371_v42, %v1368_v41  ;;  %v3137_v42 = vor.u32 %v3421_v33, %v3136_v32 }
  0x8e   : > { %938 = vmatmul.bf16.gmra.mxu3 %v568_v51  ;;  %v3240_v51 = vld [vmem:[%s3622_s10 + $0x64] sm:$0xf]  ;;  %v1380_v55 = vor.u32 %v1379_v44, %v1376_v43 }
  0x8f   : > { %1205 = vmatmul.bf16.gmra.mxu0 %v1068_v56  ;;  %v2410_v56 = vor.u32 %v2408_v47, %v2406_v5  ;;  %v3241_v60 = vor.u32 %v3442_v52, %v3240_v51  ;;  %v3133_v5 = vor.u32 %v3418_v38, %v3130_v62  ;;  %v3457_v51 = vld [vmem:[%s3622_s10 + $0xa8] sm:$0xf0]  ;;  %v1418_v52 = vshrl.u32 %v3137_v42, 16 }
  0x90   : > { %v1381_v1 = vsel %vm1364_vm3, %v1372_v54, %v1380_v55  ;;  %v1407_v45 = vsel %vm1364_vm3, %v1380_v55, %v1406_v27  ;;  %v1421_v54 = vshll.u32 %v3137_v42, 16 }
  0x91   : > { %v2415_v2 = vsel %vm424_vm0, %v2410_v56, %v2414_v57  ;;  %v1735_v3 = vrot.slane %v3241_v60, 2  ;;  %v1409_v14 = vshrl.u32 %v3133_v5, 16  ;;  %v1412_v15 = vshll.u32 %v3133_v5, 16  ;;  %v3248_v5 = vld [vmem:[%s3622_s10 + $0xa4] sm:$0xf] }
  0x92   : > { %v1430_v60 = vshll.u32 %v3141_v50, 16  ;;  %v1420_v38 = vrot.slane %v1418_v52, 1  ;;  %v1423_v62 = vrot.slane %v1421_v54, 2 }
  0x93   : > { %v1736_v12 = vsel %vm1731_vm2, %v1733_v25, %v1735_v3  ;;  %v1411_v24 = vrot.slane %v1409_v14, 1  ;;  %v1414_v25 = vrot.slane %v1412_v15, 2  ;;  %v3423_v14 = vld [vmem:[%s3622_s10 + $0xb0] sm:$0xf0]  ;;  %v3249_v15 = vor.u32 %v3444_v6, %v3248_v5 }
  0x94   : > { %v1424_v7 = vor.u32 %v1423_v62, %v1420_v38 }
  0x95   : > { %v1415_v35 = vor.u32 %v1414_v25, %v1411_v24 }
  0x96   : > { %v1425_v23 = vsel %vm1364_vm3, %v1406_v27, %v1424_v7 }
  0x97   : > { %v1416_v49 = vsel %vm1364_vm3, %v1397_v53, %v1415_v35 }
  0x9b   : > { %909 = vmatmul.bf16.gmra.mxu2 %v592_v19 }
  0x9c   : > { %2501 = vmatmul.bf16.vlgmr.msra.gmra.mxu1 %v2407_v22  ;;  %v2416_v22 = vshrl.u32 %v4045_v36, 16 }
  0x9e   : > { %943 = vmatmul.bf16.gmra.mxu3 %v600_v26  ;;  %v3244_v26 = vld [vmem:[%s3622_s10 + $0x84] sm:$0xf]  ;;  %v2418_v29 = vor.u32 %v2416_v22, %v2414_v57  ;;  %v4085_v57 = vor.u32 %v3457_v51, %v3300_v48 }
  0x9f   : > { %1804 = vmatmul.bf16.vlgmr.msra.gmra.mxu0 %v1734_v37  ;;  %v3245_v34 = vor.u32 %v3443_v28, %v3244_v26 }
  0xa0   : > { %v2423_v46 = vsel %vm424_vm0, %v2418_v29, %v2422_v30  ;;  %v2389_v29 = vunpack.c.l.b16 %v2351_v18  ;;  %v2432_v51 = vshrl.u32 %v4085_v57, 16 }
  0xa1   : > { %v1737_v47 = vrot.slane %v3245_v34, 2 }
  0xa2   : > { %v2395_v39 = vpack.c.b16 %v2389_v29, %v2389_v29 }
  0xa3   : > { %v1738_v58 = vsel %vm1731_vm2, %v1735_v3, %v1737_v47  ;;  %v1429_v3 = vrot.slane %v1427_v59, 1 }
  0xa4   : > { %v2436_v52 = vshll.u32 %v2395_v39, 16 }
  0xa8   : > { %v822_v9 = vpop.f32.mrf.mxu0 }
  0xa9   : > { %v856_v0 = vpop.f32.mrf.mxu1 }
  0xaa   : > { %v4064_v13 = vadd.f32 %v856_v0, %v822_v9 }
  0xab   : > { %1585 = vmatmul.bf16.vlgmr.msra.gmra.mxu2 %v1381_v1  ;;  %v2424_v1 = vshrl.u32 %v4061_v11, 16 }
  0xac   : > { %2506 = vmatmul.bf16.gmra.mxu1 %v2415_v2  ;;  %v2428_v2 = vshll.u32 %v4085_v57, 16 }
  0xad   : > { %v2426_v8 = vor.u32 %v2424_v1, %v2422_v30  ;;  %v1739_v30 = vrot.slane %v3249_v15, 2 }
  0xae   : > { %1619 = vmatmul.bf16.vlgmr.msra.gmra.mxu3 %v1398_v4  ;;  %v832_v16 = vpop.f32.mrf.mxu2  ;;  %v1432_v4 = vrot.slane %v1430_v60, 2  ;;  %v2430_v9 = vrot.slane %v2428_v2, 1 }
  0xaf   : > { %1809 = vmatmul.bf16.gmra.mxu0 %v1736_v12  ;;  %v3144_v12 = vld [vmem:[%s3622_s10 + $0xa4] sm:$0xf]  ;;  %v1740_v27 = vsel %vm1731_vm2, %v1737_v47, %v1739_v30 }
  0xb0   : > { %v824_v31 = vpop.f32.mrf.mxu0  ;;  %v3145_v24 = vor.u32 %v3423_v14, %v3144_v12  ;;  %v2431_v28 = vsel %vm424_vm0, %v2426_v8, %v2430_v9  ;;  %v1285_v47 = vld [vmem:[%s3622_s10 + $0xc4] sm:$0x33]  ;;  %v2434_v60 = vor.u32 %v2432_v51, %v2430_v9 }
  0xb1   : > { %v866_v17 = vpop.f32.mrf.mxu3  ;;  %v858_v20 = vpop.f32.mrf.mxu1  ;;  %v1350_v38 = vunpack.c.l.b16 %v1285_v47  ;;  %v1351_v2 = vunpack.c.h.b16 %v1285_v47 }
  0xb2   : > { %v4066_v19 = vadd.f32 %v866_v17, %v832_v16  ;;  %v4074_v37 = vadd.f32 %v858_v20, %v824_v31  ;;  %v1433_v16 = vor.u32 %v1432_v4, %v1429_v3  ;;  %v3422_v20 = vld [vmem:[%s3622_s10 + $0xa8] sm:$0xf]  ;;  %v1436_v33 = vshrl.u32 %v3145_v24, 16 }
  0xb3   : > { %v3149_v32 = vor.u32 %v3422_v20, %v3146_v21  ;;  %v1439_v34 = vshll.u32 %v3145_v24, 16  ;;  %v1363_v14 = vpack.c.b16 %v1351_v2, %v1351_v2 }
  0xb4   : > { %v1434_v31 = vsel %vm1364_vm3, %v1415_v35, %v1433_v16 }
  0xb5   : > { %v1448_v42 = vshll.u32 %v3149_v32, 16  ;;  %v1441_v50 = vrot.slane %v1439_v34, 2 }
  0xb6   : > { %v834_v36 = vpop.f32.mrf.mxu2 }
  0xb8   : > { %v827_v56 = vpop.f32.mrf.mxu0 }
  0xb9   : > { %v868_v41 = vpop.f32.mrf.mxu3  ;;  %v861_v44 = vpop.f32.mrf.mxu1 }
  0xba   : > { %v4078_v43 = vadd.f32 %v868_v41, %v834_v36  ;;  %v4088_v55 = vadd.f32 %v861_v44, %v827_v56  ;;  %v1445_v41 = vshrl.u32 %v3149_v32, 16  ;;  %v1685_v44 = vld [vmem:[%s3622_s10 + $0xc4] sm:$0x3]  ;;  %s3541_s10 = smul.u32 40, %s4490_s19 }
  0xbb   : > { %1590 = vmatmul.bf16.gmra.mxu2 %v1407_v45  ;;  %v1724_v54 = vunpack.c.l.b16 %v1685_v44 }
  0xbc   : > { %2511 = vmatmul.bf16.gmra.mxu1 %v2423_v46  ;;  %v1447_v56 = vrot.slane %v1445_v41, 1  ;;  %s4230_s6 = scalar_lea.vmem %s4468_s5, %s3541_s10  ;;  %s4320_s9 = scalar_lea.vmem %s4466_s3, %s3541_s10 }
  0xbd   : > { %v1730_v62 = vpack.c.b16 %v1724_v54, %v1724_v54 }
  0xbe   : > { %1624 = vmatmul.bf16.gmra.mxu3 %v1416_v49  ;;  %v837_v61 = vpop.f32.mrf.mxu2  ;;  %v1438_v49 = vrot.slane %v1436_v33, 1 }
  0xbf   : > { %1814 = vmatmul.bf16.gmra.mxu0 %v1738_v58  ;;  %v1450_v58 = vrot.slane %v1448_v42, 2  ;;  %v1741_v12 = vrot.slane %v1730_v62, 2 }
  0xc0   : > { %v829_v10 = vpop.f32.mrf.mxu0  ;;  %v1442_v59 = vor.u32 %v1441_v50, %v1438_v49 }
  0xc1   : > { %v871_v53 = vpop.f32.mrf.mxu3  ;;  %v863_v0 = vpop.f32.mrf.mxu1  ;;  %v1742_v20 = vsel %vm1731_vm2, %v1739_v30, %v1741_v12 }
  0xc2   : > { %v4090_v63 = vadd.f32 %v871_v53, %v837_v61  ;;  %v4098_v17 = vadd.f32 %v863_v0, %v829_v10  ;;  %v2438_v61 = vrot.slane %v2436_v52, 1  ;;  %v1451_v0 = vor.u32 %v1450_v58, %v1447_v56 }
  0xc3   : > { %v1443_v5 = vsel %vm1364_vm3, %v1424_v7, %v1442_v59  ;;  %v1362_v10 = vpack.c.b16 %v1350_v38, %v1350_v38  ;;  %v1463_v7 = vshrl.u32 %v1363_v14, 16  ;;  %v1890_v38 = vlaneseq }
  0xc4   : > { %v2439_v8 = vsel %vm424_vm0, %v2434_v60, %v2438_v61  ;;  %v1452_v9 = vsel %vm1364_vm3, %v1433_v16, %v1451_v0 }
  0xc5   : > { %v1454_v18 = vshrl.u32 %v1362_v10, 16  ;;  %v1465_v32 = vrot.slane %v1463_v7, 1 }
  0xc6   : > { %v839_v11 = vpop.f32.mrf.mxu2 }
  0xc7   : > { %v1456_v29 = vrot.slane %v1454_v18, 1 }
  0xc9   : > { %v873_v22 = vpop.f32.mrf.mxu3  ;;  %v1220_v26 = vpop.f32.mrf.mxu1 }
  0xca   : > { %v4104_v25 = vadd.f32 %v873_v22, %v839_v11  ;;  %v1457_v11 = vshll.u32 %v1362_v10, 16  ;;  %v1466_v22 = vshll.u32 %v1363_v14, 16 }
  0xcb   : > { %1595 = vmatmul.bf16.gmra.mxu2 %v1425_v23 }
  0xcc   : > { %2516 = vmatmul.bf16.gmra.mxu1 %v2431_v28  ;;  %v1186_v36 = vpop.f32.mrf.mxu0  ;;  %v1459_v16 = vrot.slane %v1457_v11, 2  ;;  %v1468_v33 = vrot.slane %v1466_v22, 2 }
  0xcd   : > { %v1221_v40 = vadd.f32 %v1220_v26, %v1186_v36 }
  0xce   : > { %1629 = vmatmul.bf16.gmra.mxu3 %v1434_v31  ;;  %v842_v45 = vpop.f32.mrf.mxu2  ;;  %v1460_v36 = vor.u32 %v1459_v16, %v1456_v29 }
  0xcf   : > { %1819 = vmatmul.bf16.gmra.mxu0 %v1740_v27  ;;  %v1469_v27 = vor.u32 %v1468_v33, %v1465_v32 }
  0xd1   : > { %v876_v46 = vpop.f32.mrf.mxu3  ;;  %v1222_v48 = vpop.f32.mrf.mxu1  ;;  %v1470_v49 = vsel %vm1364_vm3, %v1451_v0, %v1469_v27 }
  0xd2   : > { %v4110_v35 = vadd.f32 %v876_v46, %v842_v45 }
  0xd4   : > { %v1188_v53 = vpop.f32.mrf.mxu0 }
  0xd5   : > { %v1223_v1 = vadd.f32 %v1222_v48, %v1188_v53 }
  0xd6   : > { %v844_v3 = vpop.f32.mrf.mxu2 }
  0xd9   : > { %v878_v4 = vpop.f32.mrf.mxu3  ;;  %v1225_v57 = vpop.f32.mrf.mxu1 }
  0xda   : > { %v4115_v6 = vadd.f32 %v878_v4, %v844_v3 }
  0xdb   : > { %1600 = vmatmul.bf16.gmra.mxu2 %v1443_v5 }
  0xdc   : > { %2521 = vmatmul.bf16.gmra.mxu1 %v2439_v8  ;;  %v1191_v15 = vpop.f32.mrf.mxu0 }
  0xdd   : > { %v1226_v21 = vadd.f32 %v1225_v57, %v1191_v15 }
  0xde   : > { %1634 = vmatmul.bf16.gmra.mxu3 %v1452_v9  ;;  %v890_v23 = vpop.f32.mrf.mxu2 }
  0xdf   : > { %v891_v24 = vadd.f32 %v890_v23, %v4064_v13  ;;  %1824 = vmatmul.bf16.gmra.mxu0 %v1742_v20  ;;  %v1461_v13 = vsel %vm1364_vm3, %v1442_v59, %v1460_v36 }
  0xe1   : > { %v924_v26 = vpop.f32.mrf.mxu3  ;;  %v1227_v28 = vpop.f32.mrf.mxu1 }
  0xe2   : > { %v925_v31 = vadd.f32 %v924_v26, %v891_v24 }
  0xe4   : > { %v4121_v34 = vadd.f32 %v1221_v40, %v925_v31  ;;  %v1193_v39 = vpop.f32.mrf.mxu0  ;;  %v3559_v31 = vmov 0  }
  0xe5   : > { %v1228_v30 = vadd.f32 %v1227_v28, %v1193_v39 }
  0xe6   : > { %v892_v41 = vpop.f32.mrf.mxu2 }
  0xe7   : > { %v893_v42 = vadd.f32 %v892_v41, %v4074_v37 }
  0xe9   : > { %v926_v44 = vpop.f32.mrf.mxu3  ;;  %v1230_v45 = vpop.f32.mrf.mxu1 }
  0xea   : > { %v927_v46 = vadd.f32 %v926_v44, %v893_v42 }
  0xeb   : > { %1605 = vmatmul.bf16.gmra.mxu2 %v1461_v13 }
  0xec   : > { %v4126_v50 = vadd.f32 %v1223_v1, %v927_v46  ;;  %v1196_v40 = vpop.f32.mrf.mxu0  ;;  %v4134_v1 = vshrl.u32 %v1890_v38, 7 }
  0xed   : > { %v1231_v48 = vadd.f32 %v1230_v45, %v1196_v40 }
  0xee   : > { %1639 = vmatmul.bf16.gmra.mxu3 %v1470_v49  ;;  %v895_v51 = vpop.f32.mrf.mxu2  ;;  %v1905_v3 = vshrl.u32 %v4134_v1, 16  ;;  %v4141_v5 = vadd.s32 8, %v4134_v1  ;;  %v4147_v14 = vadd.s32 16, %v4134_v1 }
  0xef   : > { %v896_v52 = vadd.f32 %v895_v51, %v4088_v55  ;;  %v1904_v55 = vand.u32 65535, %v4134_v1 }
  0xf0   : > { %v1909_v10 = vmul.u32 52429, %v1905_v3  ;;  %v1933_v9 = vand.u32 65535, %v4141_v5  ;;  %v1910_v11 = vmul.u32 52428, %v1905_v3  ;;  %v1934_v23 = vshrl.u32 %v4141_v5, 16 }
  0xf1   : > { %v929_v54 = vpop.f32.mrf.mxu3  ;;  %v1232_v56 = vpop.f32.mrf.mxu1  ;;  %v1907_v8 = vmul.u32 52429, %v1904_v55  ;;  %v1962_v26 = vand.u32 65535, %v4147_v14  ;;  %v1963_v36 = vshrl.u32 %v4147_v14, 16 }
  0xf2   : > { %v930_v58 = vadd.f32 %v929_v54, %v896_v52  ;;  %v1937_v24 = vmul.u32 52428, %v1933_v9  ;;  %v1936_v16 = vmul.u32 52429, %v1933_v9  ;;  %v1938_v33 = vmul.u32 52429, %v1934_v23 }
  0xf3   : > { %v1914_v42 = vshrl.u32 %v1909_v10, 16  ;;  %v1965_v54 = vmul.u32 52429, %v1962_v26 }
  0xf4   : > { %v4129_v37 = vadd.f32 %v1226_v21, %v930_v58  ;;  %v1198_v47 = vpop.f32.mrf.mxu0  ;;  %v1913_v21 = vshll.u32 %v1909_v10, 16  ;;  %v1941_v45 = vshrl.u32 %v1937_v24, 16  ;;  %v1942_v13 = vshll.u32 %v1938_v33, 16 }
  0xf5   : > { %v4131_v60 = vadd.f32 %v1232_v56, %v1198_v47  ;;  %v4160_v56 = vmul.u32 52429, %v1963_v36  ;;  %v1943_v38 = vshrl.u32 %v1938_v33, 16 }
  0xf6   : > { %v897_v59 = vpop.f32.mrf.mxu2 }
  0xf7   : > { %v898_v61 = vadd.f32 %v897_v59, %v4098_v17  ;;  %v1908_v17 = vmul.u32 52428, %v1904_v55  ;;  %v1971_v55 = vshll.u32 %v4160_v56, 16 }
  0xf9   : > { %v931_v53 = vpop.f32.mrf.mxu3  ;;  %v1235_v62 = vpop.f32.mrf.mxu1  ;;  %v1911_v20 = vshll.u32 %v1908_v17, 16  ;;  %v1912_v22 = vshrl.u32 %v1908_v17, 16  ;;  %v1968_v17 = vmul.u32 52428, %v1963_v36 }
  0xfa   : > { %v932_v0 = vadd.f32 %v931_v53, %v898_v61 }
  0xfb   : > { %vm1915_vm4 = vc.u32 %v1907_v8, %v1911_v20  ;;  %v1917_v29 = vadd.s32 %v1911_v20, %v1907_v8 }
  0xfc   : > { %v4136_v2 = vadd.f32 %v1228_v30, %v932_v0  ;;  %v1201_v4 = vpop.f32.mrf.mxu0  ;;  %v1916_v32 = vsel %vm1915_vm4, 1, %v3559_v31  ;;  %v1939_v30 = vmul.u32 52428, %v1934_v23 }
  0xfd   : > { %v4143_v57 = vadd.f32 %v1235_v62, %v1201_v4  ;;  %v1918_v27 = vadd.s32 %v1916_v32, %v1910_v11  ;;  %vm1919_vm5 = vc.u32 %v1917_v29, %v1913_v21  ;;  %v4172_v11 = vadd.s32 32, %v4134_v1 }
  0xfe   : > { %v900_v12 = vpop.f32.mrf.mxu2  ;;  %v1920_v44 = vsel %vm1919_vm5, 1, %v3559_v31 }
  0xff   : > { %v901_v15 = vadd.f32 %v900_v12, %v4066_v19  ;;  %v1940_v19 = vshll.u32 %v1937_v24, 16  ;;  %v1922_v49 = vadd.s32 %v1920_v44, %v1918_v27  ;;  %v1972_v44 = vshrl.u32 %v4160_v56, 16 }
 0x101   : > { %v934_v18 = vpop.f32.mrf.mxu3  ;;  %v1237_v7 = vpop.f32.mrf.mxu1  ;;  %vm1944_vm6 = vc.u32 %v1936_v16, %v1940_v19  ;;  %v1946_v40 = vadd.s32 %v1940_v19, %v1936_v16  ;;  %v1923_v59 = vadd.s32 %v1922_v49, %v1912_v22 }
 0x102   : > { %v935_v28 = vadd.f32 %v934_v18, %v901_v15  ;;  %v1945_v52 = vsel %vm1944_vm6, 1, %v3559_v31 }
 0x103   : > { %v1947_v61 = vadd.s32 %v1945_v52, %v1939_v30  ;;  %vm1948_vm7 = vc.u32 %v1946_v40, %v1942_v13  ;;  %v1924_v4 = vadd.s32 %v1923_v59, %v1914_v42 }
 0x104   : > { %v4154_v39 = vadd.f32 %v1231_v48, %v935_v28  ;;  %v1203_v41 = vpop.f32.mrf.mxu0  ;;  %v1966_v48 = vmul.u32 52428, %v1962_v26  ;;  %v1949_v62 = vsel %vm1948_vm7, 1, %v3559_v31 }
 0x105   : > { %v4157_v46 = vadd.f32 %v1237_v7, %v1203_v41  ;;  %v1951_v8 = vadd.s32 %v1949_v62, %v1947_v61  ;;  %v1925_v15 = vshrl.u32 %v1924_v4, 3 }
 0x106   : > { %v902_v51 = vpop.f32.mrf.mxu2  ;;  %v1969_v0 = vshll.u32 %v1966_v48, 16  ;;  %v1970_v10 = vshrl.u32 %v1966_v48, 16 }
 0x107   : > { %v903_v58 = vadd.f32 %v902_v51, %v4078_v43  ;;  %v4166_v43 = vadd.s32 24, %v4134_v1  ;;  %v1952_v18 = vadd.s32 %v1951_v8, %v1941_v45  ;;  %v1926_v23 = vmul.u32 10, %v1925_v15 }
 0x108   : > { %vm1973_vm8 = vc.u32 %v1965_v54, %v1969_v0  ;;  %v1975_v12 = vadd.s32 %v1969_v0, %v1965_v54  ;;  %v2020_v0 = vand.u32 65535, %v4172_v11 }
 0x109   : > { %v936_v47 = vpop.f32.mrf.mxu3  ;;  %v1240_v53 = vpop.f32.mrf.mxu1  ;;  %v1974_v21 = vsel %vm1973_vm8, 1, %v3559_v31  ;;  %v1991_v7 = vand.u32 65535, %v4166_v43  ;;  %v1992_v22 = vshrl.u32 %v4166_v43, 16  ;;  %v1953_v26 = vadd.s32 %v1952_v18, %v1943_v38 }
 0x10a   : > { %v937_v3 = vadd.f32 %v936_v47, %v903_v58  ;;  %vm1977_vm9 = vc.u32 %v1975_v12, %v1971_v55  ;;  %v1976_v28 = vadd.s32 %v1974_v21, %v1968_v17  ;;  %v1927_v27 = vsub.s32 %v4134_v1, %v1926_v23 }
 0x10b   : > { %v1978_v29 = vsel %vm1977_vm9, 1, %v3559_v31  ;;  %v1994_v16 = vmul.u32 52429, %v1991_v7  ;;  %v1995_v32 = vmul.u32 52428, %v1991_v7  ;;  %v4180_v33 = vmul.u32 52429, %v1992_v22 }
 0x10c   : > { %v4169_v9 = vadd.f32 %v4131_v60, %v937_v3  ;;  %v1206_v20 = vpop.f32.mrf.mxu0  ;;  %v1954_v30 = vshrl.u32 %v1953_v26, 3  ;;  %v1980_v41 = vadd.s32 %v1978_v29, %v1976_v28  ;;  %v1997_v45 = vmul.u32 52428, %v1992_v22 }
 0x10d   : > { %v4177_v24 = vadd.f32 %v1240_v53, %v1206_v20  ;;  %v1998_v13 = vshll.u32 %v1995_v32, 16  ;;  %v2000_v49 = vshll.u32 %v4180_v33, 16  ;;  %vm2191_vm10 = vcmp.ne.s32.totalorder %v1927_v27, 0 }
 0x10e   : > { %v905_v60 = vpop.f32.mrf.mxu2  ;;  %vm2201_vm11 = vcmp.lt.s32.totalorder %v1927_v27, 0  ;;  %v2221_v51 = vadd.s32 10, %v1927_v27  ;;  %v1955_v52 = vmul.u32 10, %v1954_v30  ;;  %v1981_v54 = vadd.s32 %v1980_v41, %v1970_v10 }
 0x10f   : > { %v906_v19 = vadd.f32 %v905_v60, %v4090_v63  ;;  %vm2211_vm12 = vmand %vm2201_vm11, %vm2191_vm10  ;;  %v1999_v63 = vshrl.u32 %v1995_v32, 16  ;;  %vm2002_vm13 = vc.u32 %v1994_v16, %v1998_v13  ;;  %v2004_v56 = vadd.s32 %v1998_v13, %v1994_v16 }
 0x110   : > { %v2231_v58 = vsel %vm2211_vm12, %v2221_v51, %v1927_v27  ;;  %v2003_v47 = vsel %vm2002_vm13, 1, %v3559_v31  ;;  %v1956_v59 = vsub.s32 %v4141_v5, %v1955_v52  ;;  %v1982_v53 = vadd.s32 %v1981_v54, %v1972_v44 }
 0x111   : > { %v939_v36 = vpop.f32.mrf.mxu3  ;;  %v1242_v42 = vpop.f32.mrf.mxu1  ;;  %vm2241_vm14 = vcmp.ge.s32.totalorder %v2231_v58, 1  ;;  %vm2251_vm15 = vcmp.le.s32.totalorder %v2231_v58, 8  ;;  %v2005_v62 = vadd.s32 %v2003_v47, %v1997_v45  ;;  %vm2006_vm0 = vc.u32 %v2004_v56, %v2000_v49 }
 0x112   : > { %v940_v40 = vadd.f32 %v939_v36, %v906_v19  ;;  %vm2192_vm1 = vcmp.ne.s32.totalorder %v1956_v59, 0  ;;  %vm2202_vm2 = vcmp.lt.s32.totalorder %v1956_v59, 0  ;;  %v1983_v3 = vshrl.u32 %v1982_v53, 3  ;;  %vm4202_vm4 = vmand %vm2241_vm14, %vm2251_vm15 }
 0x113   : > { %vm2212_vm3 = vmand %vm2202_vm2, %vm2192_vm1  ;;  %v2001_v17 = vshrl.u32 %v4180_v33, 16  ;;  %v2007_v5 = vsel %vm2006_vm0, 1, %v3559_v31  ;;  %v2021_v10 = vshrl.u32 %v4172_v11, 16  ;;  %v4198_v21 = vmul.u32 52428, %v2020_v0 }
 0x114   : > { %v4187_v48 = vadd.f32 %v4143_v57, %v940_v40  ;;  %v1208_v61 = vpop.f32.mrf.mxu0  ;;  %v2222_v57 = vadd.s32 10, %v1956_v59  ;;  %v1984_v18 = vmul.u32 10, %v1983_v3  ;;  %v2009_v20 = vadd.s32 %v2007_v5, %v2005_v62 }
 0x115   : > { %v4191_v38 = vadd.f32 %v1242_v42, %v1208_v61  ;;  %v2023_v22 = vmul.u32 52429, %v2020_v0  ;;  %v4209_v60 = vmul.u32 52429, %v2021_v10  ;;  %v2027_v16 = vshll.u32 %v4198_v21, 16 }
 0x116   : > { %v907_v55 = vpop.f32.mrf.mxu2  ;;  %v2232_v15 = vsel %vm2212_vm3, %v2222_v57, %v1956_v59  ;;  %v1985_v26 = vsub.s32 %v4147_v14, %v1984_v18  ;;  %v2010_v28 = vadd.s32 %v2009_v20, %v1999_v63  ;;  %v4222_v41 = vadd.s32 40, %v4134_v1 }
 0x117   : > { %v908_v4 = vadd.f32 %v907_v55, %v4104_v25  ;;  %vm2242_vm5 = vcmp.ge.s32.totalorder %v2232_v15, 1  ;;  %vm2252_vm6 = vcmp.le.s32.totalorder %v2232_v15, 8  ;;  %v2029_v19 = vshll.u32 %v4209_v60, 16 }
 0x118   : > { %vm2193_vm7 = vcmp.ne.s32.totalorder %v1985_v26, 0  ;;  %vm2203_vm8 = vcmp.lt.s32.totalorder %v1985_v26, 0  ;;  %v2223_v32 = vadd.s32 10, %v1985_v26  ;;  %v2011_v33 = vadd.s32 %v2010_v28, %v2001_v17  ;;  %vm4217_vm11 = vmand %vm2242_vm5, %vm2252_vm6 }
 0x119   : > { %v941_v8 = vpop.f32.mrf.mxu3  ;;  %v2502_v12 = vpop.f32.mrf.mxu1  ;;  %vm2213_vm9 = vmand %vm2203_vm8, %vm2193_vm7  ;;  %vm2031_vm10 = vc.u32 %v2023_v22, %v2027_v16  ;;  %v2033_v30 = vadd.s32 %v2027_v16, %v2023_v22  ;;  %v2026_v13 = vmul.u32 52428, %v2021_v10  ;;  %v2049_v52 = vand.u32 65535, %v4222_v41 }
 0x11a   : > { %v942_v7 = vadd.f32 %v941_v8, %v908_v4  ;;  %v2547_v23 = vsel %vm4202_vm4, %v2502_v12, 0.0  ;;  %v2012_v27 = vshrl.u32 %v2011_v33, 3  ;;  %v2032_v51 = vsel %vm2031_vm10, 1, %v3559_v31 }
 0x11b   : > { %v2572_v42 = vmul.f32 %v2547_v23, %v2547_v23  ;;  %v2050_v47 = vshrl.u32 %v4222_v41, 16  ;;  %vm2035_vm13 = vc.u32 %v2033_v30, %v2029_v19  ;;  %v2034_v62 = vadd.s32 %v2032_v51, %v2026_v13 }
 0x11c   : > { %v4212_v29 = vadd.f32 %v4157_v46, %v942_v7  ;;  %v2233_v46 = vsel %vm2213_vm9, %v2223_v32, %v1985_v26  ;;  %v2013_v40 = vmul.u32 10, %v2012_v27  ;;  %v4236_v58 = vpop.f32.mrf.mxu0  ;;  %v4244_v0 = vmul.u32 52428, %v2049_v52 }
 0x11d   : > { %vm2243_vm12 = vcmp.ge.s32.totalorder %v2233_v46, 1  ;;  %vm2253_vm14 = vcmp.le.s32.totalorder %v2233_v46, 8  ;;  %v2036_v3 = vsel %vm2035_vm13, 1, %v3559_v31  ;;  %v4247_v4 = vmul.u32 52429, %v2050_v47 }
 0x11e   : > { %v910_v14 = vpop.f32.mrf.mxu2  ;;  %v2014_v61 = vsub.s32 %v4166_v43, %v2013_v40  ;;  %vm4250_vm2 = vmand %vm2243_vm12, %vm2253_vm14  ;;  %v2056_v17 = vshll.u32 %v4244_v0, 16  ;;  %v4256_v5 = vadd.s32 48, %v4134_v1  ;;  %v2028_v20 = vshrl.u32 %v4198_v21, 16 }
 0x11f   : > { %v911_v44 = vadd.f32 %v910_v14, %v4110_v35  ;;  %v2038_v7 = vadd.s32 %v2036_v3, %v2034_v62  ;;  %v2030_v28 = vshrl.u32 %v4209_v60, 16  ;;  %v2058_v16 = vshll.u32 %v4247_v4, 16 }
 0x120   : > { %vm2194_vm15 = vcmp.ne.s32.totalorder %v2014_v61, 0  ;;  %vm2204_vm0 = vcmp.lt.s32.totalorder %v2014_v61, 0  ;;  %v2224_v57 = vadd.s32 10, %v2014_v61  ;;  %v2078_v22 = vand.u32 65535, %v4256_v5 }
 0x121   : > { %v944_v45 = vpop.f32.mrf.mxu3  ;;  %v2504_v49 = vpop.f32.mrf.mxu1  ;;  %vm2214_vm1 = vmand %vm2204_vm0, %vm2194_vm15  ;;  %v2079_v14 = vshrl.u32 %v4256_v5, 16  ;;  %v2039_v27 = vadd.s32 %v2038_v7, %v2028_v20  ;;  %v2055_v30 = vmul.u32 52428, %v2050_v47 }
 0x122   : > { %v945_v54 = vadd.f32 %v944_v45, %v911_v44  ;;  %v3494_v63 = vpack.c.bf16 %v2504_v49, %v2502_v12  ;;  %v2548_v35 = vsel %vm4217_vm11, %v2504_v49, 0.0  ;;  %v2234_v18 = vsel %vm2214_vm1, %v2224_v57, %v2014_v61 }
 0x123   : > { %v2557_v56 = vadd.f32 %v2548_v35, %v2547_v23  ;;  %v2573_v59 = vmul.f32 %v2548_v35, %v2548_v35  ;;  %vm2244_vm5 = vcmp.ge.s32.totalorder %v2234_v18, 1  ;;  %vm2254_vm6 = vcmp.le.s32.totalorder %v2234_v18, 8 }
 0x124   : > { %v4241_v53 = vadd.f32 %v4177_v24, %v945_v54  ;;  %3495 = vst [vmem:[%s4230_s6] sm:$0xff] %v3494_v63   ;;  %v2052_v24 = vmul.u32 52429, %v2049_v52  ;;  %v1807_v21 = vpop.f32.mrf.mxu0  ;;  %vm4272_vm7 = vmand %vm2244_vm5, %vm2254_vm6  ;;  %v2081_v13 = vmul.u32 52429, %v2078_v22  ;;  %v4276_v49 = vmul.u32 52429, %v2079_v14 }
 0x125   : > { %v2582_v55 = vadd.f32 %v2573_v59, %v2572_v42  ;;  %v4269_v42 = vmul.u32 52428, %v2078_v22  ;;  %v2040_v54 = vadd.s32 %v2039_v27, %v2030_v28  ;;  %v4280_v35 = vadd.s32 56, %v4134_v1 }
 0x126   : > { %v912_v8 = vpop.f32.mrf.mxu2  ;;  %vm2060_vm3 = vc.u32 %v2052_v24, %v2056_v17  ;;  %v2087_v3 = vshll.u32 %v4276_v49, 16  ;;  %v2059_v18 = vshrl.u32 %v4247_v4, 16 }
 0x127   : > { %v913_v10 = vadd.f32 %v912_v8, %v4115_v6  ;;  %v2062_v6 = vadd.s32 %v2056_v17, %v2052_v24  ;;  %v2061_v60 = vsel %vm2060_vm3, 1, %v3559_v31  ;;  %v2085_v40 = vshll.u32 %v4269_v42, 16 }
 0x128   : > { %v2063_v63 = vadd.s32 %v2061_v60, %v2055_v30  ;;  %v2041_v17 = vshrl.u32 %v2040_v54, 3  ;;  %v2108_v20 = vshrl.u32 %v4280_v35, 16 }
 0x129   : > { %v946_v12 = vpop.f32.mrf.mxu3  ;;  %v2507_v15 = vpop.f32.mrf.mxu1  ;;  %vm2064_vm8 = vc.u32 %v2062_v6, %v2058_v16  ;;  %vm2089_vm9 = vc.u32 %v2081_v13, %v2085_v40  ;;  %v2091_v8 = vadd.s32 %v2085_v40, %v2081_v13 }
 0x12a   : > { %v947_v23 = vadd.f32 %v946_v12, %v913_v10  ;;  %v2549_v26 = vsel %vm4250_vm2, %v2507_v15, 0.0  ;;  %v2065_v59 = vsel %vm2064_vm8, 1, %v3559_v31  ;;  %v2107_v12 = vand.u32 65535, %v4280_v35 }
 0x12b   : > { %v2558_v32 = vadd.f32 %v2557_v56, %v2549_v26  ;;  %v2574_v33 = vmul.f32 %v2549_v26, %v2549_v26  ;;  %v2067_v10 = vadd.s32 %v2065_v59, %v2063_v63  ;;  %vm2093_vm10 = vc.u32 %v2091_v8, %v2087_v3 }
 0x12c   : > { %v4266_v19 = vadd.f32 %v4191_v38, %v947_v23  ;;  %v4297_v22 = vmul.u32 52428, %v2107_v12  ;;  %v4300_v23 = vadd.s32 64, %v4134_v1  ;;  %v2110_v16 = vmul.u32 52429, %v2107_v12 }
 0x12d   : > { %v2583_v46 = vadd.f32 %v2582_v55, %v2574_v33  ;;  %v2057_v55 = vshrl.u32 %v4244_v0, 16  ;;  %v2084_v0 = vmul.u32 52428, %v2079_v14  ;;  %v2042_v4 = vmul.u32 10, %v2041_v17 }
 0x12e   : > { %v1586_v44 = vpop.f32.mrf.mxu2  ;;  %v2094_v60 = vsel %vm2093_vm10, 1, %v3559_v31  ;;  %v2137_v63 = vshrl.u32 %v4300_v23, 16 }
 0x12f   : > { %v2068_v14 = vadd.s32 %v2067_v10, %v2057_v55  ;;  %v2043_v40 = vsub.s32 %v4172_v11, %v2042_v4  ;;  %v2115_v4 = vshrl.u32 %v4297_v22, 16 }
 0x131   : > { %v1620_v38 = vpop.f32.mrf.mxu3  ;;  %v2509_v52 = vpop.f32.mrf.mxu1  ;;  %vm2205_vm13 = vcmp.lt.s32.totalorder %v2043_v40, 0 }
 0x132   : > { %v1621_v51 = vadd.f32 %v1620_v38, %v1586_v44  ;;  %v3499_v47 = vpack.c.bf16 %v2509_v52, %v2507_v15  ;;  %v2550_v56 = vsel %vm4272_vm7, %v2509_v52, 0.0  ;;  %v1810_v15 = vpop.f32.mrf.mxu0  ;;  %v2136_v38 = vand.u32 65535, %v4300_v23 }
 0x133   : > { %v4285_v61 = vadd.f32 %v2558_v32, %v2550_v56  ;;  %v2575_v62 = vmul.f32 %v2550_v56, %v2550_v56  ;;  %v4303_v32 = vmul.u32 52429, %v2108_v20  ;;  %v2113_v52 = vmul.u32 52428, %v2108_v20 }
 0x134   : > { %v1655_v57 = vadd.f32 %v1621_v51, %v4121_v34  ;;  %3520 = vst [vmem:[%s4230_s6 + $0x8] sm:$0xff] %v3499_v47   ;;  %v2090_v34 = vsel %vm2089_vm9, 1, %v3559_v31  ;;  %v2069_v51 = vadd.s32 %v2068_v14, %v2059_v18  ;;  %v4327_v8 = vmul.u32 52428, %v2136_v38 }
 0x135   : > { %v4291_v24 = vadd.f32 %v2583_v46, %v2575_v62  ;;  %v2114_v46 = vshll.u32 %v4297_v22, 16  ;;  %v2092_v30 = vadd.s32 %v2090_v34, %v2084_v0  ;;  %v2116_v44 = vshll.u32 %v4303_v32, 16 }
 0x136   : > { %v1588_v7 = vpop.f32.mrf.mxu2  ;;  %v1840_v26 = vadd.f32 %v4236_v58, %v1655_v57  ;;  %v2070_v17 = vshrl.u32 %v2069_v51, 3  ;;  %v2139_v18 = vmul.u32 52429, %v2136_v38  ;;  %v4335_v0 = vmul.u32 52429, %v2137_v63 }
 0x137   : > { %vm2118_vm12 = vc.u32 %v2110_v16, %v2114_v46  ;;  %v2120_v54 = vadd.s32 %v2114_v46, %v2110_v16  ;;  %v2096_v59 = vadd.s32 %v2094_v60, %v2092_v30  ;;  %v2143_v16 = vshll.u32 %v4327_v8, 16 }
 0x138   : > { %v2291_v58 = vsel %vm4202_vm4, %v1840_v26, 0.0  ;;  %v2119_v25 = vsel %vm2118_vm12, 1, %v3559_v31  ;;  %v2142_v46 = vmul.u32 52428, %v2137_v63  ;;  %v2071_v30 = vmul.u32 10, %v2070_v17 }
 0x139   : > { %v1622_v28 = vpop.f32.mrf.mxu3  ;;  %v4305_v6 = vpop.f32.mrf.mxu1  ;;  %v2316_v47 = vmul.f32 %v2291_v58, %v2291_v58  ;;  %vm2122_vm4 = vc.u32 %v2120_v54, %v2116_v44  ;;  %v2121_v12 = vadd.s32 %v2119_v25, %v2113_v52  ;;  %v2145_v60 = vshll.u32 %v4335_v0, 16 }
 0x13a   : > { %v1623_v33 = vadd.f32 %v1622_v28, %v1588_v7  ;;  %v1812_v3 = vpop.f32.mrf.mxu0  ;;  %v2123_v7 = vsel %vm2122_vm4, 1, %v3559_v31  ;;  %vm2147_vm14 = vc.u32 %v2139_v18, %v2143_v16  ;;  %v2117_v44 = vshrl.u32 %v4303_v32, 16 }
 0x13b   : > { %v2125_v14 = vadd.s32 %v2123_v7, %v2121_v12  ;;  %v2148_v22 = vsel %vm2147_vm14, 1, %v3559_v31  ;;  %v2149_v51 = vadd.s32 %v2143_v16, %v2139_v18  ;;  %v4350_v63 = vadd.s32 72, %v4134_v1 }
 0x13c   : > { %v1656_v27 = vadd.f32 %v1623_v33, %v4126_v50  ;;  %v2086_v50 = vshrl.u32 %v4269_v42, 16  ;;  %v2150_v54 = vadd.s32 %v2148_v22, %v2142_v46 }
 0x13d   : > { %v2126_v25 = vadd.s32 %v2125_v14, %v2115_v4  ;;  %vm2151_vm0 = vc.u32 %v2149_v51, %v2145_v60 }
 0x13e   : > { %v1841_v13 = vadd.f32 %v1807_v21, %v1656_v27  ;;  %v1591_v56 = vpop.f32.mrf.mxu2  ;;  %v2097_v28 = vadd.s32 %v2096_v59, %v2086_v50  ;;  %v2225_v27 = vadd.s32 10, %v2043_v40  ;;  %v2144_v59 = vshrl.u32 %v4327_v8, 16 }
 0x140   : > { %v3469_v21 = vpack.c.bf16 %v1841_v13, %v1840_v26  ;;  %v2292_v11 = vsel %vm4217_vm11, %v1841_v13, 0.0  ;;  %v2088_v26 = vshrl.u32 %v4276_v49, 16  ;;  %vm2195_vm11 = vcmp.ne.s32.totalorder %v2043_v40, 0 }
 0x141   : > { %v2301_v62 = vadd.f32 %v2292_v11, %v2291_v58  ;;  %v2317_v55 = vmul.f32 %v2292_v11, %v2292_v11  ;;  %v1625_v57 = vpop.f32.mrf.mxu3  ;;  %v4330_v10 = vpop.f32.mrf.mxu1  ;;  %vm2215_vm15 = vmand %vm2205_vm13, %vm2195_vm11 }
 0x142   : > { %3470 = vst [vmem:[%s4320_s9] sm:$0xff] %v3469_v21   ;;  %v1626_v42 = vadd.f32 %v1625_v57, %v1591_v56  ;;  %v3504_v36 = vpack.c.bf16 %v4330_v10, %v4305_v6  ;;  %v2098_v58 = vadd.s32 %v2097_v28, %v2088_v26  ;;  %v2235_v43 = vsel %vm2215_vm15, %v2225_v27, %v2043_v40  ;;  %v1815_v11 = vpop.f32.mrf.mxu0 }
 0x143   : > { %v2326_v20 = vadd.f32 %v2317_v55, %v2316_v47  ;;  %v2072_v21 = vsub.s32 %v4222_v41, %v2071_v30  ;;  %v2165_v55 = vand.u32 65535, %v4350_v63  ;;  %v2166_v57 = vshrl.u32 %v4350_v63, 16 }
 0x144   : > { %v1657_v34 = vadd.f32 %v1626_v42, %v4129_v37  ;;  %3521 = vst [vmem:[%s4230_s6 + $0x10] sm:$0xff] %v3504_v36   ;;  %v2099_v56 = vshrl.u32 %v2098_v58, 3  ;;  %vm2245_vm1 = vcmp.ge.s32.totalorder %v2235_v43, 1  ;;  %v2127_v42 = vadd.s32 %v2126_v25, %v2117_v44 }
 0x145   : > { %vm2206_vm3 = vcmp.lt.s32.totalorder %v2072_v21, 0  ;;  %v2146_v41 = vshrl.u32 %v4335_v0, 16  ;;  %v4359_v17 = vmul.u32 52428, %v2165_v55  ;;  %v2168_v26 = vmul.u32 52429, %v2165_v55 }
 0x146   : > { %v1842_v33 = vadd.f32 %v1810_v15, %v1657_v34  ;;  %v1593_v49 = vpop.f32.mrf.mxu2  ;;  %v2100_v12 = vmul.u32 10, %v2099_v56  ;;  %vm2255_vm5 = vcmp.le.s32.totalorder %v2235_v43, 8  ;;  %v2128_v0 = vshrl.u32 %v2127_v42, 3 }
 0x147   : > { %v2226_v45 = vadd.s32 10, %v2072_v21  ;;  %v2171_v60 = vmul.u32 52428, %v2166_v57  ;;  %vm4380_vm8 = vmand %vm2245_vm1, %vm2255_vm5 }
 0x148   : > { %v2293_v37 = vsel %vm4250_vm2, %v1842_v33, 0.0  ;;  %vm2196_vm2 = vcmp.ne.s32.totalorder %v2072_v21, 0  ;;  %v2101_v27 = vsub.s32 %v4256_v5, %v2100_v12 }
 0x149   : > { %v2302_v38 = vadd.f32 %v2301_v62, %v2293_v37  ;;  %v2318_v13 = vmul.f32 %v2293_v37, %v2293_v37  ;;  %v1627_v15 = vpop.f32.mrf.mxu3  ;;  %v4347_v50 = vpop.f32.mrf.mxu1  ;;  %v2152_v62 = vsel %vm2151_vm0, 1, %v3559_v31  ;;  %vm2216_vm6 = vmand %vm2206_vm3, %vm2196_vm2 }
 0x14a   : > { %v1628_v52 = vadd.f32 %v1627_v15, %v1593_v49  ;;  %v2154_v40 = vadd.s32 %v2152_v62, %v2150_v54  ;;  %v1817_v49 = vpop.f32.mrf.mxu0  ;;  %v2236_v5 = vsel %vm2216_vm6, %v2226_v45, %v2072_v21  ;;  %vm2197_vm9 = vcmp.ne.s32.totalorder %v2101_v27, 0 }
 0x14b   : > { %v2327_v47 = vadd.f32 %v2326_v20, %v2318_v13  ;;  %v4363_v20 = vmul.u32 52429, %v2166_v57  ;;  %v2129_v13 = vmul.u32 10, %v2128_v0  ;;  %vm2207_vm12 = vcmp.lt.s32.totalorder %v2101_v27, 0 }
 0x14c   : > { %v1658_v32 = vadd.f32 %v1628_v52, %v4136_v2  ;;  %v2155_v34 = vadd.s32 %v2154_v40, %v2144_v59  ;;  %v2173_v59 = vshrl.u32 %v4359_v17, 16  ;;  %vm2246_vm4 = vcmp.ge.s32.totalorder %v2236_v5, 1  ;;  %vm2217_vm13 = vmand %vm2207_vm12, %vm2197_vm9 }
 0x14d   : > { %v2174_v37 = vshll.u32 %v4363_v20, 16  ;;  %v2227_v62 = vadd.s32 10, %v2101_v27  ;;  %vm2256_vm11 = vcmp.le.s32.totalorder %v2236_v5, 8 }
 0x14e   : > { %v1843_v1 = vadd.f32 %v1812_v3, %v1658_v32  ;;  %v1596_v18 = vpop.f32.mrf.mxu2  ;;  %v2156_v46 = vadd.s32 %v2155_v34, %v2146_v41  ;;  %v2130_v32 = vsub.s32 %v4280_v35, %v2129_v13  ;;  %vm4395_vm0 = vmand %vm2246_vm4, %vm2256_vm11 }
 0x150   : > { %v3474_v2 = vpack.c.bf16 %v1843_v1, %v1842_v33  ;;  %v2294_v8 = vsel %vm4272_vm7, %v1843_v1, 0.0  ;;  %v2172_v33 = vshll.u32 %v4359_v17, 16  ;;  %v2157_v58 = vshrl.u32 %v2156_v46, 3 }
 0x151   : > { %v2303_v36 = vadd.f32 %v2302_v38, %v2294_v8  ;;  %v2319_v7 = vmul.f32 %v2294_v8, %v2294_v8  ;;  %v1630_v3 = vpop.f32.mrf.mxu3  ;;  %v4366_v16 = vpop.f32.mrf.mxu1  ;;  %v2175_v1 = vshrl.u32 %v4363_v20, 16  ;;  %vm2198_vm14 = vcmp.ne.s32.totalorder %v2130_v32, 0 }
 0x152   : > { %3516 = vst [vmem:[%s4320_s9 + $0x8] sm:$0xff] %v3474_v2   ;;  %v1631_v28 = vadd.f32 %v1630_v3, %v1596_v18  ;;  %v3509_v14 = vpack.c.bf16 %v4366_v16, %v4347_v50  ;;  %vm2176_vm7 = vc.u32 %v2168_v26, %v2172_v33  ;;  %v2178_v44 = vadd.s32 %v2172_v33, %v2168_v26  ;;  %v1820_v2 = vpop.f32.mrf.mxu0 }
 0x153   : > { %v2328_v4 = vadd.f32 %v2327_v47, %v2319_v7  ;;  %v2177_v15 = vsel %vm2176_vm7, 1, %v3559_v31  ;;  %vm2208_vm15 = vcmp.lt.s32.totalorder %v2130_v32, 0  ;;  %v2237_v17 = vsel %vm2217_vm13, %v2227_v62, %v2101_v27 }
 0x154   : > { %v1659_v30 = vadd.f32 %v1631_v28, %v4154_v39  ;;  %3522 = vst [vmem:[%s4230_s6 + $0x18] sm:$0xff] %v3509_v14   ;;  %v2179_v52 = vadd.s32 %v2177_v15, %v2171_v60  ;;  %vm2180_vm10 = vc.u32 %v2178_v44, %v2174_v37  ;;  %v2228_v8 = vadd.s32 10, %v2130_v32  ;;  %vm2218_vm1 = vmand %vm2208_vm15, %vm2198_vm14 }
 0x155   : > { %v2181_v21 = vsel %vm2180_vm10, 1, %v3559_v31  ;;  %vm2247_vm5 = vcmp.ge.s32.totalorder %v2237_v17, 1  ;;  %vm2257_vm6 = vcmp.le.s32.totalorder %v2237_v17, 8 }
 0x156   : > { %v1844_v38 = vadd.f32 %v1815_v11, %v1659_v30  ;;  %v1598_v51 = vpop.f32.mrf.mxu2  ;;  %v2158_v11 = vmul.u32 10, %v2157_v58  ;;  %v2183_v42 = vadd.s32 %v2181_v21, %v2179_v52  ;;  %v2238_v45 = vsel %vm2218_vm1, %v2228_v8, %v2130_v32  ;;  %vm4409_vm9 = vmand %vm2247_vm5, %vm2257_vm6 }
 0x157   : > { %v2551_v30 = vsel %vm4380_vm8, %v4305_v6, 0.0  ;;  %vm2248_vm10 = vcmp.ge.s32.totalorder %v2238_v45, 1  ;;  %vm2258_vm12 = vcmp.le.s32.totalorder %v2238_v45, 8  ;;  %vm2597_vm5 = vcmask 1040384  }
 0x158   : > { %v2295_v39 = vsel %vm4380_vm8, %v1844_v38, 0.0  ;;  %v2159_v35 = vsub.s32 %v4300_v23, %v2158_v11  ;;  %v2184_v41 = vadd.s32 %v2183_v42, %v2173_v59  ;;  %v2576_v5 = vmul.f32 %v2551_v30, %v2551_v30  ;;  %vm4420_vm15 = vmand %vm2248_vm10, %vm2258_vm12 }
 0x159   : > { %v2304_v25 = vadd.f32 %v2303_v36, %v2295_v39  ;;  %v2320_v54 = vmul.f32 %v2295_v39, %v2295_v39  ;;  %v1632_v47 = vpop.f32.mrf.mxu3  ;;  %v4387_v56 = vpop.f32.mrf.mxu1  ;;  %v2554_v11 = vsel %vm4420_vm15, %v4366_v16, 0.0  ;;  %vm2599_vm6 = vcmask 1041408  }
 0x15a   : > { %v1633_v43 = vadd.f32 %v1632_v47, %v1598_v51  ;;  %v2185_v20 = vadd.s32 %v2184_v41, %v2175_v1  ;;  %vm2199_vm2 = vcmp.ne.s32.totalorder %v2159_v35, 0  ;;  %vm2209_vm3 = vcmp.lt.s32.totalorder %v2159_v35, 0 }
 0x15b   : > { %v2329_v55 = vadd.f32 %v2328_v4, %v2320_v54  ;;  %v2229_v0 = vadd.s32 10, %v2159_v35  ;;  %vm2219_vm7 = vmand %vm2209_vm3, %vm2199_vm2  ;;  %v2560_v47 = vadd.f32 %v4285_v61, %v2551_v30 }
 0x15c   : > { %v1660_v57 = vadd.f32 %v1633_v43, %v4169_v9  ;;  %v2186_v34 = vshrl.u32 %v2185_v20, 3  ;;  %v2585_v43 = vadd.f32 %v4291_v24, %v2576_v5 }
 0x15d   : > { %v2239_v37 = vsel %vm2219_vm7, %v2229_v0, %v2159_v35  ;;  %vm2601_vm7 = vcmask 1042432  }
 0x15e   : > { %v1845_v40 = vadd.f32 %v1817_v49, %v1660_v57  ;;  %v1601_v18 = vpop.f32.mrf.mxu2  ;;  %v2187_v14 = vmul.u32 10, %v2186_v34  ;;  %vm2249_vm13 = vcmp.ge.s32.totalorder %v2239_v37, 1  ;;  %vm2259_vm14 = vcmp.le.s32.totalorder %v2239_v37, 8 }
 0x15f   : > { %vm4428_vm2 = vmand %vm2249_vm13, %vm2259_vm14  ;;  %v2579_v57 = vmul.f32 %v2554_v11, %v2554_v11 }
 0x160   : > { %v3479_v12 = vpack.c.bf16 %v1845_v40, %v1844_v38  ;;  %v2296_v9 = vsel %vm4395_vm0, %v1845_v40, 0.0  ;;  %v2188_v27 = vsub.s32 %v4350_v63, %v2187_v14  ;;  %v2552_v63 = vsel %vm4395_vm0, %v4330_v10, 0.0  ;;  %v1822_v38 = vpop.f32.mrf.mxu0 }
 0x161   : > { %v2305_v23 = vadd.f32 %v2304_v25, %v2296_v9  ;;  %v2321_v36 = vmul.f32 %v2296_v9, %v2296_v9  ;;  %v1635_v7 = vpop.f32.mrf.mxu3  ;;  %v2524_v26 = vpop.f32.mrf.mxu1  ;;  %v2553_v10 = vsel %vm4409_vm9, %v4347_v50, 0.0  ;;  %v2577_v25 = vmul.f32 %v2552_v63, %v2552_v63 }
 0x162   : > { %3517 = vst [vmem:[%s4320_s9 + $0x10] sm:$0xff] %v3479_v12   ;;  %v1636_v3 = vadd.f32 %v1635_v7, %v1601_v18  ;;  %v3514_v33 = vpack.c.bf16 %v2524_v26, %v4387_v56  ;;  %vm2200_vm4 = vcmp.ne.s32.totalorder %v2188_v27, 0  ;;  %vm2210_vm11 = vcmp.lt.s32.totalorder %v2188_v27, 0 }
 0x163   : > { %v2330_v28 = vadd.f32 %v2329_v55, %v2321_v36  ;;  %vm2220_vm8 = vmand %vm2210_vm11, %vm2200_vm4  ;;  %v2578_v50 = vmul.f32 %v2553_v10, %v2553_v10  ;;  %v2555_v21 = vsel %vm4428_vm2, %v4387_v56, 0.0  ;;  %v2586_v16 = vadd.f32 %v2585_v43, %v2577_v25 }
 0x164   : > { %v1661_v4 = vadd.f32 %v1636_v3, %v4187_v48  ;;  %3523 = vst [vmem:[%s4230_s6 + $0x20] sm:$0xff] %v3514_v33   ;;  %v2230_v48 = vadd.s32 10, %v2188_v27  ;;  %v2580_v17 = vmul.f32 %v2555_v21, %v2555_v21 }
 0x165   : > { %v2587_v31 = vadd.f32 %v2586_v16, %v2578_v50 }
 0x166   : > { %v1846_v46 = vadd.f32 %v1820_v2, %v1661_v4  ;;  %v1603_v58 = vpop.f32.mrf.mxu2  ;;  %v2240_v15 = vsel %vm2220_vm8, %v2230_v48, %v2188_v27 }
 0x167   : > { %vm2250_vm0 = vcmp.ge.s32.totalorder %v2240_v15, 1  ;;  %vm2260_vm1 = vcmp.le.s32.totalorder %v2240_v15, 8  ;;  %v2588_v9 = vadd.f32 %v2587_v31, %v2579_v57 }
 0x168   : > { %v2297_v49 = vsel %vm4409_vm9, %v1846_v46, 0.0  ;;  %vm4437_vm3 = vmand %vm2250_vm0, %vm2260_vm1  ;;  %v1825_v56 = vpop.f32.mrf.mxu0  ;;  %vm2603_vm9 = vcmask 1043456  }
 0x169   : > { %v2306_v44 = vadd.f32 %v2305_v23, %v2297_v49  ;;  %v2322_v6 = vmul.f32 %v2297_v49, %v2297_v49  ;;  %v1637_v13 = vpop.f32.mrf.mxu3  ;;  %v2556_v40 = vsel %vm4437_vm3, %v2524_v26, 0.0  ;;  %v2589_v36 = vadd.f32 %v2588_v9, %v2580_v17 }
 0x16a   : > { %v1638_v22 = vadd.f32 %v1637_v13, %v1603_v58  ;;  %v2581_v18 = vmul.f32 %v2556_v40, %v2556_v40 }
 0x16b   : > { %v2331_v51 = vadd.f32 %v2330_v28, %v2322_v6 }
 0x16c   : > { %v1662_v52 = vadd.f32 %v1638_v22, %v4212_v29  ;;  %v2561_v29 = vadd.f32 %v2560_v47, %v2552_v63  ;;  %v2590_v26 = vadd.f32 %v2589_v36, %v2581_v18 }
 0x16e   : > { %v1847_v32 = vadd.f32 %v1822_v38, %v1662_v52  ;;  %v1606_v55 = vpop.f32.mrf.mxu2  ;;  %v2562_v35 = vadd.f32 %v2561_v29, %v2553_v10 }
 0x170   : > { %v3484_v62 = vpack.c.bf16 %v1847_v32, %v1846_v46  ;;  %v2298_v61 = vsel %vm4420_vm15, %v1847_v32, 0.0  ;;  %v2563_v8 = vadd.f32 %v2562_v35, %v2554_v11  ;;  %v2591_v46 = vrot.slane %v2590_v26, 4  ;;  %v1827_v27 = vpop.f32.mrf.mxu0 }
 0x171   : > { %v2307_v1 = vadd.f32 %v2306_v44, %v2298_v61  ;;  %v2323_v42 = vmul.f32 %v2298_v61, %v2298_v61  ;;  %v1640_v24 = vpop.f32.mrf.mxu3 }
 0x172   : > { %3518 = vst [vmem:[%s4320_s9 + $0x18] sm:$0xff] %v3484_v62   ;;  %v1641_v41 = vadd.f32 %v1640_v24, %v1606_v55  ;;  %v2564_v20 = vadd.f32 %v2563_v8, %v2555_v21  ;;  %v2592_v48 = vadd.f32 %v2591_v46, %v2590_v26 }
 0x173   : > { %v2332_v2 = vadd.f32 %v2331_v51, %v2323_v42 }
 0x174   : > { %v1663_v12 = vadd.f32 %v1641_v41, %v4241_v53  ;;  %v2565_v7 = vadd.f32 %v2564_v20, %v2556_v40  ;;  %v2593_v13 = vrot.slane %v2592_v48, 2 }
 0x176   : > { %v1848_v23 = vadd.f32 %v1825_v56, %v1663_v12  ;;  %v1608_v34 = vpop.f32.mrf.mxu2  ;;  %v2566_v14 = vrot.slane %v2565_v7, 4  ;;  %v2594_v51 = vadd.f32 %v2593_v13, %v2592_v48 }
 0x178   : > { %v2299_v3 = vsel %vm4428_vm2, %v1848_v23, 0.0  ;;  %v2567_v60 = vadd.f32 %v2566_v14, %v2565_v7  ;;  %v2595_v11 = vrot.slane %v2594_v51, 1 }
 0x179   : > { %v2308_v28 = vadd.f32 %v2307_v1, %v2299_v3  ;;  %v2324_v0 = vmul.f32 %v2299_v3, %v2299_v3  ;;  %v1642_v33 = vpop.f32.mrf.mxu3 }
 0x17a   : > { %v1643_v45 = vadd.f32 %v1642_v33, %v1608_v34  ;;  %v2568_v38 = vrot.slane %v2567_v60, 2  ;;  %v2596_v29 = vadd.f32 %v2595_v11, %v2594_v51 }
 0x17b   : > { %v2333_v4 = vadd.f32 %v2332_v2, %v2324_v0 }
 0x17c   : > { %v1664_v53 = vadd.f32 %v1643_v45, %v4266_v19  ;;  %v2569_v39 = vadd.f32 %v2568_v38, %v2567_v60 }
 0x17e   : > { %v1849_v30 = vadd.f32 %v1827_v27, %v1664_v53  ;;  %v2570_v47 = vrot.slane %v2569_v39, 1 }
 0x180   : > { %v3489_v37 = vpack.c.bf16 %v1849_v30, %v1848_v23  ;;  %v2300_v49 = vsel %vm4437_vm3, %v1849_v30, 0.0  ;;  %v2571_v59 = vadd.f32 %v2570_v47, %v2569_v39 }
 0x181   : > { %v2309_v58 = vadd.f32 %v2308_v28, %v2300_v49  ;;  %v2325_v63 = vmul.f32 %v2300_v49, %v2300_v49 }
 0x182   : > { %3519 = vst [vmem:[%s4320_s9 + $0x20] sm:$0xff] %v3489_v37  }
 0x183   : > { %v2310_v44 = vrot.slane %v2309_v58, 4  ;;  %v2334_v6 = vadd.f32 %v2333_v4, %v2325_v63 }
 0x185   : > { %v2311_v15 = vadd.f32 %v2310_v44, %v2309_v58  ;;  %v2335_v22 = vrot.slane %v2334_v6, 4 }
 0x187   : > { %v2312_v19 = vrot.slane %v2311_v15, 2  ;;  %v2336_v5 = vadd.f32 %v2335_v22, %v2334_v6 }
 0x189   : > { %v2313_v10 = vadd.f32 %v2312_v19, %v2311_v15  ;;  %v2337_v52 = vrot.slane %v2336_v5, 2 }
 0x18b   : > { %v2314_v25 = vrot.slane %v2313_v10, 1  ;;  %v2338_v54 = vadd.f32 %v2337_v52, %v2336_v5 }
 0x18d   : > { %v2339_v32 = vrot.slane %v2338_v54, 1  ;;  %v2315_v43 = vadd.f32 %v2314_v25, %v2313_v10 }
 0x18f   : > { %v2340_v50 = vadd.f32 %v2339_v32, %v2338_v54 }
 0x191   : > { %v2598_v21 = vsel %vm2597_vm5, %v2315_v43, %v2340_v50 }
 0x192   : > { %v2600_v62 = vsel %vm2599_vm6, %v2598_v21, %v2571_v59 }
 0x193   : > { %v2602_v61 = vsel %vm2601_vm7, %v2600_v62, %v2596_v29 }
 0x194   : > { %v2604_v55 = vsel %vm2603_vm9, %v2602_v61, 0.0 }
 0x195   : > { %2605 = vst [vmem:[%s242_s14] sm:$0xff] %v2604_v55 }
 0x196 PF: > { %s16_s18 = sadd.s32 1, %s3557_s18  }
 0x197   : > { %p13_p4 = scmp.ge.s32.totalorder %s16_s18, 4  }
 0x199   :  { %15 = sbr.rel (!%p13_p4) target bundleno = 1 (0x1), region = 89 }

</bundles_post_ra>
